<compile_context>
chip_gen: v7x
topology: tpu7x:2x2x1
jax: 0.10.0
libtpu: 0.0.40
codegen_flags: <defaults>
</compile_context>

<pallas_src>
import functools

import numpy as np
import jax
import jax.numpy as jnp
from jax import lax
from jax.experimental import pallas as pl
from jax.experimental.pallas import tpu as pltpu


def _vmem_limits():
    """(vmem_limit_bytes, per-step tile budget) derived from the chip's VMEM."""
    try:
        cap = int(pltpu.get_tpu_info().vmem_capacity_bytes)
    except Exception:
        cap = 64 * 1024 * 1024            # conservative fallback (v7x-sized)
    return int(0.60 * cap), int(0.45 * cap)


def _pick_row_tile(H, W, Wp, Cin, C2, C4, CHUNK, budget):
    """Largest TH dividing H whose per-step footprint fits the VMEM budget."""
    bf, f32 = 2, 4

    def step_bytes(th):
        fixed = ((H + 2) * Wp * Cin * bf * 2                         # xp block (dbl buf)
                 + (Cin * C2 + 9 * C2 * CHUNK + C2 * C4) * bf * 2    # weights (dbl buf)
                 + (2 * C2 + C4) * f32 * 2)                          # biases
        per = (th * W * C4 * bf * 2 + C4 * f32 * 2                   # y / psum blocks
               + (th + 2) * Wp * C2 * (f32 + bf)                     # h1 f32 + masked bf16
               + 3 * (th + 2) * W * C2 * bf                          # dx column slabs
               + th * W * (C2 * (f32 + bf) + C4 * (f32 + bf)))       # conv2 acc/h2, h3/y
        return fixed + int(1.3 * per)

    cand = [th for th in range(1, H + 1) if H % th == 0 and (th * W) % 8 == 0]
    if not cand:
        cand = [H]
    for th in sorted(cand, reverse=True):
        if step_bytes(th) <= budget:
            return th
    return min(cand)


def _pick_flat_tile(HW, C4, budget):
    """Largest row tile dividing HW fitting the VMEM budget (multiple of 8)."""
    def step_bytes(tr):
        return tr * C4 * (2 + 2 + 4) * 2 + tr * C4 * 4 * 2
    cand = [t for t in range(1, HW + 1) if HW % t == 0 and t % 8 == 0]
    if not cand:
        cand = [HW]
    for t in sorted(cand, reverse=True):
        if step_bytes(t) <= budget:
            return t
    return min(cand)


# ----------------- Kernel 1: fused conv1 -> conv2(3x3, grouped) -> conv3 -----------------
def fused_convs_kernel(xp_ref, w1_ref, b1_ref, w2_ref, b2_ref, w3_ref, b3_ref,
                       y_ref, psum_ref, *, TH, H, W, CHUNK):
    r = pl.program_id(1)
    Cin = xp_ref.shape[-1]
    Wp = xp_ref.shape[2]
    C2 = w1_ref.shape[-1]
    C4 = w3_ref.shape[-1]
    NCH = C2 // CHUNK

    # ---- conv1 (1x1) + folded-BN bias + ReLU on a (TH+2)-row halo window ----
    xw = xp_ref[0, pl.ds(r * TH, TH + 2), :, :]                  # (TH+2, Wp, Cin) bf16
    h1 = jnp.dot(xw.reshape((TH + 2) * Wp, Cin), w1_ref[...],
                 preferred_element_type=jnp.float32)
    h1 = jnp.maximum(h1 + b1_ref[...], 0.0).reshape(TH + 2, Wp, C2)

    # conv2 must see the conv's zero padding (not relu(b1)): zero the pad ring
    # (global rows 0 / H+1, cols 0 and >= W+1 incl. the 8-alignment pad cols).
    row = r * TH + lax.broadcasted_iota(jnp.int32, (TH + 2, Wp, 1), 0)
    col = lax.broadcasted_iota(jnp.int32, (TH + 2, Wp, 1), 1)
    valid = (row > 0) & (row < H + 1) & (col > 0) & (col < W + 1)
    h1 = jnp.where(valid, h1, 0.0).astype(jnp.bfloat16)

    # ---- conv2 (3x3, groups=32) as 9 accumulated matmuls per output-channel chunk ----
    # Three width-shifted column slabs are built once; per-tap slices are then
    # 8-aligned row windows (dy*W) and aligned lane windows (chunks).
    cols = [h1[:, dx:dx + W, :].reshape((TH + 2) * W, C2) for dx in range(3)]
    h2_parts = []
    for c in range(NCH):
        lo = c * CHUNK
        acc = jnp.zeros((TH * W, CHUNK), jnp.float32)
        for dy in range(3):
            for dx in range(3):
                slab = cols[dx][dy * W:(dy + TH) * W, lo:lo + CHUNK]
                acc = acc + jnp.dot(slab, w2_ref[c, dy * 3 + dx],
                                    preferred_element_type=jnp.float32)
        h2_parts.append(acc)
    h2 = h2_parts[0] if NCH == 1 else jnp.concatenate(h2_parts, axis=-1)
    h2 = jnp.maximum(h2 + b2_ref[...], 0.0).astype(jnp.bfloat16)    # (TH*W, C2)

    # ---- conv3 (1x1) + bias + ReLU; lane-dense bf16 store ----
    h3 = jnp.dot(h2, w3_ref[...], preferred_element_type=jnp.float32)
    h3 = jnp.maximum(h3 + b3_ref[...], 0.0)                         # (TH*W, C4) f32
    y_ref[...] = h3.astype(jnp.bfloat16).reshape(1, TH * W, C4)

    # per-tile partial channel sums for the SE global average pool (independent
    # blocks -> both grid axes can be "parallel").
    psum_ref[...] = jnp.sum(h3, axis=0).reshape(1, 1, 1, C4)


def fused_convs(xp_bf16, w1, b1, w2, b2, w3, b3, H, W, vmem_limit, budget):
    N, Hp2, Wp, Cin = xp_bf16.shape
    C2 = w1.shape[-1]
    C4 = w3.shape[-1]
    NCH, _, CH, _ = w2.shape
    TH = _pick_row_tile(H, W, Wp, Cin, C2, C4, CH, budget)
    R = H // TH
    kernel = functools.partial(fused_convs_kernel, TH=TH, H=H, W=W, CHUNK=CH)
    # NOTE: weight/bias blocks are grid-invariant; at very large widths they are
    # candidates for pipeline_mode=pl.Buffered(1) to halve their VMEM footprint.
    y, psum = pl.pallas_call(
        kernel,
        out_shape=(
            jax.ShapeDtypeStruct((N, H * W, C4), jnp.bfloat16),
            jax.ShapeDtypeStruct((N, R, 1, C4), jnp.float32),
        ),
        grid=(N, R),
        in_specs=[
            pl.BlockSpec((1, Hp2, Wp, Cin), lambda n, r: (n, 0, 0, 0)),
            pl.BlockSpec((Cin, C2), lambda n, r: (0, 0)),
            pl.BlockSpec((1, C2), lambda n, r: (0, 0)),
            pl.BlockSpec((NCH, 9, CH, CH), lambda n, r: (0, 0, 0, 0)),
            pl.BlockSpec((1, C2), lambda n, r: (0, 0)),
            pl.BlockSpec((C2, C4), lambda n, r: (0, 0)),
            pl.BlockSpec((1, C4), lambda n, r: (0, 0)),
        ],
        out_specs=(
            pl.BlockSpec((1, TH * W, C4), lambda n, r: (n, r, 0)),
            pl.BlockSpec((1, 1, 1, C4), lambda n, r: (n, r, 0, 0)),
        ),
        compiler_params=pltpu.CompilerParams(
            dimension_semantics=("parallel", "parallel"),
            vmem_limit_bytes=vmem_limit),
    )(xp_bf16, w1, b1, w2, b2, w3, b3)
    return y, psum


# --------- Kernel 2: SE scale (tiny MLP, recomputed per tile) + apply + residual + ReLU ---------
def se_apply_kernel(sum_ref, w1_ref, b1_ref, w2_ref, b2_ref, y_ref, res_ref,
                    o_ref, *, inv_hw):
    # SE MLP is tiny; recomputing it per tile keeps both grid axes parallel.
    m = jnp.sum(sum_ref[0], axis=0, keepdims=True) * inv_hw         # (1, C4) channel means
    h = jnp.maximum(jnp.dot(m, w1_ref[...], preferred_element_type=jnp.float32)
                    + b1_ref[...], 0.0)
    s = jax.nn.sigmoid(jnp.dot(h, w2_ref[...], preferred_element_type=jnp.float32)
                       + b2_ref[...])                               # (1, C4)
    y = y_ref[0].astype(jnp.float32)
    res = res_ref[0].astype(jnp.float32)
    o_ref[0] = jnp.maximum(y * s + res, 0.0)


def se_apply_residual_relu(y, residual, psums, w1, b1, w2, b2, hw,
                           vmem_limit, budget):
    N, HW, C4 = y.shape
    R = psums.shape[1]
    Cr = w1.shape[-1]
    TR = _pick_flat_tile(HW, C4, budget)
    T = HW // TR
    kernel = functools.partial(se_apply_kernel, inv_hw=1.0 / float(hw))
    return pl.pallas_call(
        kernel,
        out_shape=jax.ShapeDtypeStruct((N, HW, C4), jnp.float32),
        grid=(N, T),
        in_specs=[
            pl.BlockSpec((1, R, C4), lambda n, t: (n, 0, 0)),
            pl.BlockSpec((C4, Cr), lambda n, t: (0, 0)),
            pl.BlockSpec((1, Cr), lambda n, t: (0, 0)),
            pl.BlockSpec((Cr, C4), lambda n, t: (0, 0)),
            pl.BlockSpec((1, C4), lambda n, t: (0, 0)),
            pl.BlockSpec((1, TR, C4), lambda n, t: (n, t, 0)),
            pl.BlockSpec((1, TR, C4), lambda n, t: (n, t, 0)),
        ],
        out_specs=pl.BlockSpec((1, TR, C4), lambda n, t: (n, t, 0)),
        compiler_params=pltpu.CompilerParams(
            dimension_semantics=("parallel", "parallel"),
            vmem_limit_bytes=vmem_limit),
    )(psums, w1, b1, w2, b2, y, residual)


# ------------------------------------ parameters ------------------------------------
def init_params(key, inplanes, planes, groups=32, reduction=16):
    C2, C4 = planes * 2, planes * 4
    ks = jax.random.split(key, 10)
    p = {}
    p["conv1_w"] = 0.05 * jax.random.normal(ks[0], (C2, inplanes, 1, 1), jnp.float32)
    p["conv2_w"] = 0.05 * jax.random.normal(ks[1], (C2, C2 // groups, 3, 3), jnp.float32)
    p["conv3_w"] = 0.05 * jax.random.normal(ks[2], (C4, C2, 1, 1), jnp.float32)
    for i, c, kbn in zip((1, 2, 3), (C2, C2, C4), (ks[3], ks[4], ks[5])):
        kk = jax.random.split(kbn, 4)
        p[f"bn{i}_gamma"] = 1.0 + 0.1 * jax.random.normal(kk[0], (c,), jnp.float32)
        p[f"bn{i}_beta"] = 0.1 * jax.random.normal(kk[1], (c,), jnp.float32)
        p[f"bn{i}_mean"] = 0.1 * jax.random.normal(kk[2], (c,), jnp.float32)
        p[f"bn{i}_var"] = 1.0 + 0.1 * jax.random.uniform(kk[3], (c,), jnp.float32)
    Cr = C4 // reduction
    p["se_fc1_w"] = 0.1 * jax.random.normal(ks[6], (Cr, C4, 1, 1), jnp.float32)
    p["se_fc1_b"] = 0.1 * jax.random.normal(ks[7], (Cr,), jnp.float32)
    p["se_fc2_w"] = 0.1 * jax.random.normal(ks[8], (C4, Cr, 1, 1), jnp.float32)
    p["se_fc2_b"] = 0.1 * jax.random.normal(ks[9], (C4,), jnp.float32)
    return p


def fold_bn(gamma, beta, mean, var, eps=1e-5):
    scale = gamma / jnp.sqrt(var + eps)
    return scale, beta - mean * scale


def prepare_kernel_params(p, groups=32):
    C2 = p["conv1_w"].shape[0]
    C4 = p["conv3_w"].shape[0]
    cpg = C2 // groups
    s1, b1 = fold_bn(p["bn1_gamma"], p["bn1_beta"], p["bn1_mean"], p["bn1_var"])
    s2, b2 = fold_bn(p["bn2_gamma"], p["bn2_beta"], p["bn2_mean"], p["bn2_var"])
    s3, b3 = fold_bn(p["bn3_gamma"], p["bn3_beta"], p["bn3_mean"], p["bn3_var"])

    kp = {}
    # 1x1 convs as (Cin, Cout) matrices, BN scale folded into columns; bf16 for the MXU.
    kp["w1"] = (jnp.transpose(p["conv1_w"][:, :, 0, 0], (1, 0)) * s1[None, :]).astype(jnp.bfloat16)
    kp["w3"] = (jnp.transpose(p["conv3_w"][:, :, 0, 0], (1, 0)) * s3[None, :]).astype(jnp.bfloat16)
    kp["b1"] = b1.reshape(1, C2).astype(jnp.float32)
    kp["b2"] = b2.reshape(1, C2).astype(jnp.float32)
    kp["b3"] = b3.reshape(1, C4).astype(jnp.float32)

    # Grouped 3x3 conv: block-diagonal tap matrices, CHUNKED along output channels
    # (128-wide for realistic widths) so the dense expansion never pays a full
    # groups-times MXU-FLOP penalty.  Groups are contiguous and never straddle chunks.
    chunk = 128 if (C2 > 128 and C2 % 128 == 0 and 128 % cpg == 0) else C2
    nch = C2 // chunk
    w2 = np.asarray(p["conv2_w"], np.float32)                       # (C2, cpg, 3, 3)
    s2_np = np.asarray(s2, np.float32)
    w2c = np.zeros((nch, 9, chunk, chunk), np.float32)
    for g in range(groups):
        lo = g * cpg
        c, ll = lo // chunk, lo % chunk
        for kh in range(3):
            for kw in range(3):
                w2c[c, kh * 3 + kw, ll:ll + cpg, ll:ll + cpg] = w2[lo:lo + cpg, :, kh, kw].T
    w2c = w2c * s2_np.reshape(nch, chunk)[:, None, None, :]         # fold BN into out cols
    kp["w2"] = jnp.asarray(w2c, jnp.bfloat16)

    Cr = p["se_fc1_w"].shape[0]
    kp["se_w1"] = jnp.transpose(p["se_fc1_w"][:, :, 0, 0], (1, 0)).astype(jnp.float32)
    kp["se_b1"] = p["se_fc1_b"].reshape(1, Cr).astype(jnp.float32)
    kp["se_w2"] = jnp.transpose(p["se_fc2_w"][:, :, 0, 0], (1, 0)).astype(jnp.float32)
    kp["se_b2"] = p["se_fc2_b"].reshape(1, C4).astype(jnp.float32)
    return kp


# --------------------------- full forward (Pallas) ---------------------------
def resnext_bottleneck_forward(x_nchw, kp):
    # TODO(synk): stride > 1 / downsample branch not implemented (residual add
    # requires stride == 1 and inplanes == planes * 4).
    N, Cin, H, W = x_nchw.shape
    C4 = kp["w3"].shape[-1]
    assert Cin == C4, "residual add requires inplanes == planes * 4"

    vmem_limit, budget = _vmem_limits()
    Wp = ((W + 2 + 7) // 8) * 8          # padded width: W+2 rounded up to 8

    # Single bf16 NHWC copy; residual aliases it (no separate f32 residual pass),
    # the fused conv kernel reads the zero-padded version of it.
    xb = jnp.transpose(x_nchw, (0, 2, 3, 1)).astype(jnp.bfloat16)
    residual = xb.reshape(N, H * W, C4)
    xp = jnp.pad(xb, ((0, 0), (1, 1), (1, Wp - W - 1), (0, 0)))

    y, psum = fused_convs(xp, kp["w1"], kp["b1"], kp["w2"], kp["b2"],
                          kp["w3"], kp["b3"], H, W, vmem_limit, budget)
    R = psum.shape[1]
    out = se_apply_residual_relu(y, residual, psum.reshape(N, R, C4),
                                 kp["se_w1"], kp["se_b1"],
                                 kp["se_w2"], kp["se_b2"],
                                 H * W, vmem_limit, budget)
    out = out.reshape(N, H, W, C4)
    return jnp.transpose(out, (0, 3, 1, 2))                          # back to NCHW


# ----------------------------- pure-JAX reference -----------------------------
def ref_forward(x_nchw, p, groups=32, stride=1):
    x = jnp.transpose(x_nchw, (0, 2, 3, 1)).astype(jnp.float32)

    def conv(xx, w_pt, strd, pad, g):
        w = jnp.transpose(w_pt, (2, 3, 1, 0))                        # HWIO
        return lax.conv_general_dilated(
            xx, w, (strd, strd), pad,
            dimension_numbers=("NHWC", "HWIO", "NHWC"),
            feature_group_count=g)

    def bn_relu(y, i):
        s, b = fold_bn(p[f"bn{i}_gamma"], p[f"bn{i}_beta"],
                       p[f"bn{i}_mean"], p[f"bn{i}_var"])
        return jnp.maximum(y * s + b, 0.0)

    out = bn_relu(conv(x, p["conv1_w"], 1, "VALID", 1), 1)
    out = bn_relu(conv(out, p["conv2_w"], stride, [(1, 1), (1, 1)], groups), 2)
    out = bn_relu(conv(out, p["conv3_w"], 1, "VALID", 1), 3)
    m = jnp.mean(out, axis=(1, 2), keepdims=True)
    h = jnp.maximum(jnp.einsum("nijc,rc->nijr", m, p["se_fc1_w"][:, :, 0, 0])
                    + p["se_fc1_b"], 0.0)
    s = jax.nn.sigmoid(jnp.einsum("nijr,cr->nijc", h, p["se_fc2_w"][:, :, 0, 0])
                       + p["se_fc2_b"])
    out = jnp.maximum(out * s + x, 0.0)
    return jnp.transpose(out, (0, 3, 1, 2))


# ------------------------------------ main ------------------------------------
if __name__ == "__main__":
    planes = 32                     # C2 = 64, C4 = 128 (lane-dense)
    inplanes = planes * 4           # 128; residual add valid with downsample=None
    N, H, W = 2, 16, 16

    key = jax.random.PRNGKey(0)
    k_params, k_x = jax.random.split(key)
    raw_params = init_params(k_params, inplanes, planes)
    kernel_params = prepare_kernel_params(raw_params)

    x = jax.random.normal(k_x, (N, inplanes, H, W), jnp.float32)     # NCHW input

    fwd = jax.jit(resnext_bottleneck_forward)
    out = jax.block_until_ready(fwd(x, kernel_params))

    ref = jax.block_until_ready(ref_forward(x, raw_params))
    assert out.shape == ref.shape == (N, inplanes, H, W)
    # bf16 activations/weights + bf16 y/residual streams: ~1-2e-2 abs error vs f32 ref.
    max_err = float(jnp.max(jnp.abs(out - ref)))
    assert max_err < 4e-2, f"mismatch vs reference: max abs err = {max_err}"

    print("KERNEL_OK")
</pallas_src>

<mosaic_0001>
module attributes {stable_mosaic.version = 11 : i64} {
  func.func @fused_convs_kernel(%arg0: i32, %arg1: i32, %arg2: memref<1x18x24x128xbf16, #tpu.memory_space<vmem>>, %arg3: memref<128x64xbf16, #tpu.memory_space<vmem>>, %arg4: memref<1x64xf32, #tpu.memory_space<vmem>>, %arg5: memref<1x9x64x64xbf16, #tpu.memory_space<vmem>>, %arg6: memref<1x64xf32, #tpu.memory_space<vmem>>, %arg7: memref<64x128xbf16, #tpu.memory_space<vmem>>, %arg8: memref<1x128xf32, #tpu.memory_space<vmem>>, %arg9: memref<1x256x128xbf16, #tpu.memory_space<vmem>>, %arg10: memref<1x1x1x128xf32, #tpu.memory_space<vmem>>) attributes {dimension_semantics = [#tpu.dimension_semantics<parallel>, #tpu.dimension_semantics<parallel>], iteration_bounds = array<i64: 2, 1>, scalar_prefetch = 0 : i64, scratch_operands = 0 : i64, tpu.core_type = #tpu.core_type<tc>, window_params = [{transform_indices = @transform_0, window_bounds = array<i64: 1, 18, 24, 128>}, {pipeline_mode = #tpu.pipeline_mode<synchronous>, transform_indices = @transform_1, window_bounds = array<i64: 128, 64>}, {pipeline_mode = #tpu.pipeline_mode<synchronous>, transform_indices = @transform_2, window_bounds = array<i64: 1, 64>}, {pipeline_mode = #tpu.pipeline_mode<synchronous>, transform_indices = @transform_3, window_bounds = array<i64: 1, 9, 64, 64>}, {pipeline_mode = #tpu.pipeline_mode<synchronous>, transform_indices = @transform_4, window_bounds = array<i64: 1, 64>}, {pipeline_mode = #tpu.pipeline_mode<synchronous>, transform_indices = @transform_5, window_bounds = array<i64: 64, 128>}, {pipeline_mode = #tpu.pipeline_mode<synchronous>, transform_indices = @transform_6, window_bounds = array<i64: 1, 128>}, {transform_indices = @transform_7, window_bounds = array<i64: 1, 256, 128>}, {transform_indices = @transform_8, window_bounds = array<i64: 1, 1, 1, 128>}]} {
    %c16_i32 = arith.constant 16 : i32
    %0 = arith.muli %arg1, %c16_i32 : i32
    %c0 = arith.constant 0 : index
    %1 = arith.index_cast %0 : i32 to index
    %c0_0 = arith.constant 0 : index
    %c0_1 = arith.constant 0 : index
    %2 = vector.load %arg2[%c0, %1, %c0_0, %c0_1] : memref<1x18x24x128xbf16, #tpu.memory_space<vmem>>, vector<1x18x24x128xbf16>
    %3 = vector.shape_cast %2 : vector<1x18x24x128xbf16> to vector<18x24x128xbf16>
    %4 = vector.shape_cast %3 : vector<18x24x128xbf16> to vector<432x128xbf16>
    %c0_2 = arith.constant 0 : index
    %c0_3 = arith.constant 0 : index
    %5 = vector.load %arg3[%c0_2, %c0_3] : memref<128x64xbf16, #tpu.memory_space<vmem>>, vector<128x64xbf16>
    %cst = arith.constant dense<0.000000e+00> : vector<432x64xf32>
    %6 = tpu.matmul %4, %5, %cst {dimension_numbers = #tpu.dot_dimension_numbers<[1], [0], [0], [1], [0, 0, 1, 1], [], []>} : vector<432x128xbf16>, vector<128x64xbf16>, vector<432x64xf32> -> vector<432x64xf32>
    %c0_4 = arith.constant 0 : index
    %c0_5 = arith.constant 0 : index
    %7 = vector.load %arg4[%c0_4, %c0_5] : memref<1x64xf32, #tpu.memory_space<vmem>>, vector<1x64xf32>
    %8 = vector.broadcast %7 : vector<1x64xf32> to vector<432x64xf32>
    %9 = arith.addf %6, %8 : vector<432x64xf32>
    %cst_6 = arith.constant 0.000000e+00 : f32
    %10 = vector.broadcast %cst_6 : f32 to vector<432x64xf32>
    %11 = arith.maximumf %9, %10 : vector<432x64xf32>
    %12 = vector.shape_cast %11 : vector<432x64xf32> to vector<18x24x64xf32>
    %c16_i32_7 = arith.constant 16 : i32
    %13 = arith.muli %arg1, %c16_i32_7 : i32
    %14 = tpu.iota {dimensions = array<i32: 0>} : vector<18x24x1xi32>
    %15 = vector.broadcast %13 : i32 to vector<18x24x1xi32>
    %16 = arith.addi %15, %14 : vector<18x24x1xi32>
    %17 = tpu.iota {dimensions = array<i32: 1>} : vector<18x24x1xi32>
    %c0_i32 = arith.constant 0 : i32
    %18 = vector.broadcast %c0_i32 : i32 to vector<18x24x1xi32>
    %19 = arith.cmpi sgt, %16, %18 : vector<18x24x1xi32>
    %c17_i32 = arith.constant 17 : i32
    %20 = vector.broadcast %c17_i32 : i32 to vector<18x24x1xi32>
    %21 = arith.cmpi slt, %16, %20 : vector<18x24x1xi32>
    %22 = arith.andi %19, %21 : vector<18x24x1xi1>
    %c0_i32_8 = arith.constant 0 : i32
    %23 = vector.broadcast %c0_i32_8 : i32 to vector<18x24x1xi32>
    %24 = arith.cmpi sgt, %17, %23 : vector<18x24x1xi32>
    %25 = arith.andi %22, %24 : vector<18x24x1xi1>
    %c17_i32_9 = arith.constant 17 : i32
    %26 = vector.broadcast %c17_i32_9 : i32 to vector<18x24x1xi32>
    %27 = arith.cmpi slt, %17, %26 : vector<18x24x1xi32>
    %28 = arith.andi %25, %27 : vector<18x24x1xi1>
    %cst_10 = arith.constant 0.000000e+00 : f32
    %29 = vector.shape_cast %28 : vector<18x24x1xi1> to vector<18x24x1xi1>
    %30 = vector.broadcast %29 : vector<18x24x1xi1> to vector<18x24x64xi1>
    %31 = vector.broadcast %cst_10 : f32 to vector<18x24x64xf32>
    %32 = arith.select %30, %12, %31 : vector<18x24x64xi1>, vector<18x24x64xf32>
    %33 = arith.truncf %32 : vector<18x24x64xf32> to vector<18x24x64xbf16>
    %34 = vector.extract_strided_slice %33 {offsets = [0, 0, 0], sizes = [18, 16, 64], strides = [1, 1, 1]} : vector<18x24x64xbf16> to vector<18x16x64xbf16>
    %35 = vector.shape_cast %34 : vector<18x16x64xbf16> to vector<288x64xbf16>
    %36 = vector.extract_strided_slice %33 {offsets = [0, 1, 0], sizes = [18, 16, 64], strides = [1, 1, 1]} : vector<18x24x64xbf16> to vector<18x16x64xbf16>
    %37 = vector.shape_cast %36 : vector<18x16x64xbf16> to vector<288x64xbf16>
    %38 = vector.extract_strided_slice %33 {offsets = [0, 2, 0], sizes = [18, 16, 64], strides = [1, 1, 1]} : vector<18x24x64xbf16> to vector<18x16x64xbf16>
    %39 = vector.shape_cast %38 : vector<18x16x64xbf16> to vector<288x64xbf16>
    %cst_11 = arith.constant 0.000000e+00 : f32
    %40 = vector.broadcast %cst_11 : f32 to vector<256x64xf32>
    %41 = vector.extract_strided_slice %35 {offsets = [0, 0], sizes = [256, 64], strides = [1, 1]} : vector<288x64xbf16> to vector<256x64xbf16>
    %c0_12 = arith.constant 0 : index
    %c0_13 = arith.constant 0 : index
    %c0_14 = arith.constant 0 : index
    %c0_15 = arith.constant 0 : index
    %42 = vector.load %arg5[%c0_12, %c0_13, %c0_14, %c0_15] : memref<1x9x64x64xbf16, #tpu.memory_space<vmem>>, vector<1x1x64x64xbf16>
    %43 = vector.shape_cast %42 : vector<1x1x64x64xbf16> to vector<64x64xbf16>
    %cst_16 = arith.constant dense<0.000000e+00> : vector<256x64xf32>
    %44 = tpu.matmul %41, %43, %cst_16 {dimension_numbers = #tpu.dot_dimension_numbers<[1], [0], [0], [1], [0, 0, 1, 1], [], []>} : vector<256x64xbf16>, vector<64x64xbf16>, vector<256x64xf32> -> vector<256x64xf32>
    %45 = arith.addf %40, %44 : vector<256x64xf32>
    %46 = vector.extract_strided_slice %37 {offsets = [0, 0], sizes = [256, 64], strides = [1, 1]} : vector<288x64xbf16> to vector<256x64xbf16>
    %c0_17 = arith.constant 0 : index
    %c1 = arith.constant 1 : index
    %c0_18 = arith.constant 0 : index
    %c0_19 = arith.constant 0 : index
    %47 = vector.load %arg5[%c0_17, %c1, %c0_18, %c0_19] : memref<1x9x64x64xbf16, #tpu.memory_space<vmem>>, vector<1x1x64x64xbf16>
    %48 = vector.shape_cast %47 : vector<1x1x64x64xbf16> to vector<64x64xbf16>
    %cst_20 = arith.constant dense<0.000000e+00> : vector<256x64xf32>
    %49 = tpu.matmul %46, %48, %cst_20 {dimension_numbers = #tpu.dot_dimension_numbers<[1], [0], [0], [1], [0, 0, 1, 1], [], []>} : vector<256x64xbf16>, vector<64x64xbf16>, vector<256x64xf32> -> vector<256x64xf32>
    %50 = arith.addf %45, %49 : vector<256x64xf32>
    %51 = vector.extract_strided_slice %39 {offsets = [0, 0], sizes = [256, 64], strides = [1, 1]} : vector<288x64xbf16> to vector<256x64xbf16>
    %c0_21 = arith.constant 0 : index
    %c2 = arith.constant 2 : index
    %c0_22 = arith.constant 0 : index
    %c0_23 = arith.constant 0 : index
    %52 = vector.load %arg5[%c0_21, %c2, %c0_22, %c0_23] : memref<1x9x64x64xbf16, #tpu.memory_space<vmem>>, vector<1x1x64x64xbf16>
    %53 = vector.shape_cast %52 : vector<1x1x64x64xbf16> to vector<64x64xbf16>
    %cst_24 = arith.constant dense<0.000000e+00> : vector<256x64xf32>
    %54 = tpu.matmul %51, %53, %cst_24 {dimension_numbers = #tpu.dot_dimension_numbers<[1], [0], [0], [1], [0, 0, 1, 1], [], []>} : vector<256x64xbf16>, vector<64x64xbf16>, vector<256x64xf32> -> vector<256x64xf32>
    %55 = arith.addf %50, %54 : vector<256x64xf32>
    %56 = vector.extract_strided_slice %35 {offsets = [16, 0], sizes = [256, 64], strides = [1, 1]} : vector<288x64xbf16> to vector<256x64xbf16>
    %c0_25 = arith.constant 0 : index
    %c3 = arith.constant 3 : index
    %c0_26 = arith.constant 0 : index
    %c0_27 = arith.constant 0 : index
    %57 = vector.load %arg5[%c0_25, %c3, %c0_26, %c0_27] : memref<1x9x64x64xbf16, #tpu.memory_space<vmem>>, vector<1x1x64x64xbf16>
    %58 = vector.shape_cast %57 : vector<1x1x64x64xbf16> to vector<64x64xbf16>
    %cst_28 = arith.constant dense<0.000000e+00> : vector<256x64xf32>
    %59 = tpu.matmul %56, %58, %cst_28 {dimension_numbers = #tpu.dot_dimension_numbers<[1], [0], [0], [1], [0, 0, 1, 1], [], []>} : vector<256x64xbf16>, vector<64x64xbf16>, vector<256x64xf32> -> vector<256x64xf32>
    %60 = arith.addf %55, %59 : vector<256x64xf32>
    %61 = vector.extract_strided_slice %37 {offsets = [16, 0], sizes = [256, 64], strides = [1, 1]} : vector<288x64xbf16> to vector<256x64xbf16>
    %c0_29 = arith.constant 0 : index
    %c4 = arith.constant 4 : index
    %c0_30 = arith.constant 0 : index
    %c0_31 = arith.constant 0 : index
    %62 = vector.load %arg5[%c0_29, %c4, %c0_30, %c0_31] : memref<1x9x64x64xbf16, #tpu.memory_space<vmem>>, vector<1x1x64x64xbf16>
    %63 = vector.shape_cast %62 : vector<1x1x64x64xbf16> to vector<64x64xbf16>
    %cst_32 = arith.constant dense<0.000000e+00> : vector<256x64xf32>
    %64 = tpu.matmul %61, %63, %cst_32 {dimension_numbers = #tpu.dot_dimension_numbers<[1], [0], [0], [1], [0, 0, 1, 1], [], []>} : vector<256x64xbf16>, vector<64x64xbf16>, vector<256x64xf32> -> vector<256x64xf32>
    %65 = arith.addf %60, %64 : vector<256x64xf32>
    %66 = vector.extract_strided_slice %39 {offsets = [16, 0], sizes = [256, 64], strides = [1, 1]} : vector<288x64xbf16> to vector<256x64xbf16>
    %c0_33 = arith.constant 0 : index
    %c5 = arith.constant 5 : index
    %c0_34 = arith.constant 0 : index
    %c0_35 = arith.constant 0 : index
    %67 = vector.load %arg5[%c0_33, %c5, %c0_34, %c0_35] : memref<1x9x64x64xbf16, #tpu.memory_space<vmem>>, vector<1x1x64x64xbf16>
    %68 = vector.shape_cast %67 : vector<1x1x64x64xbf16> to vector<64x64xbf16>
    %cst_36 = arith.constant dense<0.000000e+00> : vector<256x64xf32>
    %69 = tpu.matmul %66, %68, %cst_36 {dimension_numbers = #tpu.dot_dimension_numbers<[1], [0], [0], [1], [0, 0, 1, 1], [], []>} : vector<256x64xbf16>, vector<64x64xbf16>, vector<256x64xf32> -> vector<256x64xf32>
    %70 = arith.addf %65, %69 : vector<256x64xf32>
    %71 = vector.extract_strided_slice %35 {offsets = [32, 0], sizes = [256, 64], strides = [1, 1]} : vector<288x64xbf16> to vector<256x64xbf16>
    %c0_37 = arith.constant 0 : index
    %c6 = arith.constant 6 : index
    %c0_38 = arith.constant 0 : index
    %c0_39 = arith.constant 0 : index
    %72 = vector.load %arg5[%c0_37, %c6, %c0_38, %c0_39] : memref<1x9x64x64xbf16, #tpu.memory_space<vmem>>, vector<1x1x64x64xbf16>
    %73 = vector.shape_cast %72 : vector<1x1x64x64xbf16> to vector<64x64xbf16>
    %cst_40 = arith.constant dense<0.000000e+00> : vector<256x64xf32>
    %74 = tpu.matmul %71, %73, %cst_40 {dimension_numbers = #tpu.dot_dimension_numbers<[1], [0], [0], [1], [0, 0, 1, 1], [], []>} : vector<256x64xbf16>, vector<64x64xbf16>, vector<256x64xf32> -> vector<256x64xf32>
    %75 = arith.addf %70, %74 : vector<256x64xf32>
    %76 = vector.extract_strided_slice %37 {offsets = [32, 0], sizes = [256, 64], strides = [1, 1]} : vector<288x64xbf16> to vector<256x64xbf16>
    %c0_41 = arith.constant 0 : index
    %c7 = arith.constant 7 : index
    %c0_42 = arith.constant 0 : index
    %c0_43 = arith.constant 0 : index
    %77 = vector.load %arg5[%c0_41, %c7, %c0_42, %c0_43] : memref<1x9x64x64xbf16, #tpu.memory_space<vmem>>, vector<1x1x64x64xbf16>
    %78 = vector.shape_cast %77 : vector<1x1x64x64xbf16> to vector<64x64xbf16>
    %cst_44 = arith.constant dense<0.000000e+00> : vector<256x64xf32>
    %79 = tpu.matmul %76, %78, %cst_44 {dimension_numbers = #tpu.dot_dimension_numbers<[1], [0], [0], [1], [0, 0, 1, 1], [], []>} : vector<256x64xbf16>, vector<64x64xbf16>, vector<256x64xf32> -> vector<256x64xf32>
    %80 = arith.addf %75, %79 : vector<256x64xf32>
    %81 = vector.extract_strided_slice %39 {offsets = [32, 0], sizes = [256, 64], strides = [1, 1]} : vector<288x64xbf16> to vector<256x64xbf16>
    %c0_45 = arith.constant 0 : index
    %c8 = arith.constant 8 : index
    %c0_46 = arith.constant 0 : index
    %c0_47 = arith.constant 0 : index
    %82 = vector.load %arg5[%c0_45, %c8, %c0_46, %c0_47] : memref<1x9x64x64xbf16, #tpu.memory_space<vmem>>, vector<1x1x64x64xbf16>
    %83 = vector.shape_cast %82 : vector<1x1x64x64xbf16> to vector<64x64xbf16>
    %cst_48 = arith.constant dense<0.000000e+00> : vector<256x64xf32>
    %84 = tpu.matmul %81, %83, %cst_48 {dimension_numbers = #tpu.dot_dimension_numbers<[1], [0], [0], [1], [0, 0, 1, 1], [], []>} : vector<256x64xbf16>, vector<64x64xbf16>, vector<256x64xf32> -> vector<256x64xf32>
    %85 = arith.addf %80, %84 : vector<256x64xf32>
    %c0_49 = arith.constant 0 : index
    %c0_50 = arith.constant 0 : index
    %86 = vector.load %arg6[%c0_49, %c0_50] : memref<1x64xf32, #tpu.memory_space<vmem>>, vector<1x64xf32>
    %87 = vector.broadcast %86 : vector<1x64xf32> to vector<256x64xf32>
    %88 = arith.addf %85, %87 : vector<256x64xf32>
    %cst_51 = arith.constant 0.000000e+00 : f32
    %89 = vector.broadcast %cst_51 : f32 to vector<256x64xf32>
    %90 = arith.maximumf %88, %89 : vector<256x64xf32>
    %91 = arith.truncf %90 : vector<256x64xf32> to vector<256x64xbf16>
    %c0_52 = arith.constant 0 : index
    %c0_53 = arith.constant 0 : index
    %92 = vector.load %arg7[%c0_52, %c0_53] : memref<64x128xbf16, #tpu.memory_space<vmem>>, vector<64x128xbf16>
    %cst_54 = arith.constant dense<0.000000e+00> : vector<256x128xf32>
    %93 = tpu.matmul %91, %92, %cst_54 {dimension_numbers = #tpu.dot_dimension_numbers<[1], [0], [0], [1], [0, 0, 1, 1], [], []>} : vector<256x64xbf16>, vector<64x128xbf16>, vector<256x128xf32> -> vector<256x128xf32>
    %c0_55 = arith.constant 0 : index
    %c0_56 = arith.constant 0 : index
    %94 = vector.load %arg8[%c0_55, %c0_56] : memref<1x128xf32, #tpu.memory_space<vmem>>, vector<1x128xf32>
    %95 = vector.broadcast %94 : vector<1x128xf32> to vector<256x128xf32>
    %96 = arith.addf %93, %95 : vector<256x128xf32>
    %cst_57 = arith.constant 0.000000e+00 : f32
    %97 = vector.broadcast %cst_57 : f32 to vector<256x128xf32>
    %98 = arith.maximumf %96, %97 : vector<256x128xf32>
    %99 = arith.truncf %98 : vector<256x128xf32> to vector<256x128xbf16>
    %100 = vector.shape_cast %99 : vector<256x128xbf16> to vector<1x256x128xbf16>
    %c0_58 = arith.constant 0 : index
    %c0_59 = arith.constant 0 : index
    %c0_60 = arith.constant 0 : index
    %101 = vector.load %arg9[%c0_58, %c0_59, %c0_60] : memref<1x256x128xbf16, #tpu.memory_space<vmem>>, vector<1x256x128xbf16>
    tpu.vector_store %arg9[%c0_58, %c0_59, %c0_60], %100 {strides = array<i32>} : memref<1x256x128xbf16, #tpu.memory_space<vmem>>, vector<1x256x128xbf16>,
    %cst_61 = arith.constant dense<0.000000e+00> : vector<128xf32>
    %102 = vector.multi_reduction <add>, %98, %cst_61 [0] : vector<256x128xf32> to vector<128xf32>
    %103 = vector.shape_cast %102 : vector<128xf32> to vector<1x1x1x128xf32>
    %c0_62 = arith.constant 0 : index
    %c0_63 = arith.constant 0 : index
    %c0_64 = arith.constant 0 : index
    %c0_65 = arith.constant 0 : index
    %104 = vector.load %arg10[%c0_62, %c0_63, %c0_64, %c0_65] : memref<1x1x1x128xf32, #tpu.memory_space<vmem>>, vector<1x1x1x128xf32>
    tpu.vector_store %arg10[%c0_62, %c0_63, %c0_64, %c0_65], %103 {strides = array<i32>} : memref<1x1x1x128xf32, #tpu.memory_space<vmem>>, vector<1x1x1x128xf32>,
    return
  }
  func.func @transform_0(%arg0: i32, %arg1: i32) -> (i32, i32, i32, i32) {
    %c0_i32 = arith.constant 0 : i32
    %c0_i32_0 = arith.constant 0 : i32
    %c0_i32_1 = arith.constant 0 : i32
    %c0_i32_2 = arith.constant 0 : i32
    return %arg0, %c0_i32, %c0_i32_0, %c0_i32_1 : i32, i32, i32, i32
  }
  func.func @transform_1(%arg0: i32, %arg1: i32) -> (i32, i32) {
    %c0_i32 = arith.constant 0 : i32
    %c0_i32_0 = arith.constant 0 : i32
    %c0_i32_1 = arith.constant 0 : i32
    return %c0_i32, %c0_i32_0 : i32, i32
  }
  func.func @transform_2(%arg0: i32, %arg1: i32) -> (i32, i32) {
    %c0_i32 = arith.constant 0 : i32
    %c0_i32_0 = arith.constant 0 : i32
    %c0_i32_1 = arith.constant 0 : i32
    return %c0_i32, %c0_i32_0 : i32, i32
  }
  func.func @transform_3(%arg0: i32, %arg1: i32) -> (i32, i32, i32, i32) {
    %c0_i32 = arith.constant 0 : i32
    %c0_i32_0 = arith.constant 0 : i32
    %c0_i32_1 = arith.constant 0 : i32
    %c0_i32_2 = arith.constant 0 : i32
    %c0_i32_3 = arith.constant 0 : i32
    return %c0_i32, %c0_i32_0, %c0_i32_1, %c0_i32_2 : i32, i32, i32, i32
  }
  func.func @transform_4(%arg0: i32, %arg1: i32) -> (i32, i32) {
    %c0_i32 = arith.constant 0 : i32
    %c0_i32_0 = arith.constant 0 : i32
    %c0_i32_1 = arith.constant 0 : i32
    return %c0_i32, %c0_i32_0 : i32, i32
  }
  func.func @transform_5(%arg0: i32, %arg1: i32) -> (i32, i32) {
    %c0_i32 = arith.constant 0 : i32
    %c0_i32_0 = arith.constant 0 : i32
    %c0_i32_1 = arith.constant 0 : i32
    return %c0_i32, %c0_i32_0 : i32, i32
  }
  func.func @transform_6(%arg0: i32, %arg1: i32) -> (i32, i32) {
    %c0_i32 = arith.constant 0 : i32
    %c0_i32_0 = arith.constant 0 : i32
    %c0_i32_1 = arith.constant 0 : i32
    return %c0_i32, %c0_i32_0 : i32, i32
  }
  func.func @transform_7(%arg0: i32, %arg1: i32) -> (i32, i32, i32) {
    %c0_i32 = arith.constant 0 : i32
    %c0_i32_0 = arith.constant 0 : i32
    return %arg0, %arg1, %c0_i32 : i32, i32, i32
  }
  func.func @transform_8(%arg0: i32, %arg1: i32) -> (i32, i32, i32, i32) {
    %c0_i32 = arith.constant 0 : i32
    %c0_i32_0 = arith.constant 0 : i32
    %c0_i32_1 = arith.constant 0 : i32
    return %arg0, %arg1, %c0_i32, %c0_i32_0 : i32, i32, i32, i32
  }
}

module attributes {stable_mosaic.version = 11 : i64} {
  func.func @se_apply_kernel(%arg0: i32, %arg1: i32, %arg2: memref<1x1x128xf32, #tpu.memory_space<vmem>>, %arg3: memref<128x8xf32, #tpu.memory_space<vmem>>, %arg4: memref<1x8xf32, #tpu.memory_space<vmem>>, %arg5: memref<8x128xf32, #tpu.memory_space<vmem>>, %arg6: memref<1x128xf32, #tpu.memory_space<vmem>>, %arg7: memref<1x256x128xbf16, #tpu.memory_space<vmem>>, %arg8: memref<1x256x128xbf16, #tpu.memory_space<vmem>>, %arg9: memref<1x256x128xf32, #tpu.memory_space<vmem>>) attributes {dimension_semantics = [#tpu.dimension_semantics<parallel>, #tpu.dimension_semantics<parallel>], iteration_bounds = array<i64: 2, 1>, scalar_prefetch = 0 : i64, scratch_operands = 0 : i64, tpu.core_type = #tpu.core_type<tc>, window_params = [{transform_indices = @transform_0, window_bounds = array<i64: 1, 1, 128>}, {pipeline_mode = #tpu.pipeline_mode<synchronous>, transform_indices = @transform_1, window_bounds = array<i64: 128, 8>}, {pipeline_mode = #tpu.pipeline_mode<synchronous>, transform_indices = @transform_2, window_bounds = array<i64: 1, 8>}, {pipeline_mode = #tpu.pipeline_mode<synchronous>, transform_indices = @transform_3, window_bounds = array<i64: 8, 128>}, {pipeline_mode = #tpu.pipeline_mode<synchronous>, transform_indices = @transform_4, window_bounds = array<i64: 1, 128>}, {transform_indices = @transform_5, window_bounds = array<i64: 1, 256, 128>}, {transform_indices = @transform_6, window_bounds = array<i64: 1, 256, 128>}, {transform_indices = @transform_7, window_bounds = array<i64: 1, 256, 128>}]} {
    %c0 = arith.constant 0 : index
    %c0_0 = arith.constant 0 : index
    %c0_1 = arith.constant 0 : index
    %0 = vector.load %arg2[%c0, %c0_0, %c0_1] : memref<1x1x128xf32, #tpu.memory_space<vmem>>, vector<1x1x128xf32>
    %1 = vector.shape_cast %0 : vector<1x1x128xf32> to vector<1x128xf32>
    %cst = arith.constant dense<0.000000e+00> : vector<128xf32>
    %2 = vector.multi_reduction <add>, %1, %cst [0] : vector<1x128xf32> to vector<128xf32>
    %3 = vector.shape_cast %2 : vector<128xf32> to vector<1x128xf32>
    %cst_2 = arith.constant 3.906250e-03 : f32
    %4 = vector.broadcast %cst_2 : f32 to vector<1x128xf32>
    %5 = arith.mulf %3, %4 : vector<1x128xf32>
    %c0_3 = arith.constant 0 : index
    %c0_4 = arith.constant 0 : index
    %6 = vector.load %arg3[%c0_3, %c0_4] : memref<128x8xf32, #tpu.memory_space<vmem>>, vector<128x8xf32>
    %cst_5 = arith.constant dense<0.000000e+00> : vector<1x8xf32>
    %7 = tpu.matmul %5, %6, %cst_5 {dimension_numbers = #tpu.dot_dimension_numbers<[1], [0], [0], [1], [0, 0, 1, 1], [], []>} : vector<1x128xf32>, vector<128x8xf32>, vector<1x8xf32> -> vector<1x8xf32>
    %c0_6 = arith.constant 0 : index
    %c0_7 = arith.constant 0 : index
    %8 = vector.load %arg4[%c0_6, %c0_7] : memref<1x8xf32, #tpu.memory_space<vmem>>, vector<1x8xf32>
    %9 = arith.addf %7, %8 : vector<1x8xf32>
    %cst_8 = arith.constant 0.000000e+00 : f32
    %10 = vector.broadcast %cst_8 : f32 to vector<1x8xf32>
    %11 = arith.maximumf %9, %10 : vector<1x8xf32>
    %c0_9 = arith.constant 0 : index
    %c0_10 = arith.constant 0 : index
    %12 = vector.load %arg5[%c0_9, %c0_10] : memref<8x128xf32, #tpu.memory_space<vmem>>, vector<8x128xf32>
    %cst_11 = arith.constant dense<0.000000e+00> : vector<1x128xf32>
    %13 = tpu.matmul %11, %12, %cst_11 {dimension_numbers = #tpu.dot_dimension_numbers<[1], [0], [0], [1], [0, 0, 1, 1], [], []>} : vector<1x8xf32>, vector<8x128xf32>, vector<1x128xf32> -> vector<1x128xf32>
    %c0_12 = arith.constant 0 : index
    %c0_13 = arith.constant 0 : index
    %14 = vector.load %arg6[%c0_12, %c0_13] : memref<1x128xf32, #tpu.memory_space<vmem>>, vector<1x128xf32>
    %15 = arith.addf %13, %14 : vector<1x128xf32>
    %16 = arith.negf %15 : vector<1x128xf32>
    %17 = math.exp %16 : vector<1x128xf32>
    %cst_14 = arith.constant 1.000000e+00 : f32
    %18 = vector.broadcast %cst_14 : f32 to vector<1x128xf32>
    %19 = arith.addf %18, %17 : vector<1x128xf32>
    %20 = arith.divf %18, %19 : vector<1x128xf32>
    %c0_15 = arith.constant 0 : index
    %c0_16 = arith.constant 0 : index
    %c0_17 = arith.constant 0 : index
    %21 = vector.load %arg7[%c0_15, %c0_16, %c0_17] : memref<1x256x128xbf16, #tpu.memory_space<vmem>>, vector<1x256x128xbf16>
    %22 = vector.shape_cast %21 : vector<1x256x128xbf16> to vector<256x128xbf16>
    %23 = arith.extf %22 : vector<256x128xbf16> to vector<256x128xf32>
    %c0_18 = arith.constant 0 : index
    %c0_19 = arith.constant 0 : index
    %c0_20 = arith.constant 0 : index
    %24 = vector.load %arg8[%c0_18, %c0_19, %c0_20] : memref<1x256x128xbf16, #tpu.memory_space<vmem>>, vector<1x256x128xbf16>
    %25 = vector.shape_cast %24 : vector<1x256x128xbf16> to vector<256x128xbf16>
    %26 = arith.extf %25 : vector<256x128xbf16> to vector<256x128xf32>
    %27 = vector.broadcast %20 : vector<1x128xf32> to vector<256x128xf32>
    %28 = arith.mulf %23, %27 : vector<256x128xf32>
    %29 = arith.addf %28, %26 : vector<256x128xf32>
    %cst_21 = arith.constant 0.000000e+00 : f32
    %30 = vector.broadcast %cst_21 : f32 to vector<256x128xf32>
    %31 = arith.maximumf %29, %30 : vector<256x128xf32>
    %c0_22 = arith.constant 0 : index
    %c0_23 = arith.constant 0 : index
    %c0_24 = arith.constant 0 : index
    %32 = vector.load %arg9[%c0_22, %c0_23, %c0_24] : memref<1x256x128xf32, #tpu.memory_space<vmem>>, vector<1x256x128xf32>
    %33 = vector.shape_cast %32 : vector<1x256x128xf32> to vector<256x128xf32>
    %34 = vector.shape_cast %31 : vector<256x128xf32> to vector<1x256x128xf32>
    tpu.vector_store %arg9[%c0_22, %c0_23, %c0_24], %34 {strides = array<i32>} : memref<1x256x128xf32, #tpu.memory_space<vmem>>, vector<1x256x128xf32>,
    return
  }
  func.func @transform_0(%arg0: i32, %arg1: i32) -> (i32, i32, i32) {
    %c0_i32 = arith.constant 0 : i32
    %c0_i32_0 = arith.constant 0 : i32
    %c0_i32_1 = arith.constant 0 : i32
    return %arg0, %c0_i32, %c0_i32_0 : i32, i32, i32
  }
  func.func @transform_1(%arg0: i32, %arg1: i32) -> (i32, i32) {
    %c0_i32 = arith.constant 0 : i32
    %c0_i32_0 = arith.constant 0 : i32
    %c0_i32_1 = arith.constant 0 : i32
    return %c0_i32, %c0_i32_0 : i32, i32
  }
  func.func @transform_2(%arg0: i32, %arg1: i32) -> (i32, i32) {
    %c0_i32 = arith.constant 0 : i32
    %c0_i32_0 = arith.constant 0 : i32
    %c0_i32_1 = arith.constant 0 : i32
    return %c0_i32, %c0_i32_0 : i32, i32
  }
  func.func @transform_3(%arg0: i32, %arg1: i32) -> (i32, i32) {
    %c0_i32 = arith.constant 0 : i32
    %c0_i32_0 = arith.constant 0 : i32
    %c0_i32_1 = arith.constant 0 : i32
    return %c0_i32, %c0_i32_0 : i32, i32
  }
  func.func @transform_4(%arg0: i32, %arg1: i32) -> (i32, i32) {
    %c0_i32 = arith.constant 0 : i32
    %c0_i32_0 = arith.constant 0 : i32
    %c0_i32_1 = arith.constant 0 : i32
    return %c0_i32, %c0_i32_0 : i32, i32
  }
  func.func @transform_5(%arg0: i32, %arg1: i32) -> (i32, i32, i32) {
    %c0_i32 = arith.constant 0 : i32
    %c0_i32_0 = arith.constant 0 : i32
    return %arg0, %arg1, %c0_i32 : i32, i32, i32
  }
  func.func @transform_6(%arg0: i32, %arg1: i32) -> (i32, i32, i32) {
    %c0_i32 = arith.constant 0 : i32
    %c0_i32_0 = arith.constant 0 : i32
    return %arg0, %arg1, %c0_i32 : i32, i32, i32
  }
  func.func @transform_7(%arg0: i32, %arg1: i32) -> (i32, i32, i32) {
    %c0_i32 = arith.constant 0 : i32
    %c0_i32_0 = arith.constant 0 : i32
    return %arg0, %arg1, %c0_i32 : i32, i32, i32
  }
}

</mosaic_0001>

<bundles_post_ra>
// kernel: resnext_bottleneck_forward.3
= control target key start
LH: loop header
LB: loop body
LE: loop exit
PB: predicated region body
PF: predicated region fallthrough
CT: control target
= control target key end

     0   :  { %12 = vsyncpa [#allocation3], 0  ;;  %s1925_s0 = inlined_call_operand.vmem [shape: f32[2,1,128], index: 0, kind: input, shape index: {}]   ;;  %s1926_s1 = inlined_call_operand.vmem [shape: f32[128,8], index: 1, kind: input, shape index: {}]   ;;  %s1927_s2 = inlined_call_operand.vmem [shape: f32[1,8], index: 2, kind: input, shape index: {}]   ;;  %s1928_s3 = inlined_call_operand.vmem [shape: f32[8,128], index: 3, kind: input, shape index: {}]   ;;  %s1929_s4 = inlined_call_operand.vmem [shape: f32[1,128], index: 4, kind: input, shape index: {}]   ;;  %s1930_s5 = inlined_call_operand.vmem [shape: bf16[2,256,128], index: 5, kind: input, shape index: {}]   ;;  %s1931_s6 = inlined_call_operand.vmem [shape: bf16[2,256,128], index: 6, kind: input, shape index: {}]   ;;  %s1932_s7 = inlined_call_operand.hbm [shape: f32[2,256,128], index: 7, kind: output, shape index: {}]  }
   0x1   :  { %14 = vsyncpa [#allocation3 + $0x1], 0  ;;  %s1364_s24 = smov 0   ;;  %s1366_s25 = smov 0  }
   0x2   :  { %s1368_s26 = smov 0   ;;  %s1370_s27 = smov 0  }
   0x3   :  { %s1372_s28 = smov 0   ;;  %s1374_s29 = smov 0  }
   0x4 LB: > { %s913_s30 = sadd.s32 4294967295, %s1316_s29   ;;  %s914_s8 = sadd.s32 4294967294, %s1316_s29   ;;  %s1316_s29 = sphi %s1374_s29, %s20_s29   ;;  %s1312_s28 = sphi %s1372_s28, %s1983_s28   ;;  %s1308_s27 = sphi %s1370_s27, %s1982_s27   ;;  %s1304_s26 = sphi %s1368_s26, %s1981_s26   ;;  %s1300_s25 = sphi %s1366_s25, %s1980_s25   ;;  %s1296_s24 = sphi %s1364_s24, %s1979_s24  }
   0x5   : > { %s32_s9 = sadd.s32 1, %s1312_s28  ;;  %s207_s10 = sadd.s32 1, %s1304_s26 }
   0x6   : > { %p34_p0 = scmp.ge.s32.totalorder %s32_s9, 2  ;;  %p217_p1 = scmp.ne.s32.totalorder %s1304_s26, %s1300_s25 }
   0x7   : > { %p218_p2 = scmp.eq.s32.totalorder %s913_s30, 1  ;;  %p223_p3 = scmp.ne.s32.totalorder %s1300_s25, %s1296_s24 }
   0x8   : > { %s1985_s9 = smov (%p34_p0, %s32_s9), 0  ;;  %p224_p5 = scmp.eq.s32.totalorder %s914_s8, 1 }
   0x9   : > { %p1404_p4 = por %p218_p2, %p217_p1  ;;  %s202_s12 = ssub.s32 %s1312_s28, %s1985_s9 }
   0xa   : > { %p917_p6 = scmp.ge.s32.totalorder %s1316_s29, 1  ;;  %p205_p7 = scmp.eq.s32.totalorder %s202_s12, 0 }
   0xb   : > { %p1411_p8 = por %p224_p5, %p223_p3  ;;  %p286_p9 = scmp.lt.s32.totalorder %s1316_s29, 3 }
   0xc   : > { %s1417_s14 = scalar_select %p205_p7, %s1304_s26, %s207_s10  }
   0xd   : > { %p287_p10 = pnand %p917_p6, %p286_p9 }
   0xe   : > { %v361_v0 = vld [vmem:[%s1926_s1] sm:$0xff] (!%p287_p10)  ;;  %v362_v1 = vld [vmem:[%s1926_s1 + $0x8] sm:$0xff] (!%p287_p10)  ;;  %v363_v2 = vld [vmem:[%s1926_s1 + $0x10] sm:$0xff] (!%p287_p10)  ;;  %v1318_v3 = vmov (!%p287_p10), 0.0|0.0   ;;  %vm1319_vm0 = vmmov (!%p287_p10), 0   ;;  %v1320_v6 = vmov (!%p287_p10), 0.0  }
   0xf   : > { %290 = sbr.rel (%p287_p10) target bundleno = 564 (0x234), region = 48  ;;  %1150 = vmatprep.subr.bf16.mxu0 (!%p287_p10), %v1318_v3  ;;  %v1151_v4 = vpack.c.bf16 (!%p287_p10), %v362_v1, %v361_v0  ;;  %v364_v5 = vld [vmem:[%s1926_s1 + $0x18] sm:$0xff] (!%p287_p10)  ;;  %1142 = vmatprep.mubr.msk.f32.mxu0 (!%p287_p10), %vm1319_vm0, %v1320_v6  ;;  %v365_v8 = vld [vmem:[%s1926_s1 + $0x20] sm:$0xff] (!%p287_p10)  ;;  %v366_v9 = vld [vmem:[%s1926_s1 + $0x28] sm:$0xff] (!%p287_p10)  ;;  %p334_p11 = scmp.lt.s32.totalorder (!%p287_p10), %s1308_s27, 1  ;;  %vm451_vm1 = vcmask (!%p287_p10), 64512  }
  0x10   : > { %1145 = vmatprep.subr.mxu1 (!%p287_p10), %v1320_v6  ;;  %1147 = vmatprep.mubr.msk.f32.mxu1 (!%p287_p10), %vm1319_vm0, %v1320_v6  ;;  %v1154_v7 = vpack.c.bf16 (!%p287_p10), %v364_v5, %v363_v2  ;;  %v1157_v10 = vpack.c.bf16 (!%p287_p10), %v366_v9, %v365_v8  ;;  %v367_v11 = vld [vmem:[%s1926_s1 + $0x30] sm:$0xff] (!%p287_p10)  ;;  %v368_v12 = vld [vmem:[%s1926_s1 + $0x38] sm:$0xff] (!%p287_p10)  ;;  %v369_v14 = vld [vmem:[%s1926_s1 + $0x40] sm:$0xff] (!%p287_p10)  ;;  %s331_s8 = sand.u32 (!%p287_p10), 1, %s1300_s25   ;;  %s932_s15 = sshll.u32 (!%p287_p10), %s1308_s27, 12 }
  0x11   : > { %1152 = vmatpush3.bf16.msra.mxu0 (!%p287_p10), %v1151_v4  ;;  %v1160_v13 = vpack.c.bf16 (!%p287_p10), %v368_v12, %v367_v11  ;;  %v370_v15 = vld [vmem:[%s1926_s1 + $0x48] sm:$0xff] (!%p287_p10)  ;;  %v371_v17 = vld [vmem:[%s1926_s1 + $0x50] sm:$0xff] (!%p287_p10)  ;;  %v372_v18 = vld [vmem:[%s1926_s1 + $0x58] sm:$0xff] (!%p287_p10)  ;;  %s918_s10 = sshll.u32 (!%p287_p10), %s331_s8, 8  ;;  %s1879_s20 = scalar_lea.sflag (!%p287_p10), [#allocation3], %s331_s8 }
  0x12   : > { %1153 = vmatprep.subr.bf16.mxu0 (!%p287_p10), %v1318_v3  ;;  %v1163_v16 = vpack.c.bf16 (!%p287_p10), %v370_v15, %v369_v14  ;;  %v1166_v19 = vpack.c.bf16 (!%p287_p10), %v372_v18, %v371_v17  ;;  %v373_v20 = vld [vmem:[%s1926_s1 + $0x60] sm:$0xff] (!%p287_p10)  ;;  %v374_v21 = vld [vmem:[%s1926_s1 + $0x68] sm:$0xff] (!%p287_p10)  ;;  %v375_v23 = vld [vmem:[%s1926_s1 + $0x70] sm:$0xff] (!%p287_p10)  ;;  %s1818_s12 = scalar_lea.vmem (!%p287_p10), [#allocation2], %s918_s10 }
  0x13   : > { %v1169_v22 = vpack.c.bf16 (!%p287_p10), %v374_v21, %v373_v20  ;;  %v376_v24 = vld [vmem:[%s1926_s1 + $0x78] sm:$0xff] (!%p287_p10)  ;;  %v449_v28 = vld [vmem:[%s1928_s3] sm:$0xff] (!%p287_p10)  ;;  %s807_s16 = sshll.u32 (!%p287_p10), %s1818_s12, 4  ;;  %s1859_s16 = int_to_ptr.vmem [resolvable:$true] %s807_s16 }
  0x14   : > { %v1172_v25 = vpack.c.bf16 (!%p287_p10), %v376_v24, %v375_v23  ;;  %1146 = vmatpush3.msra.mxu1 (!%p287_p10), %v449_v28  ;;  %v377_v29 = vld [vmem:[%s1927_s2] sm:$0x1] (!%p287_p10)  ;;  %s1238_s21 = scalar_lea.vmem (!%p287_p10), %s1859_s16, 4096 }
  0x15   : > { %1155 = vmatpush3.bf16.msra.mxu0 (!%p287_p10), %v1154_v7  ;;  %v450_v34 = vld [vmem:[%s1929_s4] sm:$0x1] (!%p287_p10)  ;;  %v659_v7 = vlaneseq (!%p287_p10)  ;;  %p1239_p12 = scmp.ne.s32.totalorder (!%p287_p10), %s1859_s16, %s1238_s21 }
  0x16   : > { %1156 = vmatprep.subr.bf16.mxu0 %v1318_v3  ;;  %s1463_s17 = scalar_select %p334_p11, %s1308_s27, 1 }
  0x17   : > { %p1240_p13 = pnand %p1239_p12, %p1404_p4 }
  0x18   : > { %s336_s30 = scalar_lea.vmem %s1925_s0, %s1463_s17  ;;  %s930_s19 = sshll.u32 %s1463_s17, 7 }
  0x19   : > { %1158 = vmatpush3.bf16.msra.mxu0 %v1157_v10  ;;  %v358_v26 = vld [vmem:[%s336_s30] sm:$0x1]  ;;  %s1488_s22 = scalar_lea.vmem %s1930_s5, %s930_s19  ;;  %s1533_s30 = scalar_lea.vmem %s1931_s6, %s930_s19 }
  0x1a   : > { %1159 = vmatprep.subr.bf16.mxu0 %v1318_v3  ;;  %v360_v27 = vmul.f32 0.00390625, %v358_v26  ;;  %v1491_v39 = vld [vmem:[%s1488_s22] sm:$0xff]   ;;  %v1494_v40 = vld [vmem:[%s1488_s22 + $0x8] sm:$0xff]   ;;  %v1497_v41 = vld [vmem:[%s1488_s22 + $0x10] sm:$0xff]   ;;  %s1857_s19 = scalar_lea.hbm %s1932_s7, %s932_s15  ;;  %p1241_p0 = pneg %p1240_p13 }
  0x1b   : > { %v1500_v42 = vld [vmem:[%s1488_s22 + $0x18] sm:$0xff]   ;;  %v1503_v43 = vld [vmem:[%s1488_s22 + $0x20] sm:$0xff]   ;;  %v935_v44 = vunpack.c.l.bf16 %v1491_v39  ;;  %v936_v45 = vunpack.c.h.bf16 %v1491_v39  ;;  %v1508_v46 = vld [vmem:[%s1488_s22 + $0x28] sm:$0xff]   ;;  %v939_v48 = vunpack.c.l.bf16 %v1494_v40  ;;  %v940_v49 = vunpack.c.h.bf16 %v1494_v40 }
  0x1c   : > { %v1511_v47 = vld [vmem:[%s1488_s22 + $0x30] sm:$0xff]   ;;  %v943_v50 = vunpack.c.l.bf16 %v1497_v41  ;;  %v944_v51 = vunpack.c.h.bf16 %v1497_v41  ;;  %v1518_v52 = vld [vmem:[%s1488_s22 + $0x38] sm:$0xff]   ;;  %v947_v54 = vunpack.c.l.bf16 %v1500_v42  ;;  %v948_v55 = vunpack.c.h.bf16 %v1500_v42  ;;  %v1525_v58 = vld [vmem:[%s1488_s22 + $0x40] sm:$0xff]  }
  0x1d   : > { %1161 = vmatpush3.bf16.msra.mxu0 %v1160_v13  ;;  %v951_v56 = vunpack.c.l.bf16 %v1503_v43  ;;  %v952_v57 = vunpack.c.h.bf16 %v1503_v43  ;;  %v1528_v59 = vld [vmem:[%s1488_s22 + $0x48] sm:$0xff]   ;;  %v955_v60 = vunpack.c.l.bf16 %v1508_v46  ;;  %v956_v61 = vunpack.c.h.bf16 %v1508_v46  ;;  %v1539_v63 = vld [vmem:[%s1488_s22 + $0x50] sm:$0xff]   ;;  %v1542_v0 = vld [vmem:[%s1488_s22 + $0x58] sm:$0xff]  }
  0x1e   : > { %1162 = vmatprep.subr.bf16.mxu0 %v1318_v3  ;;  %v959_v62 = vunpack.c.l.bf16 %v1511_v47  ;;  %v960_v2 = vunpack.c.h.bf16 %v1511_v47  ;;  %v964_v4 = vunpack.c.h.bf16 %v1518_v52  ;;  %v1548_v5 = vld [vmem:[%s1488_s22 + $0x60] sm:$0xff]   ;;  %v1551_v6 = vld [vmem:[%s1488_s22 + $0x68] sm:$0xff]   ;;  %v967_v8 = vunpack.c.l.bf16 %v1525_v58  ;;  %v1557_v11 = vld [vmem:[%s1488_s22 + $0x70] sm:$0xff]  }
  0x1f   : > { %v968_v9 = vunpack.c.h.bf16 %v1525_v58  ;;  %v971_v10 = vunpack.c.l.bf16 %v1528_v59  ;;  %v1567_v17 = vld [vmem:[%s1533_s30] sm:$0xff]   ;;  %v1577_v23 = vld [vmem:[%s1533_s30 + $0x10] sm:$0xff]   ;;  %v1632_v20 = vld [vmem:[%s1533_s30 + $0x68] sm:$0xff]   ;;  %v1936_v47 = vunpack.c.l.bf16 %v1539_v63  ;;  %v1940_v58 = vunpack.c.l.bf16 %v1548_v5 }
  0x20   : > { %v1586_v28 = vld [vmem:[%s1533_s30 + $0x20] sm:$0xff]   ;;  %v1639_v18 = vld [vmem:[%s1533_s30 + $0x70] sm:$0xff]  }
  0x21   : > { %1164 = vmatpush3.bf16.msra.mxu0 %v1163_v16  ;;  %v1564_v16 = vld [vmem:[%s1488_s22 + $0x78] sm:$0xff]   ;;  %s1321_s22 = smov [#allocation2]  }
  0x22   : > { %1165 = vmatprep.subr.bf16.mxu0 %v1318_v3  ;;  %s1242_s17 = sshll.u32 %s1321_s22, 4  ;;  %s1243_s17 = int_to_ptr.vmem [resolvable:$false] %s1242_s17 }
  0x23   : > { %s1244_s23 = scalar_lea.vmem %s1243_s17, 8192  ;;  %p1245_p1 = scmp.lt.s32.totalorder %s1859_s16, %s1243_s17 }
  0x24   : > { %p1246_p2 = scmp.lt.s32.totalorder %s1244_s23, %s1238_s21 }
  0x25   : > { %1167 = vmatpush3.bf16.msra.mxu0 %v1166_v19 }
  0x26   : > { %1168 = vmatprep.subr.bf16.mxu0 %v1318_v3  ;;  %p1247_p3 = por %p1246_p2, %p1245_p1 }
  0x28   : > { %p1248_p5 = pnand %p1247_p3, %p1241_p0 }
  0x29   : > { %1170 = vmatpush3.bf16.msra.mxu0 %v1169_v22  ;;  %v1574_v22 = vld [vmem:[%s1533_s30 + $0x8] sm:$0xff]  }
  0x2a   : > { %1171 = vmatprep.subr.bf16.mxu0 %v1318_v3  ;;  %v963_v3 = vunpack.c.l.bf16 %v1518_v52  ;;  %v1938_v52 = vunpack.c.l.bf16 %v1542_v0 }
  0x2d   : > { %1173 = vmatpush3.bf16.msra.mxu0 %v1172_v25  ;;  %v1625_v25 = vld [vmem:[%s1533_s30 + $0x60] sm:$0xff]  }
  0x30   : > { %1143 = vmatmul.mubr.f32.vlgmr.msra.gmra.mrb[0].mxu0 %v360_v27  ;;  %v1583_v27 = vld [vmem:[%s1533_s30 + $0x18] sm:$0xff]  }
 0x103   : > { %v444_v30 = vpop.f32.mrb[0].mxu0 }
 0x104   : > { %v445_v31 = vadd.f32 %v444_v30, %v377_v29  ;;  %v1144_v32 = vpop.f32.mrb[1].mxu0  ;;  %v660_v29 = vshrl.u32 %v659_v7, 7  ;;  %v1606_v7 = vld [vmem:[%s1533_s30 + $0x40] sm:$0xff]   ;;  %v1613_v30 = vld [vmem:[%s1533_s30 + $0x48] sm:$0xff]  }
 0x106   : > { %v448_v33 = vmax.f32 %v445_v31, 0.0  ;;  %v661_v32 = vsub.s32 0, %v660_v29  ;;  %v1642_v29 = vld [vmem:[%s1533_s30 + $0x78] sm:$0xff]  }
 0x108   : > { %1148 = vmatmul.mubr.msk.f32.vlgmr.msra.gmra.mrb[0].mxu1 %vm451_vm1, %v448_v33  ;;  %v1622_v33 = vld [vmem:[%s1533_s30 + $0x58] sm:$0xff]  }
 0x109   : > { %v1043_v24 = vunpack.c.l.bf16 %v1622_v33 }
 0x1db   : > { %v521_v35 = vpop.f32.mrb[0].mxu1 }
 0x1dc   : > { %v522_v36 = vadd.f32 %v521_v35, %v450_v34  ;;  %v1149_v37 = vpop.f32.mrb[1].mxu1  ;;  %v1593_v34 = vld [vmem:[%s1533_s30 + $0x28] sm:$0xff]   ;;  %v1596_v35 = vld [vmem:[%s1533_s30 + $0x30] sm:$0xff]  }
 0x1dd   : > { %v1616_v37 = vld [vmem:[%s1533_s30 + $0x50] sm:$0xff]  }
 0x1de   : > { %v924_v38 = vmul.f32 -1.442695, %v522_v36 }
 0x1e0   : > { %1234 = vpow2.f32 %v924_v38 }
 0x1ea   : > { %v1235_v53 = vpop.eup %1234 }
 0x1eb   : > { %v528_v1 = vadd.f32 1.0, %v1235_v53 }
 0x1ed   : > { %1236 = vrcp.f32 %v528_v1  ;;  %v1603_v1 = vld [vmem:[%s1533_s30 + $0x38] sm:$0xff]  }
 0x1f7   : > { %v1237_v31 = vpop.eup %1236 }
 0x1f8   : > { %v662_v19 = vrot.slane %v1237_v31, %v661_v32 }
 0x1fa   : > { %v663_v21 = vmul.f32 %v935_v44, %v662_v19  ;;  %v664_v15 = vmul.f32 %v936_v45, %v662_v19  ;;  %v665_v38 = vmul.f32 %v939_v48, %v662_v19  ;;  %v666_v31 = vmul.f32 %v940_v49, %v662_v19 }
 0x1fb   : > { %v667_v32 = vmul.f32 %v943_v50, %v662_v19  ;;  %v668_v12 = vmul.f32 %v944_v51, %v662_v19  ;;  %v669_v36 = vmul.f32 %v947_v54, %v662_v19  ;;  %v670_v44 = vmul.f32 %v948_v55, %v662_v19 }
 0x1fc   : > { %v671_v39 = vmul.f32 %v951_v56, %v662_v19  ;;  %v672_v45 = vmul.f32 %v952_v57, %v662_v19  ;;  %v673_v40 = vmul.f32 %v955_v60, %v662_v19  ;;  %v674_v48 = vmul.f32 %v956_v61, %v662_v19 }
 0x1fd   : > { %v675_v41 = vmul.f32 %v959_v62, %v662_v19  ;;  %v676_v49 = vmul.f32 %v960_v2, %v662_v19  ;;  %v677_v42 = vmul.f32 %v963_v3, %v662_v19  ;;  %v678_v50 = vmul.f32 %v964_v4, %v662_v19 }
 0x1fe   : > { %v679_v43 = vmul.f32 %v967_v8, %v662_v19  ;;  %v680_v51 = vmul.f32 %v968_v9, %v662_v19  ;;  %v681_v46 = vmul.f32 %v971_v10, %v662_v19  ;;  %v1935_v54 = vunpack.c.h.bf16 %v1528_v59 }
 0x1ff   : > { %v683_v56 = vmul.f32 %v1936_v47, %v662_v19  ;;  %v1937_v57 = vunpack.c.h.bf16 %v1539_v63  ;;  %v685_v61 = vmul.f32 %v1938_v52, %v662_v19  ;;  %v1939_v62 = vunpack.c.h.bf16 %v1542_v0 }
 0x200   : > { %v682_v55 = vmul.f32 %v1935_v54, %v662_v19  ;;  %v687_v3 = vmul.f32 %v1940_v58, %v662_v19  ;;  %v1941_v4 = vunpack.c.h.bf16 %v1548_v5  ;;  %v1942_v8 = vunpack.c.l.bf16 %v1551_v6 }
 0x201   : > { %v684_v60 = vmul.f32 %v1937_v57, %v662_v19  ;;  %v686_v2 = vmul.f32 %v1939_v62, %v662_v19  ;;  %v1943_v10 = vunpack.c.h.bf16 %v1551_v6  ;;  %v1944_v54 = vunpack.c.l.bf16 %v1557_v11 }
 0x202   : > { %v688_v59 = vmul.f32 %v1941_v4, %v662_v19  ;;  %v689_v9 = vmul.f32 %v1942_v8, %v662_v19  ;;  %v1945_v57 = vunpack.c.h.bf16 %v1557_v11  ;;  %v1946_v52 = vunpack.c.l.bf16 %v1564_v16 }
 0x203   : > { %v690_v63 = vmul.f32 %v1943_v10, %v662_v19  ;;  %v691_v47 = vmul.f32 %v1944_v54, %v662_v19  ;;  %v1947_v58 = vunpack.c.h.bf16 %v1564_v16  ;;  %v1948_v4 = vunpack.c.l.bf16 %v1567_v17 }
 0x204   : > { %v692_v0 = vmul.f32 %v1945_v57, %v662_v19  ;;  %v693_v62 = vmul.f32 %v1946_v52, %v662_v19  ;;  %v1949_v8 = vunpack.c.h.bf16 %v1567_v17  ;;  %v1950_v6 = vunpack.c.l.bf16 %v1574_v22 }
 0x205   : > { %v694_v5 = vmul.f32 %v1947_v58, %v662_v19  ;;  %v695_v13 = vadd.f32 %v1948_v4, %v663_v21  ;;  %v1951_v54 = vunpack.c.h.bf16 %v1574_v22  ;;  %v1952_v11 = vunpack.c.l.bf16 %v1577_v23 }
 0x206   : > { %v696_v14 = vadd.f32 %v1949_v8, %v664_v15  ;;  %v697_v10 = vadd.f32 %v1950_v6, %v665_v38  ;;  %v1953_v52 = vunpack.c.h.bf16 %v1577_v23  ;;  %v1954_v16 = vunpack.c.l.bf16 %v1583_v27 }
 0x207   : > { %v698_v26 = vadd.f32 %v1951_v54, %v666_v31  ;;  %v699_v57 = vadd.f32 %v1952_v11, %v667_v32  ;;  %v1955_v21 = vunpack.c.h.bf16 %v1583_v27  ;;  %v1956_v15 = vunpack.c.l.bf16 %v1586_v28 }
 0x208   : > { %v700_v53 = vadd.f32 %v1953_v52, %v668_v12  ;;  %v701_v19 = vadd.f32 %v1954_v16, %v669_v36  ;;  %v1957_v22 = vunpack.c.h.bf16 %v1586_v28  ;;  %v1958_v58 = vunpack.c.l.bf16 %v1593_v34 }
 0x209   : > { %v702_v17 = vadd.f32 %v1955_v21, %v670_v44  ;;  %v703_v38 = vadd.f32 %v1956_v15, %v671_v39  ;;  %v1959_v23 = vunpack.c.h.bf16 %v1593_v34  ;;  %v1960_v4 = vunpack.c.l.bf16 %v1596_v35 }
 0x20a   : > { %v704_v31 = vadd.f32 %v1957_v22, %v672_v45  ;;  %v705_v32 = vadd.f32 %v1958_v58, %v673_v40  ;;  %v1961_v36 = vunpack.c.h.bf16 %v1596_v35  ;;  %v1962_v44 = vunpack.c.l.bf16 %v1603_v1 }
 0x20b   : > { %v706_v12 = vadd.f32 %v1959_v23, %v674_v48  ;;  %v707_v8 = vadd.f32 %v1960_v4, %v675_v41  ;;  %v1963_v39 = vunpack.c.h.bf16 %v1603_v1  ;;  %v1964_v28 = vunpack.c.l.bf16 %v1606_v7 }
 0x20c   : > { %v708_v27 = vadd.f32 %v1961_v36, %v676_v49  ;;  %v709_v6 = vadd.f32 %v1962_v44, %v677_v42  ;;  %v1965_v40 = vunpack.c.h.bf16 %v1606_v7  ;;  %v1966_v48 = vunpack.c.l.bf16 %v1613_v30 }
 0x20d   : > { %v710_v54 = vadd.f32 %v1963_v39, %v678_v50  ;;  %v1754_v45 = vadd.f32 %v1964_v28, %v679_v43  ;;  %v1967_v35 = vunpack.c.h.bf16 %v1613_v30  ;;  %v1968_v1 = vunpack.c.l.bf16 %v1616_v37 }
 0x20e   : > { %v1758_v34 = vadd.f32 %v1965_v40, %v680_v51  ;;  %v1762_v41 = vadd.f32 %v1966_v48, %v681_v46  ;;  %v1969_v50 = vunpack.c.h.bf16 %v1616_v37  ;;  %v1780_v7 = vadd.f32 %v1043_v24, %v685_v61 }
 0x20f   : > { %v1766_v49 = vadd.f32 %v1967_v35, %v682_v55  ;;  %v1772_v42 = vadd.f32 %v1968_v1, %v683_v56  ;;  %v1970_v51 = vunpack.c.h.bf16 %v1622_v33  ;;  %v1971_v30 = vunpack.c.l.bf16 %v1625_v25 }
 0x210   : > { %v1776_v43 = vadd.f32 %v1969_v50, %v684_v60  ;;  %v1972_v11 = vunpack.c.h.bf16 %v1625_v25  ;;  %v1973_v37 = vunpack.c.l.bf16 %v1632_v20  ;;  %v1974_v52 = vunpack.c.h.bf16 %v1632_v20 }
 0x211   : > { %v1784_v46 = vadd.f32 %v1970_v51, %v686_v2  ;;  %v1788_v55 = vadd.f32 %v1971_v30, %v687_v3  ;;  %v1975_v33 = vunpack.c.l.bf16 %v1639_v18  ;;  %v1976_v2 = vunpack.c.h.bf16 %v1639_v18 }
 0x212   : > { %v1792_v56 = vadd.f32 %v1972_v11, %v688_v59  ;;  %v1796_v60 = vadd.f32 %v1973_v37, %v689_v9  ;;  %v1800_v24 = vadd.f32 %v1974_v52, %v690_v63  ;;  %v1977_v25 = vunpack.c.l.bf16 %v1642_v29 }
 0x213   : > { %v1804_v61 = vadd.f32 %v1975_v33, %v691_v47  ;;  %v1808_v3 = vadd.f32 %v1976_v2, %v692_v0  ;;  %v1978_v16 = vunpack.c.h.bf16 %v1642_v29  ;;  %v727_v21 = vmax.f32 %v695_v13, 0.0 }
 0x214   : > { %v1812_v59 = vadd.f32 %v1977_v25, %v693_v62  ;;  %v728_v20 = vmax.f32 %v696_v14, 0.0  ;;  %v729_v63 = vmax.f32 %v697_v10, 0.0  ;;  %v730_v15 = vmax.f32 %v698_v26, 0.0 }
 0x215   : > { %v1816_v9 = vadd.f32 %v1978_v16, %v694_v5  ;;  %v731_v22 = vmax.f32 %v699_v57, 0.0  ;;  %v732_v58 = vmax.f32 %v700_v53, 0.0  ;;  %v733_v47 = vmax.f32 %v701_v19, 0.0  ;;  %759 = vst [vmem:[%s1818_s12] sm:$0xff] %v727_v21 }
 0x216   : > { %v734_v23 = vmax.f32 %v702_v17, 0.0  ;;  %v735_v4 = vmax.f32 %v703_v38, 0.0  ;;  %v736_v18 = vmax.f32 %v704_v31, 0.0  ;;  %v737_v0 = vmax.f32 %v705_v32, 0.0  ;;  %760 = vst [vmem:[%s1818_s12 + $0x8] sm:$0xff] %v728_v20  ;;  %761 = vst [vmem:[%s1818_s12 + $0x10] sm:$0xff] %v729_v63 }
 0x217   : > { %v738_v36 = vmax.f32 %v706_v12, 0.0  ;;  %762 = vst [vmem:[%s1818_s12 + $0x18] sm:$0xff] %v730_v15  ;;  %v739_v13 = vmax.f32 %v707_v8, 0.0  ;;  %v740_v14 = vmax.f32 %v708_v27, 0.0  ;;  %v741_v26 = vmax.f32 %v709_v6, 0.0  ;;  %763 = vst [vmem:[%s1818_s12 + $0x20] sm:$0xff] %v731_v22 }
 0x218   : > { %v742_v53 = vmax.f32 %v710_v54, 0.0  ;;  %764 = vst [vmem:[%s1818_s12 + $0x28] sm:$0xff] %v732_v58  ;;  %765 = vst [vmem:[%s1818_s12 + $0x30] sm:$0xff] %v733_v47  ;;  %v743_v29 = vmax.f32 %v1754_v45, 0.0  ;;  %v744_v62 = vmax.f32 %v1758_v34, 0.0  ;;  %v745_v5 = vmax.f32 %v1762_v41, 0.0 }
 0x219   : > { %766 = vst [vmem:[%s1818_s12 + $0x38] sm:$0xff] %v734_v23  ;;  %v746_v10 = vmax.f32 %v1766_v49, 0.0  ;;  %767 = vst [vmem:[%s1818_s12 + $0x40] sm:$0xff] %v735_v4  ;;  %v747_v57 = vmax.f32 %v1772_v42, 0.0  ;;  %v748_v19 = vmax.f32 %v1776_v43, 0.0  ;;  %v749_v17 = vmax.f32 %v1780_v7, 0.0 }
 0x21a   : > { %768 = vst [vmem:[%s1818_s12 + $0x48] sm:$0xff] %v736_v18  ;;  %769 = vst [vmem:[%s1818_s12 + $0x50] sm:$0xff] %v737_v0  ;;  %v750_v38 = vmax.f32 %v1784_v46, 0.0  ;;  %v751_v31 = vmax.f32 %v1788_v55, 0.0  ;;  %v752_v32 = vmax.f32 %v1792_v56, 0.0  ;;  %v753_v12 = vmax.f32 %v1796_v60, 0.0 }
 0x21b   : > { %770 = vst [vmem:[%s1818_s12 + $0x58] sm:$0xff] %v738_v36  ;;  %771 = vst [vmem:[%s1818_s12 + $0x60] sm:$0xff] %v739_v13  ;;  %v754_v8 = vmax.f32 %v1800_v24, 0.0  ;;  %v755_v27 = vmax.f32 %v1804_v61, 0.0  ;;  %v756_v44 = vmax.f32 %v1808_v3, 0.0  ;;  %v757_v6 = vmax.f32 %v1812_v59, 0.0 }
 0x21c   : > { %772 = vst [vmem:[%s1818_s12 + $0x68] sm:$0xff] %v740_v14  ;;  %773 = vst [vmem:[%s1818_s12 + $0x70] sm:$0xff] %v741_v26  ;;  %v758_v39 = vmax.f32 %v1816_v9, 0.0 }
 0x21d   : > { %774 = vst [vmem:[%s1818_s12 + $0x78] sm:$0xff] %v742_v53  ;;  %775 = vst [vmem:[%s1818_s12 + $0x80] sm:$0xff] %v743_v29 }
 0x21e   : > { %776 = vst [vmem:[%s1818_s12 + $0x88] sm:$0xff] %v744_v62  ;;  %777 = vst [vmem:[%s1818_s12 + $0x90] sm:$0xff] %v745_v5 }
 0x21f   : > { %778 = vst [vmem:[%s1818_s12 + $0x98] sm:$0xff] %v746_v10  ;;  %779 = vst [vmem:[%s1818_s12 + $0xa0] sm:$0xff] %v747_v57 }
 0x220   : > { %780 = vst [vmem:[%s1818_s12 + $0xa8] sm:$0xff] %v748_v19  ;;  %781 = vst [vmem:[%s1818_s12 + $0xb0] sm:$0xff] %v749_v17 }
 0x221   : > { %782 = vst [vmem:[%s1818_s12 + $0xb8] sm:$0xff] %v750_v38  ;;  %783 = vst [vmem:[%s1818_s12 + $0xc0] sm:$0xff] %v751_v31 }
 0x222   : > { %784 = vst [vmem:[%s1818_s12 + $0xc8] sm:$0xff] %v752_v32  ;;  %785 = vst [vmem:[%s1818_s12 + $0xd0] sm:$0xff] %v753_v12 }
 0x223   : > { %786 = vst [vmem:[%s1818_s12 + $0xd8] sm:$0xff] %v754_v8  ;;  %787 = vst [vmem:[%s1818_s12 + $0xe0] sm:$0xff] %v755_v27 }
 0x224   : > { %788 = vst [vmem:[%s1818_s12 + $0xe8] sm:$0xff] %v756_v44  ;;  %789 = vst [vmem:[%s1818_s12 + $0xf0] sm:$0xff] %v757_v6 }
 0x225   : > { %790 = vst [vmem:[%s1818_s12 + $0xf8] sm:$0xff] %v758_v39 }
 0x226   : > { %1251 = shalt.err (!%p1248_p5)
}
 0x227   : > { %s1252_s30 = scalar_lea.hbm %s1857_s19, 4096  ;;  %s1256_s12 = scalar_lea.hbm %s1932_s7, 8192 }
 0x228   : > { %p1253_p6 = scmp.ne.s32.totalorder %s1857_s19, %s1252_s30  ;;  %p1257_p10 = scmp.lt.u32.totalorder %s1857_s19, %s1932_s7 }
 0x229   : > { %p1258_p11 = scmp.lt.u32.totalorder %s1256_s12, %s1252_s30  ;;  %p1260_p13 = scmp.lt.u32.totalorder %s1252_s30, %s1857_s19 }
 0x22a   : > { %p1254_p7 = pnand %p1253_p6, %p1404_p4 }
 0x22b   : > { %p1259_p12 = por %p1258_p11, %p1257_p10 }
 0x22c   : > { %p1255_p9 = pneg %p1254_p7 }
 0x22d   : > { %p1261_p0 = por %p1260_p13, %p1259_p12 }
 0x22f   : > { %p1262_p1 = pnand %p1261_p0, %p1255_p9 }
 0x231   : > { %1265 = shalt.err (!%p1262_p1)
}
 0x232   : > { %s1322_s18 = smov 128   ;;  %s1323_s21 = smov 8  }
 0x233   : > { %1174 = dma.vmem_to_hbm [thread:$0]  (%p1404_p4), %s1859_s16, 4096, %s1857_s19, %s1879_s20, %s1322_s18, %s1322_s18, %s1323_s21  }
 0x234 PF: > { %p1180_p2 = scmp.ge.s32.totalorder %s1316_s29, 2  ;;  %s822_s22 = sand.u32 1, %s1296_s24  }
 0x235   : > { %s823_s17 = scalar_lea.sflag [#allocation3], %s822_s22 }
 0x236   : > { %p1177_p3 = pnand %p1180_p2, %p1411_p8 }
 0x238   : > { %1291 = dma.done.wait (!%p1177_p3), %s823_s17, 4096  }
 0x239   : > { %1293 = vsyncadd (!%p1177_p3), %s823_s17, 4294963200  ;;  %s20_s29 = sadd.s32 1, %s1316_s29   ;;  %s1979_s24 = smov %s1300_s25 }
 0x23a   : > { %p17_p5 = scmp.ge.s32.totalorder %s20_s29, 4   ;;  %s1980_s25 = smov %s1304_s26 }
 0x23b   : > { %s1981_s26 = smov %s1417_s14  ;;  %s1982_s27 = smov %s1312_s28 }
 0x23c   : > { %s1983_s28 = smov %s1985_s9  ;;  %19 = sbr.rel (!%p17_p5) target bundleno = 4 (0x4), region = 89 }
 0x243   :  { %828 = vsyncpa [#allocation3], 1 }
 0x244   :  { %830 = vsyncpa [#allocation3 + $0x1], 1 }

// kernel: resnext_bottleneck_forward.2
= control target key start
LH: loop header
LB: loop body
LE: loop exit
PB: predicated region body
PF: predicated region fallthrough
CT: control target
= control target key end

     0   :  { %s6097_s27 = smov 0   ;;  %s6099_s28 = smov 0   ;;  %s7177_s0 = inlined_call_operand.vmem [shape: bf16[2,18,24,128], index: 0, kind: input, shape index: {}]   ;;  %s7178_s1 = inlined_call_operand.vmem [shape: bf16[128,64], index: 1, kind: input, shape index: {}]   ;;  %s7179_s2 = inlined_call_operand.vmem [shape: f32[1,64], index: 2, kind: input, shape index: {}]   ;;  %s7180_s3 = inlined_call_operand.vmem [shape: bf16[1,9,64,64], index: 3, kind: input, shape index: {}]   ;;  %s7181_s4 = inlined_call_operand.vmem [shape: f32[1,64], index: 4, kind: input, shape index: {}]   ;;  %s7182_s5 = inlined_call_operand.vmem [shape: bf16[64,128], index: 5, kind: input, shape index: {}]   ;;  %s7183_s6 = inlined_call_operand.vmem [shape: f32[1,128], index: 6, kind: input, shape index: {}]   ;;  %s7184_s7 = inlined_call_operand.vmem [shape: bf16[2,256,128], index: 7, kind: output, shape index: {0}]   ;;  %s7185_s8 = inlined_call_operand.vmem [shape: f32[2,1,1,128], index: 8, kind: output, shape index: {1}]  }
   0x1   :  { %s6101_s29 = smov 0  }
   0x2 LB: > { %s31_s30 = sadd.s32 1, %s6042_s28  ;;  %p4438_p0 = scmp.ge.s32.totalorder %s6046_s29, 1  ;;  %s6046_s29 = sphi %s6101_s29, %s19_s29   ;;  %s6042_s28 = sphi %s6099_s28, %s7196_s28   ;;  %s6038_s27 = sphi %s6097_s27, %s7195_s27  }
   0x3   : > { %p33_p1 = scmp.ge.s32.totalorder %s31_s30, 2  ;;  %p281_p2 = scmp.lt.s32.totalorder %s6046_s29, 3 }
   0x5   : > { %s7198_s30 = smov (%p33_p1, %s31_s30), 0  ;;  %p282_p3 = pnand %p4438_p0, %p281_p2 }
   0x7   : > { %285 = sbr.rel (%p282_p3) target bundleno = 1301 (0x515), region = 48 }
   0xe   : > { %v5948_v0 = vld [vmem:[%s7178_s1] sm:$0xff]   ;;  %v6048_v1 = vmov 0.0   ;;  %v5949_v2 = vld [vmem:[%s7178_s1 + $0x8] sm:$0xff]   ;;  %vm6049_vm0 = vmmov 0   ;;  %p325_p4 = scmp.lt.s32.totalorder %s6038_s27, 1  ;;  %v5950_v3 = vld [vmem:[%s7178_s1 + $0x10] sm:$0xff]   ;;  %v959_v55 = vlaneseq }
   0xf   : > { %5139 = vmatprep.subr.bf16.mxu0 %v6048_v1  ;;  %5155 = vmatprep.mubr.msk.bf16.mxu0 %vm6049_vm0, %v6048_v1  ;;  %v5951_v4 = vld [vmem:[%s7178_s1 + $0x18] sm:$0xff]   ;;  %v5952_v5 = vld [vmem:[%s7178_s1 + $0x20] sm:$0xff]   ;;  %v5953_v6 = vld [vmem:[%s7178_s1 + $0x28] sm:$0xff]   ;;  %v7186_v32 = vmov 0.0|0.0   ;;  %vm1678_vm1 = vcmask 523264   ;;  %v6051_v46 = vmov 0  }
  0x10   : > { %5140 = vmatpush3.bf16.msra.mxu0 %v5948_v0  ;;  %s7200_s27 = smov (!%p325_p4, %s6038_s27), 1  ;;  %v5954_v7 = vld [vmem:[%s7178_s1 + $0x30] sm:$0xff]   ;;  %v5955_v8 = vld [vmem:[%s7178_s1 + $0x38] sm:$0xff]   ;;  %v5981_v22 = vld [vmem:[%s7180_s3 + $0x40] sm:$0xff]   ;;  %v6225_v33 = vrot.slane %v7186_v32, 1  ;;  %v6265_v47 = vrot.slane %v6051_v46, 1 }
  0x11   : > { %5141 = vmatprep.subr.bf16.mxu0 %v6048_v1  ;;  %s5919_s15 = smul.u32 216, %s7200_s27  ;;  %5343 = vmatprep.subr.bf16.mxu1 %v5981_v22  ;;  %v5983_v23 = vld [vmem:[%s7180_s3 + $0x20] sm:$0xff]   ;;  %v5984_v24 = vld [vmem:[%s7180_s3 + $0x48] sm:$0xff]   ;;  %v5986_v27 = vld [vmem:[%s7180_s3 + $0x50] sm:$0xff]   ;;  %v6275_v59 = vshrl.u32 %v959_v55, 7  ;;  %vm1582_vm4 = vcmask 1046528  }
  0x12   : > { %5344 = vmatpush3.bf16.msra.mxu1 %v5981_v22  ;;  %v5985_v26 = vld [vmem:[%s7180_s3 + $0x28] sm:$0xff]   ;;  %v5988_v28 = vld [vmem:[%s7180_s3 + $0x30] sm:$0xff]   ;;  %v5989_v29 = vld [vmem:[%s7180_s3 + $0x58] sm:$0xff]   ;;  %7190 = vst [vmem:[#allocation2_spill] sm:$0xff] %v6225_v33  ;;  %5351 = vmatprep.mubr.msk.bf16.mxu1 %vm1678_vm1, %v6225_v33  ;;  %vm1329_vm5 = vsmask.f32 7424 }
  0x13   : > { %s6135_s18 = scalar_lea.vmem %s7177_s0, %s5919_s15  ;;  %5345 = vmatprep.subr.bf16.mxu1 %v5984_v24  ;;  %v5990_v31 = vld [vmem:[%s7180_s3 + $0x38] sm:$0xff]   ;;  %7191 = vst [vmem:[#allocation3_spill] sm:$0xff] %v6265_v47  ;;  %v6272_v54 = vld [vmem:[%s7179_s2] ss:$0 sm:$0xff]  ;;  %v6278_v62 = vadd.s32 16, %v6275_v59  ;;  %vm1017_vm2 = vcmp.gt.s32.totalorder %v6275_v59, 0  ;;  %s345_s15 = scalar_lea.vmem %s7185_s8, %s7200_s27 }
  0x14   : > { %5142 = vmatpush3.bf16.msra.mxu0 %v5949_v2  ;;  %v5956_v9 = vld [vmem:[%s6135_s18] sm:$0xff]   ;;  %v5957_v10 = vld [vmem:[%s6135_s18 + $0x8] sm:$0xff]   ;;  %v5958_v11 = vld [vmem:[%s6135_s18 + $0x10] sm:$0xff]   ;;  %s4776_s10 = sshll.u32 %s7200_s27, 7 }
  0x15   : > { %5143 = vmatprep.subr.bf16.mxu0 %v6048_v1  ;;  %v5959_v12 = vld [vmem:[%s6135_s18 + $0x18] sm:$0xff]   ;;  %v5960_v13 = vld [vmem:[%s6135_s18 + $0x20] sm:$0xff]   ;;  %v5961_v14 = vld [vmem:[%s6135_s18 + $0x28] sm:$0xff]   ;;  %vm1076_vm3 = vcmp.lt.s32.totalorder %v6278_v62, 17  ;;  %s7118_s12 = scalar_lea.vmem %s7184_s7, %s4776_s10 }
  0x16   : > { %v5962_v15 = vld [vmem:[%s6135_s18 + $0x30] sm:$0xff]   ;;  %v5963_v16 = vld [vmem:[%s6135_s18 + $0x38] sm:$0xff]   ;;  %v5964_v17 = vld [vmem:[%s6135_s18 + $0x40] sm:$0xff]   ;;  %5346 = vmatpush3.bf16.msra.mxu1 %v5984_v24 }
  0x17   : > { %v5965_v18 = vld [vmem:[%s6135_s18 + $0x48] sm:$0xff]   ;;  %v5966_v19 = vld [vmem:[%s6135_s18 + $0x50] sm:$0xff]   ;;  %v5967_v20 = vld [vmem:[%s6135_s18 + $0x58] sm:$0xff]   ;;  %5347 = vmatprep.subr.bf16.mxu1 %v5986_v27 }
  0x18   : > { %5144 = vmatpush3.bf16.msra.mxu0 %v5950_v3  ;;  %v5968_v21 = vld [vmem:[%s6135_s18 + $0x60] sm:$0xff]   ;;  %v5969_v25 = vld [vmem:[%s6135_s18 + $0x68] sm:$0xff]   ;;  %v5970_v30 = vld [vmem:[%s6135_s18 + $0x70] sm:$0xff]  }
  0x19   : > { %5145 = vmatprep.subr.bf16.mxu0 %v6048_v1  ;;  %v5971_v34 = vld [vmem:[%s6135_s18 + $0x78] sm:$0xff]   ;;  %v5972_v35 = vld [vmem:[%s6135_s18 + $0x80] sm:$0xff]   ;;  %v5973_v36 = vld [vmem:[%s6135_s18 + $0x88] sm:$0xff]  }
  0x1a   : > { %5348 = vmatpush3.bf16.msra.mxu1 %v5986_v27  ;;  %v5974_v37 = vld [vmem:[%s6135_s18 + $0x90] sm:$0xff]   ;;  %v5975_v38 = vld [vmem:[%s6135_s18 + $0x98] sm:$0xff]   ;;  %v5976_v39 = vld [vmem:[%s6135_s18 + $0xa0] sm:$0xff]  }
  0x1b   : > { %5349 = vmatprep.subr.bf16.mxu1 %v5989_v29  ;;  %v5977_v40 = vld [vmem:[%s6135_s18 + $0xa8] sm:$0xff]   ;;  %v5978_v41 = vld [vmem:[%s6135_s18 + $0xb0] sm:$0xff]   ;;  %v5979_v42 = vld [vmem:[%s6135_s18 + $0xb8] sm:$0xff]  }
  0x1c   : > { %5146 = vmatpush3.bf16.msra.mxu0 %v5951_v4  ;;  %v5980_v43 = vld [vmem:[%s6135_s18 + $0xc0] sm:$0xff]   ;;  %v5982_v44 = vld [vmem:[%s6135_s18 + $0xc8] sm:$0xff]   ;;  %v5987_v45 = vld [vmem:[%s6135_s18 + $0xd0] sm:$0xff]  }
  0x1d   : > { %5147 = vmatprep.subr.bf16.mxu0 %v6048_v1 }
  0x1e   : > { %5350 = vmatpush3.bf16.msra.mxu1 %v5989_v29 }
  0x20   : > { %5148 = vmatpush3.bf16.msra.mxu0 %v5952_v5 }
  0x21   : > { %5149 = vmatprep.subr.bf16.mxu0 %v6048_v1 }
  0x24   : > { %5150 = vmatpush3.bf16.msra.mxu0 %v5953_v6  ;;  %v5991_v6 = vld [vmem:[%s7180_s3 + $0x60] sm:$0xff]  }
  0x25   : > { %5151 = vmatprep.subr.bf16.mxu0 %v6048_v1  ;;  %5383 = vmatprep.subr.bf16.mxu1 %v5991_v6 }
  0x28   : > { %5152 = vmatpush3.bf16.msra.mxu0 %v5954_v7 }
  0x29   : > { %5153 = vmatprep.subr.bf16.mxu0 %v6048_v1 }
  0x2c   : > { %5154 = vmatpush3.bf16.msra.mxu0 %v5955_v8 }
  0x2d   : > { %5263 = vmatprep.subr.bf16.mxu0 %v5983_v23 }
  0x2f   : > { %5156 = vmatmul.mubr.bf16.vlgmr.msra.gmra.mrb[0].mxu0 %v5956_v9 }
  0x30   : > { %5159 = vmatprep.mubr.msk.bf16.mxu0 %vm6049_vm0, %v6048_v1  ;;  %5264 = vmatpush3.bf16.msra.mxu0 %v5983_v23 }
  0x31   : > { %5265 = vmatprep.subr.bf16.mxu0 %v5985_v26 }
  0x34   : > { %5266 = vmatpush3.bf16.msra.mxu0 %v5985_v26 }
  0x35   : > { %5267 = vmatprep.subr.bf16.mxu0 %v5988_v28 }
  0x37   : > { %5160 = vmatmul.mubr.bf16.gmra.mrb[4].mxu0 %v5957_v10 }
  0x38   : > { %5163 = vmatprep.mubr.msk.bf16.mxu0 %vm6049_vm0, %v6048_v1  ;;  %5268 = vmatpush3.bf16.msra.mxu0 %v5988_v28 }
  0x39   : > { %5269 = vmatprep.subr.bf16.mxu0 %v5990_v31 }
  0x3c   : > { %5270 = vmatpush3.bf16.msra.mxu0 %v5990_v31 }
  0x3f   : > { %5164 = vmatmul.mubr.bf16.gmra.mrb[8].mxu0 %v5958_v11 }
  0x40   : > { %5167 = vmatprep.mubr.msk.bf16.mxu0 %vm6049_vm0, %v6048_v1 }
  0x47   : > { %5168 = vmatmul.mubr.bf16.gmra.mrb[12].mxu0 %v5959_v12 }
  0x48   : > { %5171 = vmatprep.mubr.msk.bf16.mxu0 %vm6049_vm0, %v6048_v1 }
  0x4f   : > { %5172 = vmatmul.mubr.bf16.gmra.mrb[16].mxu0 %v5960_v13 }
  0x50   : > { %5175 = vmatprep.mubr.msk.bf16.mxu0 %vm6049_vm0, %v6048_v1 }
  0x57   : > { %5176 = vmatmul.mubr.bf16.gmra.mrb[20].mxu0 %v5961_v14 }
  0x58   : > { %5179 = vmatprep.mubr.msk.bf16.mxu0 %vm6049_vm0, %v6048_v1 }
  0x5f   : > { %5180 = vmatmul.mubr.bf16.gmra.mrb[24].mxu0 %v5962_v15 }
  0x60   : > { %5183 = vmatprep.mubr.msk.bf16.mxu0 %vm6049_vm0, %v6048_v1 }
  0x67   : > { %5184 = vmatmul.mubr.bf16.gmra.mrb[28].mxu0 %v5963_v16 }
  0x68   : > { %5187 = vmatprep.mubr.msk.bf16.mxu0 %vm6049_vm0, %v6048_v1 }
  0x6f   : > { %5188 = vmatmul.mubr.bf16.gmra.mrb[32].mxu0 %v5964_v17 }
  0x70   : > { %5191 = vmatprep.mubr.msk.bf16.mxu0 %vm6049_vm0, %v6048_v1 }
  0x77   : > { %5192 = vmatmul.mubr.bf16.gmra.mrb[36].mxu0 %v5965_v18 }
  0x78   : > { %5195 = vmatprep.mubr.msk.bf16.mxu0 %vm6049_vm0, %v6048_v1 }
  0x7f   : > { %5196 = vmatmul.mubr.bf16.gmra.mrb[40].mxu0 %v5966_v19 }
  0x80   : > { %5199 = vmatprep.mubr.msk.bf16.mxu0 %vm6049_vm0, %v6048_v1 }
  0x87   : > { %5200 = vmatmul.mubr.bf16.gmra.mrb[44].mxu0 %v5967_v20 }
  0x88   : > { %5203 = vmatprep.mubr.msk.bf16.mxu0 %vm6049_vm0, %v6048_v1 }
  0x8f   : > { %5204 = vmatmul.mubr.bf16.gmra.mrb[48].mxu0 %v5968_v21 }
  0x90   : > { %5207 = vmatprep.mubr.msk.bf16.mxu0 %vm6049_vm0, %v6048_v1 }
  0x97   : > { %5208 = vmatmul.mubr.bf16.gmra.mrb[52].mxu0 %v5969_v25 }
  0x98   : > { %5211 = vmatprep.mubr.msk.bf16.mxu0 %vm6049_vm0, %v6048_v1 }
  0x9f   : > { %5212 = vmatmul.mubr.bf16.gmra.mrb[56].mxu0 %v5970_v30 }
  0xa0   : > { %5215 = vmatprep.mubr.msk.bf16.mxu0 %vm6049_vm0, %v6048_v1 }
  0xa7   : > { %5216 = vmatmul.mubr.bf16.gmra.mrb[60].mxu0 %v5971_v34 }
  0xa8   : > { %5219 = vmatprep.mubr.msk.bf16.mxu0 %vm6049_vm0, %v6048_v1 }
  0xaf   : > { %5220 = vmatmul.mubr.bf16.gmra.mrb[64].mxu0 %v5972_v35 }
  0xb0   : > { %5223 = vmatprep.mubr.msk.bf16.mxu0 %vm6049_vm0, %v6048_v1 }
  0xb7   : > { %5224 = vmatmul.mubr.bf16.gmra.mrb[68].mxu0 %v5973_v36 }
  0xb8   : > { %5227 = vmatprep.mubr.msk.bf16.mxu0 %vm6049_vm0, %v6048_v1 }
  0xbf   : > { %5228 = vmatmul.mubr.bf16.gmra.mrb[72].mxu0 %v5974_v37 }
  0xc0   : > { %5231 = vmatprep.mubr.msk.bf16.mxu0 %vm6049_vm0, %v6048_v1 }
  0xc7   : > { %5232 = vmatmul.mubr.bf16.gmra.mrb[76].mxu0 %v5975_v38  ;;  %v5992_v38 = vld [vmem:[%s7180_s3 + $0x68] sm:$0xff]  }
  0xc8   : > { %5235 = vmatprep.mubr.msk.bf16.mxu0 %vm6049_vm0, %v6048_v1 }
  0xcf   : > { %5236 = vmatmul.mubr.bf16.gmra.mrb[80].mxu0 %v5976_v39 }
  0xd0   : > { %5239 = vmatprep.mubr.msk.bf16.mxu0 %vm6049_vm0, %v6048_v1 }
  0xd7   : > { %5240 = vmatmul.mubr.bf16.gmra.mrb[84].mxu0 %v5977_v40 }
  0xd8   : > { %5243 = vmatprep.mubr.msk.bf16.mxu0 %vm6049_vm0, %v6048_v1 }
  0xdf   : > { %5244 = vmatmul.mubr.bf16.gmra.mrb[88].mxu0 %v5978_v41 }
  0xe0   : > { %5247 = vmatprep.mubr.msk.bf16.mxu0 %vm6049_vm0, %v6048_v1 }
  0xe7   : > { %5248 = vmatmul.mubr.bf16.gmra.mrb[92].mxu0 %v5979_v42 }
  0xe8   : > { %5251 = vmatprep.mubr.msk.bf16.mxu0 %vm6049_vm0, %v6048_v1 }
  0xef   : > { %5252 = vmatmul.mubr.bf16.gmra.mrb[96].mxu0 %v5980_v43 }
  0xf0   : > { %5255 = vmatprep.mubr.msk.bf16.mxu0 %vm6049_vm0, %v6048_v1 }
  0xf7   : > { %5256 = vmatmul.mubr.bf16.gmra.mrb[100].mxu0 %v5982_v44 }
  0xf8   : > { %5259 = vmatprep.mubr.msk.bf16.mxu0 %vm6049_vm0, %v6048_v1 }
  0xff   : > { %5260 = vmatmul.mubr.bf16.gmra.mrb[104].mxu0 %v5987_v45 }
 0x100   : > { %5271 = vmatprep.mubr.msk.bf16.mxu0 %vm1678_vm1, %v6265_v47 }
 0x102   : > { %v672_v48 = vpop.f32.mrb[0].mxu0 }
 0x103   : > { %v5157_v49 = vpop.f32.mrb[1].mxu0 }
 0x104   : > { %v675_v50 = vpop.f32.mrb[2].mxu0 }
 0x105   : > { %v5158_v51 = vpop.f32.mrb[3].mxu0 }
 0x10a   : > { %v680_v52 = vpop.f32.mrb[4].mxu0 }
 0x10b   : > { %v5161_v53 = vpop.f32.mrb[5].mxu0 }
 0x10c   : > { %v683_v56 = vpop.f32.mrb[6].mxu0 }
 0x10d   : > { %v5162_v57 = vpop.f32.mrb[7].mxu0  ;;  %v684_v58 = vadd.f32 %v6272_v54, %v683_v56 }
 0x10f   : > { %v890_v60 = vmax.f32 %v684_v58, 0.0 }
 0x111   : > { %v1242_v5 = vsel %vm1017_vm2, %v890_v60, 0.0 }
 0x112   : > { %v688_v61 = vpop.f32.mrb[8].mxu0 }
 0x113   : > { %v689_v63 = vadd.f32 %v6272_v54, %v688_v61  ;;  %v5165_v0 = vpop.f32.mrb[9].mxu0 }
 0x114   : > { %v691_v1 = vpop.f32.mrb[10].mxu0 }
 0x115   : > { %v891_v2 = vmax.f32 %v689_v63, 0.0  ;;  %v692_v3 = vadd.f32 %v6272_v54, %v691_v1  ;;  %v5166_v4 = vpop.f32.mrb[11].mxu0 }
 0x117   : > { %v6289_v7 = vpack.c.bf16 %v891_v2, %v1242_v5  ;;  %v892_v8 = vmax.f32 %v692_v3, 0.0 }
 0x119   : > { %v1244_v9 = vsel %vm1076_vm3, %v892_v8, 0.0  ;;  %v1345_v10 = vshll.u32 %v6289_v7, 16  ;;  %v1343_v15 = vshrl.u32 %v6289_v7, 16  ;;  %v1586_v20 = vrot.slane %v6289_v7, 1 }
 0x11a   : > { %v1296_v11 = vpack.c.bf16 %v1244_v9, %v1244_v9  ;;  %v696_v12 = vpop.f32.mrb[12].mxu0 }
 0x11b   : > { %v697_v13 = vadd.f32 %v6272_v54, %v696_v12  ;;  %v5169_v14 = vpop.f32.mrb[13].mxu0  ;;  %v1347_v16 = vrot.slane %v1345_v10, 1 }
 0x11c   : > { %v1350_v17 = vshll.u32 %v1296_v11, 16  ;;  %v1587_v18 = vrot.slane %v1296_v11, 1  ;;  %v699_v19 = vpop.f32.mrb[14].mxu0 }
 0x11d   : > { %v893_v21 = vmax.f32 %v697_v13, 0.0  ;;  %v700_v22 = vadd.f32 %v6272_v54, %v699_v19  ;;  %v5170_v23 = vpop.f32.mrb[15].mxu0  ;;  %v1348_v24 = vor.u32 %v1347_v16, %v1343_v15 }
 0x11e   : > { %v1352_v25 = vrot.slane %v1350_v17, 1  ;;  %v6299_v26 = vsel %vm1582_vm4, %v1586_v20, %v1587_v18 }
 0x11f   : > { %v1245_v27 = vsel %vm1017_vm2, %v893_v21, 0.0  ;;  %v894_v28 = vmax.f32 %v700_v22, 0.0  ;;  %5352 = vmatmul.mubr.msk.bf16.vlgmr.msra.gmra.mrb[0].mxu1 %vm1678_vm1, %v6299_v26 }
 0x120   : > { %v6306_v29 = vsel %vm1329_vm5, %v1348_v24, %v1352_v25  ;;  %5384 = vmatpush3.bf16.msra.mxu1 %v5991_v6  ;;  %v5993_v6 = vld [vmem:[%s7180_s3 + $0x70] sm:$0xff]  }
 0x121   : > { %v6308_v30 = vpack.c.bf16 %v894_v28, %v1245_v27  ;;  %5272 = vmatmul.mubr.msk.bf16.vlgmr.msra.gmra.mrb[108].mxu0 %vm1678_vm1, %v6306_v29  ;;  %5385 = vmatprep.subr.bf16.mxu1 %v5992_v38 }
 0x122   : > { %v704_v31 = vpop.f32.mrb[16].mxu0 }
 0x123   : > { %v705_v34 = vadd.f32 %v6272_v54, %v704_v31  ;;  %v5173_v35 = vpop.f32.mrb[17].mxu0  ;;  %v1357_v37 = vshll.u32 %v6308_v30, 16  ;;  %v1589_v45 = vrot.slane %v6308_v30, 1  ;;  %v1355_v51 = vshrl.u32 %v6308_v30, 16 }
 0x124   : > { %v707_v36 = vpop.f32.mrb[18].mxu0  ;;  %5386 = vmatpush3.bf16.msra.mxu1 %v5992_v38 }
 0x125   : > { %v895_v39 = vmax.f32 %v705_v34, 0.0  ;;  %v5174_v40 = vpop.f32.mrb[19].mxu0  ;;  %v708_v41 = vadd.f32 %v6272_v54, %v707_v36  ;;  %v1359_v44 = vrot.slane %v1357_v37, 1  ;;  %5387 = vmatprep.subr.bf16.mxu1 %v5993_v6 }
 0x127   : > { %v1247_v42 = vsel %vm1076_vm3, %v895_v39, 0.0  ;;  %v896_v49 = vmax.f32 %v708_v41, 0.0  ;;  %v1360_v58 = vor.u32 %v1359_v44, %v1355_v51 }
 0x128   : > { %v1298_v43 = vpack.c.bf16 %v1247_v42, %v1247_v42  ;;  %5388 = vmatpush3.bf16.msra.mxu1 %v5993_v6  ;;  %v5995_v42 = vld [vmem:[%s7180_s3] sm:$0xff]   ;;  %v5994_v6 = vld [vmem:[%s7180_s3 + $0x78] sm:$0xff]  }
 0x129   : > { %v1248_v0 = vsel %vm1017_vm2, %v896_v49, 0.0  ;;  %5303 = vmatprep.subr.bf16.mxu0 %v5995_v42  ;;  %5389 = vmatprep.subr.bf16.mxu1 %v5994_v6 }
 0x12a   : > { %v1362_v46 = vshll.u32 %v1298_v43, 16  ;;  %v1590_v48 = vrot.slane %v1298_v43, 1  ;;  %v712_v50 = vpop.f32.mrb[20].mxu0  ;;  %5304 = vmatpush3.bf16.msra.mxu0 %v5995_v42 }
 0x12b   : > { %v713_v52 = vadd.f32 %v6272_v54, %v712_v50  ;;  %v5177_v53 = vpop.f32.mrb[21].mxu0 }
 0x12c   : > { %v1364_v55 = vrot.slane %v1362_v46, 1  ;;  %v715_v56 = vpop.f32.mrb[22].mxu0  ;;  %v6324_v57 = vsel %vm1582_vm4, %v1589_v45, %v1590_v48  ;;  %5390 = vmatpush3.bf16.msra.mxu1 %v5994_v6 }
 0x12d   : > { %v897_v60 = vmax.f32 %v713_v52, 0.0  ;;  %v716_v61 = vadd.f32 %v6272_v54, %v715_v56  ;;  %v5178_v63 = vpop.f32.mrb[23].mxu0  ;;  %5355 = vmatprep.mubr.msk.bf16.mxu1 %vm1678_vm1, %v6324_v57 }
 0x12e   : > { %v6332_v1 = vsel %vm1329_vm5, %v1360_v58, %v1364_v55  ;;  %v5996_v55 = vld [vmem:[%s7180_s3 + $0x8] sm:$0xff]  }
 0x12f   : > { %v6334_v2 = vpack.c.bf16 %v897_v60, %v1248_v0  ;;  %v898_v3 = vmax.f32 %v716_v61, 0.0  ;;  %5275 = vmatprep.mubr.msk.bf16.mxu0 %vm1678_vm1, %v6332_v1  ;;  %5305 = vmatprep.subr.bf16.mxu0 %v5996_v55 }
 0x130   : > { %5306 = vmatpush3.bf16.msra.mxu0 %v5996_v55 }
 0x131   : > { %v1250_v4 = vsel %vm1076_vm3, %v898_v3, 0.0  ;;  %v1369_v5 = vshll.u32 %v6334_v2, 16  ;;  %v1367_v12 = vshrl.u32 %v6334_v2, 16  ;;  %v1592_v17 = vrot.slane %v6334_v2, 1 }
 0x132   : > { %v1300_v8 = vpack.c.bf16 %v1250_v4, %v1250_v4  ;;  %v720_v9 = vpop.f32.mrb[24].mxu0 }
 0x133   : > { %v721_v10 = vadd.f32 %v6272_v54, %v720_v9  ;;  %v5181_v11 = vpop.f32.mrb[25].mxu0  ;;  %v1371_v13 = vrot.slane %v1369_v5, 1 }
 0x134   : > { %v1374_v14 = vshll.u32 %v1300_v8, 16  ;;  %v1593_v15 = vrot.slane %v1300_v8, 1  ;;  %v723_v16 = vpop.f32.mrb[26].mxu0 }
 0x135   : > { %v899_v18 = vmax.f32 %v721_v10, 0.0  ;;  %v724_v19 = vadd.f32 %v6272_v54, %v723_v16  ;;  %v5182_v20 = vpop.f32.mrb[27].mxu0  ;;  %v1372_v21 = vor.u32 %v1371_v13, %v1367_v12  ;;  %v5997_v10 = vld [vmem:[%s7180_s3 + $0x10] sm:$0xff]   ;;  %v5998_v13 = vld [vmem:[%s7180_s3 + $0x18] sm:$0xff]  }
 0x136   : > { %v1376_v22 = vrot.slane %v1374_v14, 1  ;;  %v6349_v23 = vsel %vm1582_vm4, %v1592_v17, %v1593_v15  ;;  %5307 = vmatprep.subr.bf16.mxu0 %v5997_v10  ;;  %v6406_v14 = vld [vmem:[%s7180_s3 + $0x80] sm:$0xff]  }
 0x137   : > { %v1251_v24 = vsel %vm1017_vm2, %v899_v18, 0.0  ;;  %v900_v25 = vmax.f32 %v724_v19, 0.0  ;;  %5356 = vmatmul.mubr.msk.bf16.gmra.mrb[4].mxu1 %vm1678_vm1, %v6349_v23  ;;  %5308 = vmatpush3.bf16.msra.mxu0 %v5997_v10 }
 0x138   : > { %v6356_v27 = vsel %vm1329_vm5, %v1372_v21, %v1376_v22  ;;  %5309 = vmatprep.subr.bf16.mxu0 %v5998_v13  ;;  %5423 = vmatprep.subr.bf16.mxu1 %v6406_v14 }
 0x139   : > { %v6358_v28 = vpack.c.bf16 %v900_v25, %v1251_v24  ;;  %5276 = vmatmul.mubr.msk.bf16.gmra.mrb[112].mxu0 %vm1678_vm1, %v6356_v27 }
 0x13a   : > { %v728_v31 = vpop.f32.mrb[28].mxu0 }
 0x13b   : > { %v729_v34 = vadd.f32 %v6272_v54, %v728_v31  ;;  %v5185_v35 = vpop.f32.mrb[29].mxu0  ;;  %v1381_v37 = vshll.u32 %v6358_v28, 16  ;;  %v1595_v45 = vrot.slane %v6358_v28, 1  ;;  %v1379_v51 = vshrl.u32 %v6358_v28, 16  ;;  %5310 = vmatpush3.bf16.msra.mxu0 %v5998_v13 }
 0x13c   : > { %v731_v36 = vpop.f32.mrb[30].mxu0 }
 0x13d   : > { %v901_v38 = vmax.f32 %v729_v34, 0.0  ;;  %v5186_v39 = vpop.f32.mrb[31].mxu0  ;;  %v732_v40 = vadd.f32 %v6272_v54, %v731_v36  ;;  %v1383_v44 = vrot.slane %v1381_v37, 1 }
 0x13f   : > { %v1253_v41 = vsel %vm1076_vm3, %v901_v38, 0.0  ;;  %v902_v49 = vmax.f32 %v732_v40, 0.0  ;;  %v1384_v61 = vor.u32 %v1383_v44, %v1379_v51 }
 0x140   : > { %v1302_v43 = vpack.c.bf16 %v1253_v41, %v1253_v41 }
 0x141   : > { %v1254_v4 = vsel %vm1017_vm2, %v902_v49, 0.0 }
 0x142   : > { %v1386_v46 = vshll.u32 %v1302_v43, 16  ;;  %v1596_v48 = vrot.slane %v1302_v43, 1  ;;  %v736_v50 = vpop.f32.mrb[32].mxu0 }
 0x143   : > { %v737_v52 = vadd.f32 %v6272_v54, %v736_v50  ;;  %v5189_v53 = vpop.f32.mrb[33].mxu0 }
 0x144   : > { %v1388_v56 = vrot.slane %v1386_v46, 1  ;;  %v739_v58 = vpop.f32.mrb[34].mxu0  ;;  %v6377_v60 = vsel %vm1582_vm4, %v1595_v45, %v1596_v48 }
 0x145   : > { %v903_v63 = vmax.f32 %v737_v52, 0.0  ;;  %v740_v0 = vadd.f32 %v6272_v54, %v739_v58  ;;  %v5190_v3 = vpop.f32.mrb[35].mxu0  ;;  %5359 = vmatprep.mubr.msk.bf16.mxu1 %vm1678_vm1, %v6377_v60 }
 0x146   : > { %v6385_v5 = vsel %vm1329_vm5, %v1384_v61, %v1388_v56 }
 0x147   : > { %v6390_v8 = vpack.c.bf16 %v903_v63, %v1254_v4  ;;  %v904_v9 = vmax.f32 %v740_v0, 0.0  ;;  %5279 = vmatprep.mubr.msk.bf16.mxu0 %vm1678_vm1, %v6385_v5 }
 0x149   : > { %v1256_v11 = vsel %vm1076_vm3, %v904_v9, 0.0  ;;  %v1393_v12 = vshll.u32 %v6390_v8, 16  ;;  %v1391_v19 = vshrl.u32 %v6390_v8, 16  ;;  %v1598_v25 = vrot.slane %v6390_v8, 1 }
 0x14a   : > { %v1304_v15 = vpack.c.bf16 %v1256_v11, %v1256_v11  ;;  %v744_v16 = vpop.f32.mrb[36].mxu0 }
 0x14b   : > { %v745_v17 = vadd.f32 %v6272_v54, %v744_v16  ;;  %v5193_v18 = vpop.f32.mrb[37].mxu0  ;;  %v1395_v20 = vrot.slane %v1393_v12, 1 }
 0x14c   : > { %v1398_v21 = vshll.u32 %v1304_v15, 16  ;;  %v1599_v22 = vrot.slane %v1304_v15, 1  ;;  %v747_v24 = vpop.f32.mrb[38].mxu0 }
 0x14d   : > { %v905_v31 = vmax.f32 %v745_v17, 0.0  ;;  %v748_v34 = vadd.f32 %v6272_v54, %v747_v24  ;;  %v5194_v35 = vpop.f32.mrb[39].mxu0  ;;  %v1396_v36 = vor.u32 %v1395_v20, %v1391_v19 }
 0x14e   : > { %v1400_v37 = vrot.slane %v1398_v21, 1  ;;  %v6414_v38 = vsel %vm1582_vm4, %v1598_v25, %v1599_v22 }
 0x14f   : > { %v1257_v39 = vsel %vm1017_vm2, %v905_v31, 0.0  ;;  %v906_v40 = vmax.f32 %v748_v34, 0.0  ;;  %5360 = vmatmul.mubr.msk.bf16.gmra.mrb[8].mxu1 %vm1678_vm1, %v6414_v38 }
 0x150   : > { %v6421_v41 = vsel %vm1329_vm5, %v1396_v36, %v1400_v37 }
 0x151   : > { %v6423_v42 = vpack.c.bf16 %v906_v40, %v1257_v39  ;;  %5280 = vmatmul.mubr.msk.bf16.gmra.mrb[116].mxu0 %vm1678_vm1, %v6421_v41 }
 0x152   : > { %v752_v43 = vpop.f32.mrb[40].mxu0 }
 0x153   : > { %v753_v44 = vadd.f32 %v6272_v54, %v752_v43  ;;  %v5197_v45 = vpop.f32.mrb[41].mxu0  ;;  %v1405_v48 = vshll.u32 %v6423_v42, 16  ;;  %v1601_v56 = vrot.slane %v6423_v42, 1  ;;  %v1403_v3 = vshrl.u32 %v6423_v42, 16 }
 0x154   : > { %v755_v46 = vpop.f32.mrb[42].mxu0 }
 0x155   : > { %v907_v49 = vmax.f32 %v753_v44, 0.0  ;;  %v5198_v50 = vpop.f32.mrb[43].mxu0  ;;  %v756_v51 = vadd.f32 %v6272_v54, %v755_v46  ;;  %v1407_v55 = vrot.slane %v1405_v48, 1 }
 0x157   : > { %v1259_v52 = vsel %vm1076_vm3, %v907_v49, 0.0  ;;  %v908_v63 = vmax.f32 %v756_v51, 0.0  ;;  %v1408_v12 = vor.u32 %v1407_v55, %v1403_v3 }
 0x158   : > { %v1306_v53 = vpack.c.bf16 %v1259_v52, %v1259_v52 }
 0x159   : > { %v1260_v17 = vsel %vm1017_vm2, %v908_v63, 0.0 }
 0x15a   : > { %v1410_v58 = vshll.u32 %v1306_v53, 16  ;;  %v1602_v61 = vrot.slane %v1306_v53, 1  ;;  %v760_v0 = vpop.f32.mrb[44].mxu0 }
 0x15b   : > { %v761_v4 = vadd.f32 %v6272_v54, %v760_v0  ;;  %v5201_v6 = vpop.f32.mrb[45].mxu0 }
 0x15c   : > { %v1412_v9 = vrot.slane %v1410_v58, 1  ;;  %v763_v10 = vpop.f32.mrb[46].mxu0  ;;  %v6436_v11 = vsel %vm1582_vm4, %v1601_v56, %v1602_v61 }
 0x15d   : > { %v909_v13 = vmax.f32 %v761_v4, 0.0  ;;  %v764_v15 = vadd.f32 %v6272_v54, %v763_v10  ;;  %v5202_v16 = vpop.f32.mrb[47].mxu0  ;;  %5363 = vmatprep.mubr.msk.bf16.mxu1 %vm1678_vm1, %v6436_v11 }
 0x15e   : > { %v6444_v18 = vsel %vm1329_vm5, %v1408_v12, %v1412_v9 }
 0x15f   : > { %v6446_v19 = vpack.c.bf16 %v909_v13, %v1260_v17  ;;  %v910_v20 = vmax.f32 %v764_v15, 0.0  ;;  %5283 = vmatprep.mubr.msk.bf16.mxu0 %vm1678_vm1, %v6444_v18 }
 0x161   : > { %v1262_v21 = vsel %vm1076_vm3, %v910_v20, 0.0  ;;  %v1417_v22 = vshll.u32 %v6446_v19, 16  ;;  %v1415_v35 = vshrl.u32 %v6446_v19, 16  ;;  %v1604_v43 = vrot.slane %v6446_v19, 1 }
 0x162   : > { %v1308_v24 = vpack.c.bf16 %v1262_v21, %v1262_v21  ;;  %v768_v25 = vpop.f32.mrb[48].mxu0 }
 0x163   : > { %v769_v31 = vadd.f32 %v6272_v54, %v768_v25  ;;  %v5205_v34 = vpop.f32.mrb[49].mxu0  ;;  %v1419_v36 = vrot.slane %v1417_v22, 1 }
 0x164   : > { %v1422_v37 = vshll.u32 %v1308_v24, 16  ;;  %v1605_v39 = vrot.slane %v1308_v24, 1  ;;  %v771_v40 = vpop.f32.mrb[50].mxu0 }
 0x165   : > { %v911_v44 = vmax.f32 %v769_v31, 0.0  ;;  %v772_v45 = vadd.f32 %v6272_v54, %v771_v40  ;;  %v5206_v46 = vpop.f32.mrb[51].mxu0  ;;  %v1420_v48 = vor.u32 %v1419_v36, %v1415_v35 }
 0x166   : > { %v1424_v49 = vrot.slane %v1422_v37, 1  ;;  %v6458_v50 = vsel %vm1582_vm4, %v1604_v43, %v1605_v39 }
 0x167   : > { %v1263_v51 = vsel %vm1017_vm2, %v911_v44, 0.0  ;;  %v912_v52 = vmax.f32 %v772_v45, 0.0  ;;  %5364 = vmatmul.mubr.msk.bf16.gmra.mrb[12].mxu1 %vm1678_vm1, %v6458_v50 }
 0x168   : > { %v6465_v53 = vsel %vm1329_vm5, %v1420_v48, %v1424_v49 }
 0x169   : > { %v6467_v55 = vpack.c.bf16 %v912_v52, %v1263_v51  ;;  %5284 = vmatmul.mubr.msk.bf16.gmra.mrb[120].mxu0 %vm1678_vm1, %v6465_v53 }
 0x16a   : > { %v776_v56 = vpop.f32.mrb[52].mxu0 }
 0x16b   : > { %v777_v58 = vadd.f32 %v6272_v54, %v776_v56  ;;  %v5209_v61 = vpop.f32.mrb[53].mxu0  ;;  %v1429_v0 = vshll.u32 %v6467_v55, 16  ;;  %v1607_v13 = vrot.slane %v6467_v55, 1  ;;  %v1427_v21 = vshrl.u32 %v6467_v55, 16 }
 0x16c   : > { %v779_v63 = vpop.f32.mrb[54].mxu0 }
 0x16d   : > { %v913_v3 = vmax.f32 %v777_v58, 0.0  ;;  %v5210_v4 = vpop.f32.mrb[55].mxu0  ;;  %v780_v6 = vadd.f32 %v6272_v54, %v779_v63  ;;  %v1431_v12 = vrot.slane %v1429_v0, 1 }
 0x16f   : > { %v1265_v9 = vsel %vm1076_vm3, %v913_v3, 0.0  ;;  %v914_v17 = vmax.f32 %v780_v6, 0.0  ;;  %v1432_v35 = vor.u32 %v1431_v12, %v1427_v21 }
 0x170   : > { %v1310_v10 = vpack.c.bf16 %v1265_v9, %v1265_v9 }
 0x171   : > { %v1266_v40 = vsel %vm1017_vm2, %v914_v17, 0.0 }
 0x172   : > { %v1434_v15 = vshll.u32 %v1310_v10, 16  ;;  %v1608_v16 = vrot.slane %v1310_v10, 1  ;;  %v784_v20 = vpop.f32.mrb[56].mxu0 }
 0x173   : > { %v785_v22 = vadd.f32 %v6272_v54, %v784_v20  ;;  %v5213_v24 = vpop.f32.mrb[57].mxu0 }
 0x174   : > { %v1436_v25 = vrot.slane %v1434_v15, 1  ;;  %v787_v31 = vpop.f32.mrb[58].mxu0  ;;  %v6480_v34 = vsel %vm1582_vm4, %v1607_v13, %v1608_v16 }
 0x175   : > { %v915_v36 = vmax.f32 %v785_v22, 0.0  ;;  %v788_v37 = vadd.f32 %v6272_v54, %v787_v31  ;;  %v5214_v39 = vpop.f32.mrb[59].mxu0  ;;  %5367 = vmatprep.mubr.msk.bf16.mxu1 %vm1678_vm1, %v6480_v34 }
 0x176   : > { %v6488_v43 = vsel %vm1329_vm5, %v1432_v35, %v1436_v25 }
 0x177   : > { %v6490_v44 = vpack.c.bf16 %v915_v36, %v1266_v40  ;;  %v916_v45 = vmax.f32 %v788_v37, 0.0  ;;  %5287 = vmatprep.mubr.msk.bf16.mxu0 %vm1678_vm1, %v6488_v43 }
 0x179   : > { %v1268_v46 = vsel %vm1076_vm3, %v916_v45, 0.0  ;;  %v1441_v48 = vshll.u32 %v6490_v44, 16  ;;  %v1439_v58 = vshrl.u32 %v6490_v44, 16  ;;  %v1610_v4 = vrot.slane %v6490_v44, 1 }
 0x17a   : > { %v1312_v49 = vpack.c.bf16 %v1268_v46, %v1268_v46  ;;  %v792_v51 = vpop.f32.mrb[60].mxu0 }
 0x17b   : > { %v793_v52 = vadd.f32 %v6272_v54, %v792_v51  ;;  %v5217_v56 = vpop.f32.mrb[61].mxu0  ;;  %v1443_v61 = vrot.slane %v1441_v48, 1 }
 0x17c   : > { %v1446_v63 = vshll.u32 %v1312_v49, 16  ;;  %v1611_v0 = vrot.slane %v1312_v49, 1  ;;  %v795_v3 = vpop.f32.mrb[62].mxu0 }
 0x17d   : > { %v917_v6 = vmax.f32 %v793_v52, 0.0  ;;  %v796_v9 = vadd.f32 %v6272_v54, %v795_v3  ;;  %v5218_v10 = vpop.f32.mrb[63].mxu0  ;;  %v1444_v12 = vor.u32 %v1443_v61, %v1439_v58 }
 0x17e   : > { %v1448_v13 = vrot.slane %v1446_v63, 1  ;;  %v6502_v15 = vsel %vm1582_vm4, %v1610_v4, %v1611_v0 }
 0x17f   : > { %v1269_v16 = vsel %vm1017_vm2, %v917_v6, 0.0  ;;  %v918_v17 = vmax.f32 %v796_v9, 0.0  ;;  %5368 = vmatmul.mubr.msk.bf16.gmra.mrb[16].mxu1 %vm1678_vm1, %v6502_v15 }
 0x180   : > { %v6509_v20 = vsel %vm1329_vm5, %v1444_v12, %v1448_v13 }
 0x181   : > { %v6511_v21 = vpack.c.bf16 %v918_v17, %v1269_v16  ;;  %5288 = vmatmul.mubr.msk.bf16.gmra.mrb[124].mxu0 %vm1678_vm1, %v6509_v20 }
 0x182   : > { %v800_v22 = vpop.f32.mrb[64].mxu0 }
 0x183   : > { %v801_v24 = vadd.f32 %v6272_v54, %v800_v22  ;;  %v5221_v25 = vpop.f32.mrb[65].mxu0  ;;  %v1453_v35 = vshll.u32 %v6511_v21, 16  ;;  %v1613_v48 = vrot.slane %v6511_v21, 1  ;;  %v1451_v58 = vshrl.u32 %v6511_v21, 16 }
 0x184   : > { %v803_v31 = vpop.f32.mrb[66].mxu0 }
 0x185   : > { %v919_v36 = vmax.f32 %v801_v24, 0.0  ;;  %v5222_v37 = vpop.f32.mrb[67].mxu0  ;;  %v804_v39 = vadd.f32 %v6272_v54, %v803_v31  ;;  %v1455_v46 = vrot.slane %v1453_v35, 1 }
 0x187   : > { %v1271_v40 = vsel %vm1076_vm3, %v919_v36, 0.0  ;;  %v920_v52 = vmax.f32 %v804_v39, 0.0  ;;  %v1456_v6 = vor.u32 %v1455_v46, %v1451_v58 }
 0x188   : > { %v1314_v45 = vpack.c.bf16 %v1271_v40, %v1271_v40 }
 0x189   : > { %v1272_v13 = vsel %vm1017_vm2, %v920_v52, 0.0 }
 0x18a   : > { %v1458_v49 = vshll.u32 %v1314_v45, 16  ;;  %v1614_v51 = vrot.slane %v1314_v45, 1  ;;  %v808_v56 = vpop.f32.mrb[68].mxu0 }
 0x18b   : > { %v809_v61 = vadd.f32 %v6272_v54, %v808_v56  ;;  %v5225_v63 = vpop.f32.mrb[69].mxu0 }
 0x18c   : > { %v1460_v0 = vrot.slane %v1458_v49, 1  ;;  %v811_v3 = vpop.f32.mrb[70].mxu0  ;;  %v6524_v4 = vsel %vm1582_vm4, %v1613_v48, %v1614_v51 }
 0x18d   : > { %v921_v9 = vmax.f32 %v809_v61, 0.0  ;;  %v812_v10 = vadd.f32 %v6272_v54, %v811_v3  ;;  %v5226_v12 = vpop.f32.mrb[71].mxu0  ;;  %5371 = vmatprep.mubr.msk.bf16.mxu1 %vm1678_vm1, %v6524_v4 }
 0x18e   : > { %v6532_v16 = vsel %vm1329_vm5, %v1456_v6, %v1460_v0 }
 0x18f   : > { %v6534_v17 = vpack.c.bf16 %v921_v9, %v1272_v13  ;;  %v922_v22 = vmax.f32 %v812_v10, 0.0  ;;  %5291 = vmatprep.mubr.msk.bf16.mxu0 %vm1678_vm1, %v6532_v16 }
 0x191   : > { %v1274_v24 = vsel %vm1076_vm3, %v922_v22, 0.0  ;;  %v1465_v25 = vshll.u32 %v6534_v17, 16  ;;  %v1463_v39 = vshrl.u32 %v6534_v17, 16  ;;  %v1616_v49 = vrot.slane %v6534_v17, 1 }
 0x192   : > { %v1316_v31 = vpack.c.bf16 %v1274_v24, %v1274_v24  ;;  %v816_v35 = vpop.f32.mrb[72].mxu0 }
 0x193   : > { %v817_v36 = vadd.f32 %v6272_v54, %v816_v35  ;;  %v5229_v37 = vpop.f32.mrb[73].mxu0  ;;  %v1467_v40 = vrot.slane %v1465_v25, 1 }
 0x194   : > { %v1470_v45 = vshll.u32 %v1316_v31, 16  ;;  %v1617_v46 = vrot.slane %v1316_v31, 1  ;;  %v819_v48 = vpop.f32.mrb[74].mxu0 }
 0x195   : > { %v923_v51 = vmax.f32 %v817_v36, 0.0  ;;  %v820_v52 = vadd.f32 %v6272_v54, %v819_v48  ;;  %v5230_v56 = vpop.f32.mrb[75].mxu0  ;;  %v1468_v58 = vor.u32 %v1467_v40, %v1463_v39 }
 0x196   : > { %v1472_v61 = vrot.slane %v1470_v45, 1  ;;  %v6546_v63 = vsel %vm1582_vm4, %v1616_v49, %v1617_v46 }
 0x197   : > { %v1275_v0 = vsel %vm1017_vm2, %v923_v51, 0.0  ;;  %v924_v3 = vmax.f32 %v820_v52, 0.0  ;;  %5372 = vmatmul.mubr.msk.bf16.gmra.mrb[20].mxu1 %vm1678_vm1, %v6546_v63 }
 0x198   : > { %v6553_v6 = vsel %vm1329_vm5, %v1468_v58, %v1472_v61 }
 0x199   : > { %v6555_v9 = vpack.c.bf16 %v924_v3, %v1275_v0  ;;  %5292 = vmatmul.mubr.msk.bf16.gmra.mrb[128].mxu0 %vm1678_vm1, %v6553_v6 }
 0x19a   : > { %v824_v10 = vpop.f32.mrb[76].mxu0 }
 0x19b   : > { %v825_v12 = vadd.f32 %v6272_v54, %v824_v10  ;;  %v5233_v13 = vpop.f32.mrb[77].mxu0  ;;  %v1477_v24 = vshll.u32 %v6555_v9, 16  ;;  %v1619_v40 = vrot.slane %v6555_v9, 1  ;;  %v1475_v51 = vshrl.u32 %v6555_v9, 16 }
 0x19c   : > { %v827_v22 = vpop.f32.mrb[78].mxu0 }
 0x19d   : > { %v925_v25 = vmax.f32 %v825_v12, 0.0  ;;  %v5234_v31 = vpop.f32.mrb[79].mxu0  ;;  %v828_v35 = vadd.f32 %v6272_v54, %v827_v22  ;;  %v1479_v39 = vrot.slane %v1477_v24, 1 }
 0x19f   : > { %v1277_v36 = vsel %vm1076_vm3, %v925_v25, 0.0  ;;  %v926_v48 = vmax.f32 %v828_v35, 0.0  ;;  %v1480_v3 = vor.u32 %v1479_v39, %v1475_v51 }
 0x1a0   : > { %v1318_v37 = vpack.c.bf16 %v1277_v36, %v1277_v36 }
 0x1a1   : > { %v1278_v22 = vsel %vm1017_vm2, %v926_v48, 0.0 }
 0x1a2   : > { %v1482_v45 = vshll.u32 %v1318_v37, 16  ;;  %v1620_v46 = vrot.slane %v1318_v37, 1  ;;  %v832_v49 = vpop.f32.mrb[80].mxu0 }
 0x1a3   : > { %v833_v52 = vadd.f32 %v6272_v54, %v832_v49  ;;  %v5237_v56 = vpop.f32.mrb[81].mxu0 }
 0x1a4   : > { %v1484_v58 = vrot.slane %v1482_v45, 1  ;;  %v835_v61 = vpop.f32.mrb[82].mxu0  ;;  %v6568_v0 = vsel %vm1582_vm4, %v1619_v40, %v1620_v46 }
 0x1a5   : > { %v927_v10 = vmax.f32 %v833_v52, 0.0  ;;  %v836_v12 = vadd.f32 %v6272_v54, %v835_v61  ;;  %v5238_v13 = vpop.f32.mrb[83].mxu0  ;;  %5375 = vmatprep.mubr.msk.bf16.mxu1 %vm1678_vm1, %v6568_v0 }
 0x1a6   : > { %v6576_v24 = vsel %vm1329_vm5, %v1480_v3, %v1484_v58 }
 0x1a7   : > { %v6578_v25 = vpack.c.bf16 %v927_v10, %v1278_v22  ;;  %v928_v31 = vmax.f32 %v836_v12, 0.0  ;;  %5295 = vmatprep.mubr.msk.bf16.mxu0 %vm1678_vm1, %v6576_v24 }
 0x1a9   : > { %v1280_v35 = vsel %vm1076_vm3, %v928_v31, 0.0  ;;  %v1489_v36 = vshll.u32 %v6578_v25, 16  ;;  %v1487_v46 = vshrl.u32 %v6578_v25, 16  ;;  %v1622_v56 = vrot.slane %v6578_v25, 1 }
 0x1aa   : > { %v1320_v37 = vpack.c.bf16 %v1280_v35, %v1280_v35  ;;  %v840_v39 = vpop.f32.mrb[84].mxu0 }
 0x1ab   : > { %v841_v40 = vadd.f32 %v6272_v54, %v840_v39  ;;  %v5241_v45 = vpop.f32.mrb[85].mxu0  ;;  %v1491_v48 = vrot.slane %v1489_v36, 1 }
 0x1ac   : > { %v1494_v49 = vshll.u32 %v1320_v37, 16  ;;  %v1623_v51 = vrot.slane %v1320_v37, 1  ;;  %v843_v52 = vpop.f32.mrb[86].mxu0 }
 0x1ad   : > { %v929_v58 = vmax.f32 %v841_v40, 0.0  ;;  %v844_v61 = vadd.f32 %v6272_v54, %v843_v52  ;;  %v5242_v3 = vpop.f32.mrb[87].mxu0  ;;  %v1492_v10 = vor.u32 %v1491_v48, %v1487_v46 }
 0x1ae   : > { %v1496_v12 = vrot.slane %v1494_v49, 1  ;;  %v6590_v13 = vsel %vm1582_vm4, %v1622_v56, %v1623_v51 }
 0x1af   : > { %v1281_v22 = vsel %vm1017_vm2, %v929_v58, 0.0  ;;  %v930_v31 = vmax.f32 %v844_v61, 0.0  ;;  %5376 = vmatmul.mubr.msk.bf16.gmra.mrb[24].mxu1 %vm1678_vm1, %v6590_v13 }
 0x1b0   : > { %v6597_v35 = vsel %vm1329_vm5, %v1492_v10, %v1496_v12 }
 0x1b1   : > { %v6599_v36 = vpack.c.bf16 %v930_v31, %v1281_v22  ;;  %5296 = vmatmul.mubr.msk.bf16.gmra.mrb[132].mxu0 %vm1678_vm1, %v6597_v35 }
 0x1b2   : > { %v848_v37 = vpop.f32.mrb[88].mxu0 }
 0x1b3   : > { %v849_v39 = vadd.f32 %v6272_v54, %v848_v37  ;;  %v5245_v40 = vpop.f32.mrb[89].mxu0  ;;  %v1501_v46 = vshll.u32 %v6599_v36, 16  ;;  %v1625_v61 = vrot.slane %v6599_v36, 1  ;;  %v1499_v31 = vshrl.u32 %v6599_v36, 16 }
 0x1b4   : > { %v851_v45 = vpop.f32.mrb[90].mxu0 }
 0x1b5   : > { %v931_v48 = vmax.f32 %v849_v39, 0.0  ;;  %v5246_v49 = vpop.f32.mrb[91].mxu0  ;;  %v852_v51 = vadd.f32 %v6272_v54, %v851_v45  ;;  %v1503_v58 = vrot.slane %v1501_v46, 1 }
 0x1b7   : > { %v1283_v52 = vsel %vm1076_vm3, %v931_v48, 0.0  ;;  %v932_v12 = vmax.f32 %v852_v51, 0.0  ;;  %v1504_v32 = vor.u32 %v1503_v58, %v1499_v31 }
 0x1b8   : > { %v1322_v56 = vpack.c.bf16 %v1283_v52, %v1283_v52 }
 0x1b9   : > { %v1284_v51 = vsel %vm1017_vm2, %v932_v12, 0.0 }
 0x1ba   : > { %v1506_v3 = vshll.u32 %v1322_v56, 16  ;;  %v1626_v10 = vrot.slane %v1322_v56, 1  ;;  %v856_v22 = vpop.f32.mrb[92].mxu0 }
 0x1bb   : > { %v857_v37 = vadd.f32 %v6272_v54, %v856_v22  ;;  %v5249_v40 = vpop.f32.mrb[93].mxu0 }
 0x1bc   : > { %v1508_v39 = vrot.slane %v1506_v3, 1  ;;  %v859_v49 = vpop.f32.mrb[94].mxu0  ;;  %v6612_v45 = vsel %vm1582_vm4, %v1625_v61, %v1626_v10 }
 0x1bd   : > { %v933_v48 = vmax.f32 %v857_v37, 0.0  ;;  %v860_v46 = vadd.f32 %v6272_v54, %v859_v49  ;;  %v5250_v52 = vpop.f32.mrb[95].mxu0  ;;  %5379 = vmatprep.mubr.msk.bf16.mxu1 %vm1678_vm1, %v6612_v45 }
 0x1be   : > { %v6620_v56 = vsel %vm1329_vm5, %v1504_v32, %v1508_v39 }
 0x1bf   : > { %v6622_v22 = vpack.c.bf16 %v933_v48, %v1284_v51  ;;  %v934_v3 = vmax.f32 %v860_v46, 0.0  ;;  %5299 = vmatprep.mubr.msk.bf16.mxu0 %vm1678_vm1, %v6620_v56 }
 0x1c1   : > { %v1286_v58 = vsel %vm1076_vm3, %v934_v3, 0.0  ;;  %v1513_v61 = vshll.u32 %v6622_v22, 16  ;;  %v1511_v37 = vshrl.u32 %v6622_v22, 16  ;;  %v1628_v48 = vrot.slane %v6622_v22, 1 }
 0x1c2   : > { %v1324_v10 = vpack.c.bf16 %v1286_v58, %v1286_v58  ;;  %v864_v31 = vpop.f32.mrb[96].mxu0 }
 0x1c3   : > { %v1515_v40 = vrot.slane %v1513_v61, 1  ;;  %v865_v12 = vadd.f32 %v6272_v54, %v864_v31  ;;  %v5253_v32 = vpop.f32.mrb[97].mxu0 }
 0x1c4   : > { %v1518_v39 = vshll.u32 %v1324_v10, 16  ;;  %v1629_v49 = vrot.slane %v1324_v10, 1  ;;  %v867_v46 = vpop.f32.mrb[98].mxu0 }
 0x1c5   : > { %v1516_v52 = vor.u32 %v1515_v40, %v1511_v37  ;;  %v935_v51 = vmax.f32 %v865_v12, 0.0  ;;  %v868_v33 = vadd.f32 %v6272_v54, %v867_v46  ;;  %v5254_v3 = vpop.f32.mrb[99].mxu0  ;;  %v7192_v37 = vmov 0.0|0.0  }
 0x1c6   : > { %v1520_v47 = vrot.slane %v1518_v39, 1  ;;  %v6634_v58 = vsel %vm1582_vm4, %v1628_v48, %v1629_v49  ;;  %v6007_v3 = vld [vmem:[%s7180_s3 + $0xc0] sm:$0xff]  }
 0x1c7   : > { %5380 = vmatmul.mubr.msk.bf16.gmra.mrb[28].mxu1 %vm1678_vm1, %v6634_v58  ;;  %v1287_v61 = vsel %vm1017_vm2, %v935_v51, 0.0  ;;  %v936_v31 = vmax.f32 %v868_v33, 0.0  ;;  %v6000_v33 = vld [vmem:[%s7180_s3 + $0x88] sm:$0xff]   ;;  %v6005_v51 = vld [vmem:[%s7180_s3 + $0xb0] sm:$0xff]  }
 0x1c8   : > { %5391 = vmatprep.mubr.msk.bf16.mxu1 %vm1678_vm1, %v6289_v7  ;;  %v6643_v10 = vsel %vm1329_vm5, %v1516_v52, %v1520_v47  ;;  %v6001_v47 = vld [vmem:[%s7180_s3 + $0x90] sm:$0xff]   ;;  %v6004_v52 = vld [vmem:[%s7180_s3 + $0xa8] sm:$0xff]  }
 0x1c9   : > { %5300 = vmatmul.mubr.msk.bf16.gmra.mrb[136].mxu0 %vm1678_vm1, %v6643_v10  ;;  %v6647_v54 = vpack.c.bf16 %v936_v31, %v1287_v61  ;;  %v6023_v61 = vld [vmem:[%s7179_s2] ss:$0 sm:$0xff] }
 0x1ca   : > { %5311 = vmatprep.mubr.bf16.mxu0 %v7192_v37  ;;  %v6650_v40 = vpop.f32.mrb[100].mxu0 }
 0x1cb   : > { %v5257_v12 = vpop.f32.mrb[101].mxu0  ;;  %v873_v31 = vadd.f32 %v6023_v61, %v6650_v40  ;;  %v6013_v61 = vld [vmem:[%s7180_s3 + $0xf0] sm:$0xff]  }
 0x1cc   : > { %v875_v32 = vpop.f32.mrb[102].mxu0 }
 0x1cd   : > { %v5258_v59 = vpop.f32.mrb[103].mxu0  ;;  %v937_v12 = vmax.f32 %v873_v31, 0.0 }
 0x1ce   : > { %v1525_v59 = vshll.u32 %v6647_v54, 16 }
 0x1cf   : > { %5392 = vmatmul.mubr.msk.bf16.vlgmr.msra.gmra.mrb[0].mxu1 %vm1678_vm1, %v6308_v30  ;;  %v1289_v32 = vsel %vm1076_vm3, %v937_v12, 0.0 }
 0x1d0   : > { %5424 = vmatpush3.bf16.msra.mxu1 %v6406_v14  ;;  %5395 = vmatprep.mubr.msk.bf16.mxu1 %vm1678_vm1, %v6334_v2  ;;  %v6002_v14 = vld [vmem:[%s7180_s3 + $0x98] sm:$0xff]  }
 0x1d1   : > { %5312 = vmatmul.mubr.msk.bf16.vlgmr.msra.gmra.mrb[108].mxu0 %vm1678_vm1, %v6289_v7  ;;  %5425 = vmatprep.subr.bf16.mxu1 %v6000_v33  ;;  %v6003_v7 = vld [vmem:[%s7180_s3 + $0xa0] sm:$0xff]  }
 0x1d2   : > { %5315 = vmatprep.mubr.msk.bf16.mxu0 %vm1678_vm1, %v6308_v30  ;;  %v880_v39 = vpop.f32.mrb[104].mxu0 }
 0x1d3   : > { %v5261_v49 = vpop.f32.mrb[105].mxu0  ;;  %v1527_v39 = vrot.slane %v1525_v59, 1 }
 0x1d4   : > { %5426 = vmatpush3.bf16.msra.mxu1 %v6000_v33  ;;  %v883_v48 = vpop.f32.mrb[106].mxu0  ;;  %v1326_v33 = vpack.c.bf16 %v1289_v32, %v1289_v32 }
 0x1d5   : > { %5427 = vmatprep.subr.bf16.mxu1 %v6001_v47  ;;  %v5262_v46 = vpop.f32.mrb[107].mxu0 }
 0x1d6   : > { %v1530_v40 = vshll.u32 %v1326_v33, 16  ;;  %v6009_v46 = vld [vmem:[%s7180_s3 + $0xd0] sm:$0xff]  }
 0x1d7   : > { %5396 = vmatmul.mubr.msk.bf16.gmra.mrb[4].mxu1 %vm1678_vm1, %v6358_v28 }
 0x1d8   : > { %5399 = vmatprep.mubr.msk.bf16.mxu1 %vm1678_vm1, %v6390_v8  ;;  %5428 = vmatpush3.bf16.msra.mxu1 %v6001_v47  ;;  %v1523_v47 = vshrl.u32 %v6647_v54, 16  ;;  %v1532_v62 = vrot.slane %v1530_v40, 1 }
 0x1d9   : > { %5316 = vmatmul.mubr.msk.bf16.gmra.mrb[112].mxu0 %vm1678_vm1, %v6334_v2  ;;  %5429 = vmatprep.subr.bf16.mxu1 %v6002_v14 }
 0x1da   : > { %5319 = vmatprep.mubr.msk.bf16.mxu0 %vm1678_vm1, %v6358_v28  ;;  %v1528_v49 = vor.u32 %v1527_v39, %v1523_v47 }
 0x1dc   : > { %5430 = vmatpush3.bf16.msra.mxu1 %v6002_v14  ;;  %v6776_v48 = vsel %vm1329_vm5, %v1528_v49, %v1532_v62  ;;  %v6008_v14 = vld [vmem:[%s7180_s3 + $0xc8] sm:$0xff]   ;;  %v6019_v49 = vld [vmem:[%s7182_s5] sm:$0xff]  }
 0x1dd   : > { %5463 = vmatprep.subr.bf16.mxu1 %v6003_v7  ;;  %5623 = vmatprep.subr.bf16.mxu0 %v6019_v49 }
 0x1de   : > { %5624 = vmatpush3.bf16.msra.mxu0 %v6019_v49 }
 0x1df   : > { %5400 = vmatmul.mubr.msk.bf16.gmra.mrb[8].mxu1 %vm1678_vm1, %v6423_v42 }
 0x1e0   : > { %5403 = vmatprep.mubr.msk.bf16.mxu1 %vm1678_vm1, %v6446_v19 }
 0x1e1   : > { %5320 = vmatmul.mubr.msk.bf16.gmra.mrb[116].mxu0 %vm1678_vm1, %v6390_v8 }
 0x1e2   : > { %5323 = vmatprep.mubr.msk.bf16.mxu0 %vm1678_vm1, %v6423_v42 }
 0x1e7   : > { %5404 = vmatmul.mubr.msk.bf16.gmra.mrb[12].mxu1 %vm1678_vm1, %v6467_v55 }
 0x1e8   : > { %5407 = vmatprep.mubr.msk.bf16.mxu1 %vm1678_vm1, %v6490_v44 }
 0x1e9   : > { %5324 = vmatmul.mubr.msk.bf16.gmra.mrb[120].mxu0 %vm1678_vm1, %v6446_v19 }
 0x1ea   : > { %5327 = vmatprep.mubr.msk.bf16.mxu0 %vm1678_vm1, %v6467_v55 }
 0x1ef   : > { %5408 = vmatmul.mubr.msk.bf16.gmra.mrb[16].mxu1 %vm1678_vm1, %v6511_v21 }
 0x1f0   : > { %5411 = vmatprep.mubr.msk.bf16.mxu1 %vm1678_vm1, %v6534_v17 }
 0x1f1   : > { %5328 = vmatmul.mubr.msk.bf16.gmra.mrb[124].mxu0 %vm1678_vm1, %v6490_v44 }
 0x1f2   : > { %5331 = vmatprep.mubr.msk.bf16.mxu0 %vm1678_vm1, %v6511_v21 }
 0x1f7   : > { %5412 = vmatmul.mubr.msk.bf16.gmra.mrb[20].mxu1 %vm1678_vm1, %v6555_v9 }
 0x1f8   : > { %5415 = vmatprep.mubr.msk.bf16.mxu1 %vm1678_vm1, %v6578_v25 }
 0x1f9   : > { %5332 = vmatmul.mubr.msk.bf16.gmra.mrb[128].mxu0 %vm1678_vm1, %v6534_v17 }
 0x1fa   : > { %5335 = vmatprep.mubr.msk.bf16.mxu0 %vm1678_vm1, %v6555_v9 }
 0x1ff   : > { %5416 = vmatmul.mubr.msk.bf16.gmra.mrb[24].mxu1 %vm1678_vm1, %v6599_v36 }
 0x200   : > { %5419 = vmatprep.mubr.msk.bf16.mxu1 %vm1678_vm1, %v6622_v22 }
 0x201   : > { %5336 = vmatmul.mubr.msk.bf16.gmra.mrb[132].mxu0 %vm1678_vm1, %v6578_v25 }
 0x202   : > { %5339 = vmatprep.mubr.msk.bf16.mxu0 %vm1678_vm1, %v6599_v36 }
 0x207   : > { %5420 = vmatmul.mubr.msk.bf16.gmra.mrb[28].mxu1 %vm1678_vm1, %v6647_v54 }
 0x208   : > { %5431 = vmatprep.mubr.msk.bf16.mxu1 %vm1678_vm1, %v6306_v29  ;;  %v6006_v29 = vld [vmem:[%s7180_s3 + $0xb8] sm:$0xff]  }
 0x209   : > { %5340 = vmatmul.mubr.msk.bf16.gmra.mrb[136].mxu0 %vm1678_vm1, %v6622_v22 }
 0x20f   : > { %5432 = vmatmul.mubr.msk.bf16.vlgmr.msra.gmra.mrb[0].mxu1 %vm1678_vm1, %v6332_v1 }
 0x210   : > { %5464 = vmatpush3.bf16.msra.mxu1 %v6003_v7  ;;  %5435 = vmatprep.mubr.msk.bf16.mxu1 %vm1678_vm1, %v6356_v27  ;;  %v6011_v7 = vld [vmem:[%s7180_s3 + $0xe0] sm:$0xff]  }
 0x211   : > { %5465 = vmatprep.subr.bf16.mxu1 %v6004_v52 }
 0x214   : > { %5466 = vmatpush3.bf16.msra.mxu1 %v6004_v52  ;;  %v1632_v52 = vrot.slane %v1326_v33, 1 }
 0x215   : > { %5467 = vmatprep.subr.bf16.mxu1 %v6005_v51 }
 0x217   : > { %5436 = vmatmul.mubr.msk.bf16.gmra.mrb[4].mxu1 %vm1678_vm1, %v6385_v5 }
 0x218   : > { %5439 = vmatprep.mubr.msk.bf16.mxu1 %vm1678_vm1, %v6421_v41  ;;  %5468 = vmatpush3.bf16.msra.mxu1 %v6005_v51  ;;  %v1631_v51 = vrot.slane %v6647_v54, 1 }
 0x219   : > { %5469 = vmatprep.subr.bf16.mxu1 %v6006_v29 }
 0x21c   : > { %5470 = vmatpush3.bf16.msra.mxu1 %v6006_v29  ;;  %v6824_v29 = vsel %vm1582_vm4, %v1631_v51, %v1632_v52  ;;  %v6017_v52 = vld [vmem:[%s7180_s3 + $0x110] sm:$0xff]  }
 0x21d   : > { %5503 = vmatprep.subr.bf16.mxu1 %v6007_v3 }
 0x21f   : > { %5440 = vmatmul.mubr.msk.bf16.gmra.mrb[8].mxu1 %vm1678_vm1, %v6444_v18 }
 0x220   : > { %5443 = vmatprep.mubr.msk.bf16.mxu1 %vm1678_vm1, %v6465_v53 }
 0x227   : > { %5444 = vmatmul.mubr.msk.bf16.gmra.mrb[12].mxu1 %vm1678_vm1, %v6488_v43 }
 0x228   : > { %5447 = vmatprep.mubr.msk.bf16.mxu1 %vm1678_vm1, %v6509_v20 }
 0x22f   : > { %5448 = vmatmul.mubr.msk.bf16.gmra.mrb[16].mxu1 %vm1678_vm1, %v6532_v16 }
 0x230   : > { %5451 = vmatprep.mubr.msk.bf16.mxu1 %vm1678_vm1, %v6553_v6 }
 0x237   : > { %5452 = vmatmul.mubr.msk.bf16.gmra.mrb[20].mxu1 %vm1678_vm1, %v6576_v24 }
 0x238   : > { %5455 = vmatprep.mubr.msk.bf16.mxu1 %vm1678_vm1, %v6597_v35 }
 0x23f   : > { %5456 = vmatmul.mubr.msk.bf16.gmra.mrb[24].mxu1 %vm1678_vm1, %v6620_v56 }
 0x240   : > { %5459 = vmatprep.mubr.msk.bf16.mxu1 %vm1678_vm1, %v6643_v10 }
 0x247   : > { %5460 = vmatmul.mubr.msk.bf16.gmra.mrb[28].mxu1 %vm1678_vm1, %v6776_v48 }
 0x248   : > { %5471 = vmatprep.mubr.msk.bf16.mxu1 %vm1678_vm1, %v6299_v26  ;;  %v6010_v26 = vld [vmem:[%s7180_s3 + $0xd8] sm:$0xff]  }
 0x24f   : > { %5472 = vmatmul.mubr.msk.bf16.vlgmr.msra.gmra.mrb[0].mxu1 %vm1678_vm1, %v6324_v57 }
 0x250   : > { %5504 = vmatpush3.bf16.msra.mxu1 %v6007_v3  ;;  %5475 = vmatprep.mubr.msk.bf16.mxu1 %vm1678_vm1, %v6349_v23  ;;  %v6012_v3 = vld [vmem:[%s7180_s3 + $0xe8] sm:$0xff]  }
 0x251   : > { %5505 = vmatprep.subr.bf16.mxu1 %v6008_v14 }
 0x254   : > { %5506 = vmatpush3.bf16.msra.mxu1 %v6008_v14 }
 0x255   : > { %5507 = vmatprep.subr.bf16.mxu1 %v6009_v46 }
 0x257   : > { %5476 = vmatmul.mubr.msk.bf16.gmra.mrb[4].mxu1 %vm1678_vm1, %v6377_v60 }
 0x258   : > { %5479 = vmatprep.mubr.msk.bf16.mxu1 %vm1678_vm1, %v6414_v38  ;;  %5508 = vmatpush3.bf16.msra.mxu1 %v6009_v46  ;;  %v6016_v46 = vld [vmem:[%s7180_s3 + $0x108] sm:$0xff]  }
 0x259   : > { %5509 = vmatprep.subr.bf16.mxu1 %v6010_v26 }
 0x25c   : > { %5510 = vmatpush3.bf16.msra.mxu1 %v6010_v26 }
 0x25d   : > { %5543 = vmatprep.subr.bf16.mxu1 %v6011_v7 }
 0x25f   : > { %5480 = vmatmul.mubr.msk.bf16.gmra.mrb[8].mxu1 %vm1678_vm1, %v6436_v11 }
 0x260   : > { %5483 = vmatprep.mubr.msk.bf16.mxu1 %vm1678_vm1, %v6458_v50 }
 0x267   : > { %5484 = vmatmul.mubr.msk.bf16.gmra.mrb[12].mxu1 %vm1678_vm1, %v6480_v34 }
 0x268   : > { %5487 = vmatprep.mubr.msk.bf16.mxu1 %vm1678_vm1, %v6502_v15 }
 0x26f   : > { %5488 = vmatmul.mubr.msk.bf16.gmra.mrb[16].mxu1 %vm1678_vm1, %v6524_v4 }
 0x270   : > { %5491 = vmatprep.mubr.msk.bf16.mxu1 %vm1678_vm1, %v6546_v63 }
 0x277   : > { %5492 = vmatmul.mubr.msk.bf16.gmra.mrb[20].mxu1 %vm1678_vm1, %v6568_v0 }
 0x278   : > { %5495 = vmatprep.mubr.msk.bf16.mxu1 %vm1678_vm1, %v6590_v13 }
 0x27f   : > { %5496 = vmatmul.mubr.msk.bf16.gmra.mrb[24].mxu1 %vm1678_vm1, %v6612_v45 }
 0x280   : > { %5499 = vmatprep.mubr.msk.bf16.mxu1 %vm1678_vm1, %v6634_v58 }
 0x287   : > { %5500 = vmatmul.mubr.msk.bf16.gmra.mrb[28].mxu1 %vm1678_vm1, %v6824_v29 }
 0x288   : > { %5511 = vmatprep.mubr.msk.bf16.mxu1 %vm1678_vm1, %v6308_v30  ;;  %v6014_v30 = vld [vmem:[%s7180_s3 + $0xf8] sm:$0xff]  }
 0x28f   : > { %5512 = vmatmul.mubr.msk.bf16.vlgmr.msra.gmra.mrb[0].mxu1 %vm1678_vm1, %v6334_v2  ;;  %v6015_v2 = vld [vmem:[%s7180_s3 + $0x100] sm:$0xff]  }
 0x290   : > { %5544 = vmatpush3.bf16.msra.mxu1 %v6011_v7  ;;  %5515 = vmatprep.mubr.msk.bf16.mxu1 %vm1678_vm1, %v6358_v28 }
 0x291   : > { %5545 = vmatprep.subr.bf16.mxu1 %v6012_v3 }
 0x294   : > { %5546 = vmatpush3.bf16.msra.mxu1 %v6012_v3  ;;  %v6018_v3 = vld [vmem:[%s7180_s3 + $0x118] sm:$0xff]  }
 0x295   : > { %5547 = vmatprep.subr.bf16.mxu1 %v6013_v61 }
 0x297   : > { %5516 = vmatmul.mubr.msk.bf16.gmra.mrb[4].mxu1 %vm1678_vm1, %v6390_v8 }
 0x298   : > { %5519 = vmatprep.mubr.msk.bf16.mxu1 %vm1678_vm1, %v6423_v42  ;;  %5548 = vmatpush3.bf16.msra.mxu1 %v6013_v61 }
 0x299   : > { %5549 = vmatprep.subr.bf16.mxu1 %v6014_v30 }
 0x29c   : > { %5550 = vmatpush3.bf16.msra.mxu1 %v6014_v30 }
 0x29d   : > { %5583 = vmatprep.subr.bf16.mxu1 %v6015_v2 }
 0x29f   : > { %5520 = vmatmul.mubr.msk.bf16.gmra.mrb[8].mxu1 %vm1678_vm1, %v6446_v19 }
 0x2a0   : > { %5523 = vmatprep.mubr.msk.bf16.mxu1 %vm1678_vm1, %v6467_v55 }
 0x2a4   : > { %v6854_v28 = vpop.f32.mrb[108].mxu0 }
 0x2a5   : > { %v6856_v8 = vpop.f32.mrb[109].mxu0 }
 0x2a6   : > { %v6858_v31 = vpop.f32.mrb[110].mxu0 }
 0x2a7   : > { %v6860_v42 = vpop.f32.mrb[111].mxu0  ;;  %5524 = vmatmul.mubr.msk.bf16.gmra.mrb[12].mxu1 %vm1678_vm1, %v6490_v44 }
 0x2a8   : > { %5527 = vmatprep.mubr.msk.bf16.mxu1 %vm1678_vm1, %v6511_v21 }
 0x2ac   : > { %v6866_v12 = vpop.f32.mrb[112].mxu0 }
 0x2ad   : > { %v6868_v19 = vpop.f32.mrb[113].mxu0 }
 0x2ae   : > { %v6870_v32 = vpop.f32.mrb[114].mxu0 }
 0x2af   : > { %v6872_v55 = vpop.f32.mrb[115].mxu0  ;;  %5528 = vmatmul.mubr.msk.bf16.gmra.mrb[16].mxu1 %vm1678_vm1, %v6534_v17 }
 0x2b0   : > { %5531 = vmatprep.mubr.msk.bf16.mxu1 %vm1678_vm1, %v6555_v9 }
 0x2b4   : > { %v6878_v33 = vpop.f32.mrb[116].mxu0 }
 0x2b5   : > { %v6880_v44 = vpop.f32.mrb[117].mxu0 }
 0x2b6   : > { %v6882_v59 = vpop.f32.mrb[118].mxu0 }
 0x2b7   : > { %v6884_v21 = vpop.f32.mrb[119].mxu0  ;;  %5532 = vmatmul.mubr.msk.bf16.gmra.mrb[20].mxu1 %vm1678_vm1, %v6578_v25 }
 0x2b8   : > { %5535 = vmatprep.mubr.msk.bf16.mxu1 %vm1678_vm1, %v6599_v36 }
 0x2bc   : > { %v6890_v40 = vpop.f32.mrb[120].mxu0 }
 0x2bd   : > { %v6892_v17 = vpop.f32.mrb[121].mxu0 }
 0x2be   : > { %v6894_v47 = vpop.f32.mrb[122].mxu0 }
 0x2bf   : > { %v6896_v9 = vpop.f32.mrb[123].mxu0  ;;  %5536 = vmatmul.mubr.msk.bf16.gmra.mrb[24].mxu1 %vm1678_vm1, %v6622_v22  ;;  %v6020_v22 = vld [vmem:[%s7182_s5 + $0x8] sm:$0xff]  }
 0x2c0   : > { %5539 = vmatprep.mubr.msk.bf16.mxu1 %vm1678_vm1, %v6647_v54  ;;  %5625 = vmatprep.subr.bf16.mxu0 %v6020_v22  ;;  %v6021_v54 = vld [vmem:[%s7182_s5 + $0x10] sm:$0xff]  }
 0x2c1   : > { %5626 = vmatpush3.bf16.msra.mxu0 %v6020_v22 }
 0x2c2   : > { %5627 = vmatprep.subr.bf16.mxu0 %v6021_v54 }
 0x2c4   : > { %v6902_v39 = vpop.f32.mrb[124].mxu0 }
 0x2c5   : > { %v6904_v25 = vpop.f32.mrb[125].mxu0  ;;  %5628 = vmatpush3.bf16.msra.mxu0 %v6021_v54 }
 0x2c6   : > { %v6906_v62 = vpop.f32.mrb[126].mxu0 }
 0x2c7   : > { %v6908_v36 = vpop.f32.mrb[127].mxu0  ;;  %5540 = vmatmul.mubr.bf16.gmra.mrb[28].mxu1 %v7192_v37 }
 0x2c8   : > { %5551 = vmatprep.mubr.msk.bf16.mxu1 %vm1678_vm1, %v6332_v1  ;;  %v6022_v1 = vld [vmem:[%s7182_s5 + $0x18] sm:$0xff]  }
 0x2c9   : > { %5629 = vmatprep.subr.bf16.mxu0 %v6022_v1 }
 0x2ca   : > { %5630 = vmatpush3.bf16.msra.mxu0 %v6022_v1 }
 0x2cc   : > { %v6922_v14 = vpop.f32.mrb[128].mxu0 }
 0x2cd   : > { %v6924_v37 = vpop.f32.mrb[129].mxu0 }
 0x2ce   : > { %v6929_v26 = vpop.f32.mrb[130].mxu0 }
 0x2cf   : > { %v6931_v7 = vpop.f32.mrb[131].mxu0  ;;  %5552 = vmatmul.mubr.msk.bf16.vlgmr.msra.gmra.mrb[0].mxu1 %vm1678_vm1, %v6356_v27 }
 0x2d0   : > { %5584 = vmatpush3.bf16.msra.mxu1 %v6015_v2  ;;  %5555 = vmatprep.mubr.msk.bf16.mxu1 %vm1678_vm1, %v6385_v5 }
 0x2d1   : > { %5585 = vmatprep.subr.bf16.mxu1 %v6016_v46 }
 0x2d4   : > { %v6943_v51 = vpop.f32.mrb[132].mxu0  ;;  %5586 = vmatpush3.bf16.msra.mxu1 %v6016_v46 }
 0x2d5   : > { %v6945_v27 = vpop.f32.mrb[133].mxu0  ;;  %5587 = vmatprep.subr.bf16.mxu1 %v6017_v52 }
 0x2d6   : > { %v6950_v61 = vpop.f32.mrb[134].mxu0 }
 0x2d7   : > { %v6952_v5 = vpop.f32.mrb[135].mxu0  ;;  %5556 = vmatmul.mubr.msk.bf16.gmra.mrb[4].mxu1 %vm1678_vm1, %v6421_v41  ;;  %v7193_v41 = vld [vmem:[#allocation3_spill] sm:$0xff] }
 0x2d8   : > { %5559 = vmatprep.mubr.msk.bf16.mxu1 %vm1678_vm1, %v6444_v18  ;;  %5588 = vmatpush3.bf16.msra.mxu1 %v6017_v52 }
 0x2d9   : > { %5589 = vmatprep.subr.bf16.mxu1 %v6018_v3 }
 0x2dc   : > { %v6958_v30 = vpop.f32.mrb[136].mxu0  ;;  %5590 = vmatpush3.bf16.msra.mxu1 %v6018_v3 }
 0x2dd   : > { %v6960_v2 = vpop.f32.mrb[137].mxu0 }
 0x2de   : > { %v6962_v49 = vpop.f32.mrb[138].mxu0 }
 0x2df   : > { %v6964_v22 = vpop.f32.mrb[139].mxu0  ;;  %5560 = vmatmul.mubr.msk.bf16.gmra.mrb[8].mxu1 %vm1678_vm1, %v6465_v53 }
 0x2e0   : > { %5563 = vmatprep.mubr.msk.bf16.mxu1 %vm1678_vm1, %v6488_v43 }
 0x2e7   : > { %5564 = vmatmul.mubr.msk.bf16.gmra.mrb[12].mxu1 %vm1678_vm1, %v6509_v20 }
 0x2e8   : > { %5567 = vmatprep.mubr.msk.bf16.mxu1 %vm1678_vm1, %v6532_v16 }
 0x2ef   : > { %5568 = vmatmul.mubr.msk.bf16.gmra.mrb[16].mxu1 %vm1678_vm1, %v6553_v6 }
 0x2f0   : > { %5571 = vmatprep.mubr.msk.bf16.mxu1 %vm1678_vm1, %v6576_v24 }
 0x2f7   : > { %5572 = vmatmul.mubr.msk.bf16.gmra.mrb[20].mxu1 %vm1678_vm1, %v6597_v35 }
 0x2f8   : > { %5575 = vmatprep.mubr.msk.bf16.mxu1 %vm1678_vm1, %v6620_v56 }
 0x2ff   : > { %5576 = vmatmul.mubr.msk.bf16.gmra.mrb[24].mxu1 %vm1678_vm1, %v6643_v10 }
 0x300   : > { %5579 = vmatprep.mubr.msk.bf16.mxu1 %vm1678_vm1, %v6776_v48 }
 0x307   : > { %5580 = vmatmul.mubr.msk.bf16.gmra.mrb[28].mxu1 %vm1678_vm1, %v7193_v41 }
 0x308   : > { %5591 = vmatprep.mubr.msk.bf16.mxu1 %vm1678_vm1, %v6324_v57  ;;  %v7194_v57 = vld [vmem:[#allocation2_spill] sm:$0xff] }
 0x30f   : > { %5592 = vmatmul.mubr.msk.bf16.vlgmr.msra.gmra.mrb[0].mxu1 %vm1678_vm1, %v6349_v23 }
 0x310   : > { %5595 = vmatprep.mubr.msk.bf16.mxu1 %vm1678_vm1, %v6377_v60  ;;  %v7023_v60 = vld [vmem:[%s7181_s4] ss:$0 sm:$0xff] }
 0x317   : > { %5596 = vmatmul.mubr.msk.bf16.gmra.mrb[4].mxu1 %vm1678_vm1, %v6414_v38 }
 0x318   : > { %5599 = vmatprep.mubr.msk.bf16.mxu1 %vm1678_vm1, %v6436_v11 }
 0x31f   : > { %5600 = vmatmul.mubr.msk.bf16.gmra.mrb[8].mxu1 %vm1678_vm1, %v6458_v50 }
 0x320   : > { %5603 = vmatprep.mubr.msk.bf16.mxu1 %vm1678_vm1, %v6480_v34 }
 0x327   : > { %5604 = vmatmul.mubr.msk.bf16.gmra.mrb[12].mxu1 %vm1678_vm1, %v6502_v15 }
 0x328   : > { %5607 = vmatprep.mubr.msk.bf16.mxu1 %vm1678_vm1, %v6524_v4 }
 0x32f   : > { %5608 = vmatmul.mubr.msk.bf16.gmra.mrb[16].mxu1 %vm1678_vm1, %v6546_v63 }
 0x330   : > { %5611 = vmatprep.mubr.msk.bf16.mxu1 %vm1678_vm1, %v6568_v0 }
 0x337   : > { %5612 = vmatmul.mubr.msk.bf16.gmra.mrb[20].mxu1 %vm1678_vm1, %v6590_v13 }
 0x338   : > { %5615 = vmatprep.mubr.msk.bf16.mxu1 %vm1678_vm1, %v6612_v45 }
 0x33f   : > { %5616 = vmatmul.mubr.msk.bf16.gmra.mrb[24].mxu1 %vm1678_vm1, %v6634_v58 }
 0x340   : > { %5619 = vmatprep.mubr.msk.bf16.mxu1 %vm1678_vm1, %v6824_v29 }
 0x347   : > { %5620 = vmatmul.mubr.msk.bf16.gmra.mrb[28].mxu1 %vm1678_vm1, %v7194_v57 }
 0x3e2   : > { %v5593_v23 = vpop.f32.mrb[0].mxu1 }
 0x3e3   : > { %v5663_v38 = vadd.f32 %v5593_v23, %v6854_v28  ;;  %v3592_v11 = vpop.f32.mrb[1].mxu1 }
 0x3e4   : > { %v5664_v18 = vadd.f32 %v3592_v11, %v6856_v8  ;;  %v5594_v50 = vpop.f32.mrb[2].mxu1 }
 0x3e5   : > { %v3760_v53 = vadd.f32 %v5663_v38, %v7023_v60  ;;  %v5665_v34 = vadd.f32 %v5594_v50, %v6858_v31  ;;  %v3595_v43 = vpop.f32.mrb[3].mxu1 }
 0x3e6   : > { %v3758_v15 = vadd.f32 %v5664_v18, %v7023_v60  ;;  %v5666_v20 = vadd.f32 %v3595_v43, %v6860_v42 }
 0x3e7   : > { %v3761_v4 = vadd.f32 %v5665_v34, %v7023_v60  ;;  %v3792_v63 = vmax.f32 %v3760_v53, 0.0 }
 0x3e8   : > { %v3759_v16 = vadd.f32 %v5666_v20, %v7023_v60  ;;  %v3790_v0 = vmax.f32 %v3758_v15, 0.0 }
 0x3e9   : > { %v3793_v6 = vmax.f32 %v3761_v4, 0.0 }
 0x3ea   : > { %v3791_v24 = vmax.f32 %v3759_v16, 0.0  ;;  %v5597_v13 = vpop.f32.mrb[4].mxu1 }
 0x3eb   : > { %v3823_v35 = vpack.c.bf16 %v3793_v6, %v3792_v63  ;;  %v5667_v45 = vadd.f32 %v5597_v13, %v6866_v12  ;;  %v3608_v56 = vpop.f32.mrb[5].mxu1 }
 0x3ec   : > { %v3822_v58 = vpack.c.bf16 %v3791_v24, %v3790_v0  ;;  %v5668_v10 = vadd.f32 %v3608_v56, %v6868_v19  ;;  %v5598_v48 = vpop.f32.mrb[6].mxu1 }
 0x3ed   : > { %v3764_v29 = vadd.f32 %v5667_v45, %v7023_v60  ;;  %v5669_v28 = vadd.f32 %v5598_v48, %v6870_v32  ;;  %v3611_v8 = vpop.f32.mrb[7].mxu1 }
 0x3ee   : > { %v3762_v31 = vadd.f32 %v5668_v10, %v7023_v60  ;;  %v5670_v42 = vadd.f32 %v3611_v8, %v6872_v55  ;;  %5631 = vmatprep.mubr.msk.bf16.mxu0 %vm1678_vm1, %v3822_v58 }
 0x3ef   : > { %v3765_v54 = vadd.f32 %v5669_v28, %v7023_v60  ;;  %5632 = vmatmul.mubr.msk.bf16.vlgmr.msra.gmra.mrb[140].mxu0 %vm1678_vm1, %v3823_v35  ;;  %v3796_v46 = vmax.f32 %v3764_v29, 0.0 }
 0x3f0   : > { %v3763_v12 = vadd.f32 %v5670_v42, %v7023_v60  ;;  %v3794_v1 = vmax.f32 %v3762_v31, 0.0 }
 0x3f1   : > { %v3797_v19 = vmax.f32 %v3765_v54, 0.0 }
 0x3f2   : > { %v3795_v52 = vmax.f32 %v3763_v12, 0.0  ;;  %v5601_v3 = vpop.f32.mrb[8].mxu1 }
 0x3f3   : > { %v3825_v41 = vpack.c.bf16 %v3797_v19, %v3796_v46  ;;  %v5671_v32 = vadd.f32 %v5601_v3, %v6878_v33  ;;  %v3624_v57 = vpop.f32.mrb[9].mxu1 }
 0x3f4   : > { %v3824_v23 = vpack.c.bf16 %v3795_v52, %v3794_v1  ;;  %v5672_v55 = vadd.f32 %v3624_v57, %v6880_v44  ;;  %v5602_v38 = vpop.f32.mrb[10].mxu1 }
 0x3f5   : > { %v3768_v11 = vadd.f32 %v5671_v32, %v7023_v60  ;;  %v5673_v18 = vadd.f32 %v5602_v38, %v6882_v59  ;;  %v3627_v50 = vpop.f32.mrb[11].mxu1 }
 0x3f6   : > { %v3766_v53 = vadd.f32 %v5672_v55, %v7023_v60  ;;  %v5674_v34 = vadd.f32 %v3627_v50, %v6884_v21  ;;  %5635 = vmatprep.mubr.msk.bf16.mxu0 %vm1678_vm1, %v3824_v23 }
 0x3f7   : > { %v3769_v43 = vadd.f32 %v5673_v18, %v7023_v60  ;;  %5636 = vmatmul.mubr.msk.bf16.gmra.mrb[144].mxu0 %vm1678_vm1, %v3825_v41  ;;  %v3800_v15 = vmax.f32 %v3768_v11, 0.0 }
 0x3f8   : > { %v3767_v33 = vadd.f32 %v5674_v34, %v7023_v60  ;;  %v3798_v20 = vmax.f32 %v3766_v53, 0.0 }
 0x3f9   : > { %v3801_v44 = vmax.f32 %v3769_v43, 0.0 }
 0x3fa   : > { %v3799_v4 = vmax.f32 %v3767_v33, 0.0  ;;  %v5605_v16 = vpop.f32.mrb[12].mxu1 }
 0x3fb   : > { %v3827_v63 = vpack.c.bf16 %v3801_v44, %v3800_v15  ;;  %v5675_v59 = vadd.f32 %v5605_v16, %v6890_v40  ;;  %v3640_v6 = vpop.f32.mrb[13].mxu1 }
 0x3fc   : > { %v3826_v0 = vpack.c.bf16 %v3799_v4, %v3798_v20  ;;  %v5676_v21 = vadd.f32 %v3640_v6, %v6892_v17  ;;  %v5606_v24 = vpop.f32.mrb[14].mxu1 }
 0x3fd   : > { %v3772_v13 = vadd.f32 %v5675_v59, %v7023_v60  ;;  %v5677_v35 = vadd.f32 %v5606_v24, %v6894_v47  ;;  %v3643_v45 = vpop.f32.mrb[15].mxu1 }
 0x3fe   : > { %v3770_v56 = vadd.f32 %v5676_v21, %v7023_v60  ;;  %v5678_v58 = vadd.f32 %v3643_v45, %v6896_v9  ;;  %5639 = vmatprep.mubr.msk.bf16.mxu0 %vm1678_vm1, %v3826_v0 }
 0x3ff   : > { %v3773_v10 = vadd.f32 %v5677_v35, %v7023_v60  ;;  %5640 = vmatmul.mubr.msk.bf16.gmra.mrb[148].mxu0 %vm1678_vm1, %v3827_v63  ;;  %v3804_v48 = vmax.f32 %v3772_v13, 0.0 }
 0x400   : > { %v3771_v40 = vadd.f32 %v5678_v58, %v7023_v60  ;;  %v3802_v29 = vmax.f32 %v3770_v56, 0.0 }
 0x401   : > { %v3805_v17 = vmax.f32 %v3773_v10, 0.0 }
 0x402   : > { %v3803_v28 = vmax.f32 %v3771_v40, 0.0  ;;  %v5609_v8 = vpop.f32.mrb[16].mxu1 }
 0x403   : > { %v3829_v31 = vpack.c.bf16 %v3805_v17, %v3804_v48  ;;  %v5679_v47 = vadd.f32 %v5609_v8, %v6902_v39  ;;  %v3656_v42 = vpop.f32.mrb[17].mxu1 }
 0x404   : > { %v3828_v54 = vpack.c.bf16 %v3803_v28, %v3802_v29  ;;  %v5680_v9 = vadd.f32 %v3656_v42, %v6904_v25  ;;  %v5610_v12 = vpop.f32.mrb[18].mxu1 }
 0x405   : > { %v3776_v46 = vadd.f32 %v5679_v47, %v7023_v60  ;;  %v5681_v19 = vadd.f32 %v5610_v12, %v6906_v62  ;;  %v3659_v1 = vpop.f32.mrb[19].mxu1 }
 0x406   : > { %v3774_v52 = vadd.f32 %v5680_v9, %v7023_v60  ;;  %v5682_v3 = vadd.f32 %v3659_v1, %v6908_v36  ;;  %5643 = vmatprep.mubr.msk.bf16.mxu0 %vm1678_vm1, %v3828_v54 }
 0x407   : > { %v3777_v41 = vadd.f32 %v5681_v19, %v7023_v60  ;;  %5644 = vmatmul.mubr.msk.bf16.gmra.mrb[152].mxu0 %vm1678_vm1, %v3829_v31  ;;  %v3808_v32 = vmax.f32 %v3776_v46, 0.0 }
 0x408   : > { %v3775_v39 = vadd.f32 %v5682_v3, %v7023_v60  ;;  %v3806_v57 = vmax.f32 %v3774_v52, 0.0 }
 0x409   : > { %v3809_v25 = vmax.f32 %v3777_v41, 0.0 }
 0x40a   : > { %v3807_v23 = vmax.f32 %v3775_v39, 0.0  ;;  %v5613_v55 = vpop.f32.mrb[20].mxu1 }
 0x40b   : > { %v3831_v38 = vpack.c.bf16 %v3809_v25, %v3808_v32  ;;  %v5683_v62 = vadd.f32 %v5613_v55, %v6922_v14  ;;  %v3672_v11 = vpop.f32.mrb[21].mxu1 }
 0x40c   : > { %v3830_v18 = vpack.c.bf16 %v3807_v23, %v3806_v57  ;;  %v5684_v36 = vadd.f32 %v3672_v11, %v6924_v37  ;;  %v5614_v50 = vpop.f32.mrb[22].mxu1 }
 0x40d   : > { %v3780_v53 = vadd.f32 %v5683_v62, %v7023_v60  ;;  %v5685_v34 = vadd.f32 %v5614_v50, %v6929_v26  ;;  %v3675_v43 = vpop.f32.mrb[23].mxu1 }
 0x40e   : > { %v3778_v33 = vadd.f32 %v5684_v36, %v7023_v60  ;;  %v5686_v15 = vadd.f32 %v3675_v43, %v6931_v7  ;;  %5647 = vmatprep.mubr.msk.bf16.mxu0 %vm1678_vm1, %v3830_v18 }
 0x40f   : > { %v3781_v44 = vadd.f32 %v5685_v34, %v7023_v60  ;;  %5648 = vmatmul.mubr.msk.bf16.gmra.mrb[156].mxu0 %vm1678_vm1, %v3831_v38  ;;  %v3812_v20 = vmax.f32 %v3780_v53, 0.0 }
 0x410   : > { %v3779_v14 = vadd.f32 %v5686_v15, %v7023_v60  ;;  %v3810_v4 = vmax.f32 %v3778_v33, 0.0 }
 0x411   : > { %v3813_v37 = vmax.f32 %v3781_v44, 0.0 }
 0x412   : > { %v3811_v16 = vmax.f32 %v3779_v14, 0.0  ;;  %v5617_v63 = vpop.f32.mrb[24].mxu1 }
 0x413   : > { %v3833_v59 = vpack.c.bf16 %v3813_v37, %v3812_v20  ;;  %v5687_v26 = vadd.f32 %v5617_v63, %v6943_v51  ;;  %v3688_v6 = vpop.f32.mrb[25].mxu1 }
 0x414   : > { %v3832_v0 = vpack.c.bf16 %v3811_v16, %v3810_v4  ;;  %v5688_v7 = vadd.f32 %v3688_v6, %v6945_v27  ;;  %v5618_v21 = vpop.f32.mrb[26].mxu1 }
 0x415   : > { %v3784_v24 = vadd.f32 %v5687_v26, %v7023_v60  ;;  %v5689_v13 = vadd.f32 %v5618_v21, %v6950_v61  ;;  %v3691_v35 = vpop.f32.mrb[27].mxu1 }
 0x416   : > { %v3782_v45 = vadd.f32 %v5688_v7, %v7023_v60  ;;  %v5690_v56 = vadd.f32 %v3691_v35, %v6952_v5  ;;  %5651 = vmatprep.mubr.msk.bf16.mxu0 %vm1678_vm1, %v3832_v0 }
 0x417   : > { %v3785_v58 = vadd.f32 %v5689_v13, %v7023_v60  ;;  %5652 = vmatmul.mubr.msk.bf16.gmra.mrb[160].mxu0 %vm1678_vm1, %v3833_v59  ;;  %v3816_v10 = vmax.f32 %v3784_v24, 0.0 }
 0x418   : > { %v3783_v51 = vadd.f32 %v5690_v56, %v7023_v60  ;;  %v3814_v40 = vmax.f32 %v3782_v45, 0.0 }
 0x419   : > { %v3817_v27 = vmax.f32 %v3785_v58, 0.0 }
 0x41a   : > { %v3815_v48 = vmax.f32 %v3783_v51, 0.0  ;;  %v5621_v17 = vpop.f32.mrb[28].mxu1 }
 0x41b   : > { %v3835_v29 = vpack.c.bf16 %v3817_v27, %v3816_v10  ;;  %v5691_v61 = vadd.f32 %v5621_v17, %v6958_v30  ;;  %v3704_v28 = vpop.f32.mrb[29].mxu1 }
 0x41c   : > { %v3834_v8 = vpack.c.bf16 %v3815_v48, %v3814_v40  ;;  %v5692_v5 = vadd.f32 %v3704_v28, %v6960_v2  ;;  %v5622_v31 = vpop.f32.mrb[30].mxu1 }
 0x41d   : > { %v3788_v47 = vadd.f32 %v5691_v61, %v7023_v60  ;;  %v5693_v42 = vadd.f32 %v5622_v31, %v6962_v49  ;;  %v3707_v54 = vpop.f32.mrb[31].mxu1 }
 0x41e   : > { %v3786_v9 = vadd.f32 %v5692_v5, %v7023_v60  ;;  %v5694_v12 = vadd.f32 %v3707_v54, %v6964_v22  ;;  %5655 = vmatprep.mubr.msk.bf16.mxu0 %vm1678_vm1, %v3834_v8  ;;  %v7108_v22 = vld [vmem:[%s7183_s6] ss:$0 sm:$0xff] }
 0x41f   : > { %v3789_v46 = vadd.f32 %v5693_v42, %v7023_v60  ;;  %5656 = vmatmul.mubr.msk.bf16.gmra.mrb[164].mxu0 %vm1678_vm1, %v3835_v29  ;;  %v3820_v2 = vmax.f32 %v3788_v47, 0.0 }
 0x420   : > { %v3787_v30 = vadd.f32 %v5694_v12, %v7023_v60  ;;  %v3818_v1 = vmax.f32 %v3786_v9, 0.0 }
 0x421   : > { %v3821_v19 = vmax.f32 %v3789_v46, 0.0 }
 0x422   : > { %v3819_v52 = vmax.f32 %v3787_v30, 0.0 }
 0x423   : > { %v3837_v3 = vpack.c.bf16 %v3821_v19, %v3820_v2 }
 0x424   : > { %v3836_v49 = vpack.c.bf16 %v3819_v52, %v3818_v1 }
 0x426   : > { %5659 = vmatprep.mubr.msk.bf16.mxu0 %vm1678_vm1, %v3836_v49 }
 0x427   : > { %5660 = vmatmul.mubr.msk.bf16.gmra.mrb[168].mxu0 %vm1678_vm1, %v3837_v3 }
 0x4c2   : > { %v5633_v41 = vpop.f32.mrb[140].mxu0 }
 0x4c3   : > { %v3968_v39 = vadd.f32 %v5633_v41, %v7108_v22  ;;  %v3959_v32 = vpop.f32.mrb[141].mxu0 }
 0x4c4   : > { %v3960_v60 = vadd.f32 %v7108_v22, %v3959_v32  ;;  %v5634_v25 = vpop.f32.mrb[142].mxu0 }
 0x4c5   : > { %v3971_v57 = vadd.f32 %v5634_v25, %v7108_v22  ;;  %v3962_v23 = vpop.f32.mrb[143].mxu0  ;;  %v4088_v38 = vmax.f32 %v3968_v39, 0.0 }
 0x4c6   : > { %v3963_v55 = vadd.f32 %v7108_v22, %v3962_v23  ;;  %v4086_v11 = vmax.f32 %v3960_v60, 0.0 }
 0x4c7   : > { %v4089_v62 = vmax.f32 %v3971_v57, 0.0 }
 0x4c8   : > { %v4087_v18 = vmax.f32 %v3963_v55, 0.0 }
 0x4c9   : > { %v4817_v36 = vpack.c.bf16 %v4089_v62, %v4088_v38 }
 0x4ca   : > { %v4812_v50 = vpack.c.bf16 %v4087_v18, %v4086_v11  ;;  %v4278_v53 = vadd.f32 %v4087_v18, %v4086_v11  ;;  %v5637_v34 = vpop.f32.mrb[144].mxu0 }
 0x4cb   : > { %4889 = vst [vmem:[%s7118_s12 + $0x8] sm:$0xff] %v4817_v36   ;;  %v3984_v43 = vadd.f32 %v5637_v34, %v7108_v22  ;;  %v3975_v33 = vpop.f32.mrb[145].mxu0 }
 0x4cc   : > { %4813 = vst [vmem:[%s7118_s12] sm:$0xff] %v4812_v50   ;;  %v4279_v15 = vadd.f32 %v4278_v53, %v4088_v38  ;;  %v3976_v44 = vadd.f32 %v7108_v22, %v3975_v33  ;;  %v5638_v14 = vpop.f32.mrb[146].mxu0 }
 0x4cd   : > { %v3987_v20 = vadd.f32 %v5638_v14, %v7108_v22  ;;  %v3978_v37 = vpop.f32.mrb[147].mxu0  ;;  %v4092_v59 = vmax.f32 %v3984_v43, 0.0 }
 0x4ce   : > { %v4090_v4 = vmax.f32 %v3976_v44, 0.0  ;;  %v4280_v16 = vadd.f32 %v4279_v15, %v4089_v62  ;;  %v3979_v63 = vadd.f32 %v7108_v22, %v3978_v37 }
 0x4cf   : > { %v4093_v26 = vmax.f32 %v3987_v20, 0.0 }
 0x4d0   : > { %v4281_v6 = vadd.f32 %v4280_v16, %v4090_v4  ;;  %v4091_v0 = vmax.f32 %v3979_v63, 0.0 }
 0x4d1   : > { %v4827_v7 = vpack.c.bf16 %v4093_v26, %v4092_v59 }
 0x4d2   : > { %v4822_v21 = vpack.c.bf16 %v4091_v0, %v4090_v4  ;;  %v4282_v24 = vadd.f32 %v4281_v6, %v4091_v0  ;;  %v5641_v13 = vpop.f32.mrb[148].mxu0 }
 0x4d3   : > { %4891 = vst [vmem:[%s7118_s12 + $0x18] sm:$0xff] %v4827_v7   ;;  %v4000_v35 = vadd.f32 %v5641_v13, %v7108_v22  ;;  %v3991_v45 = vpop.f32.mrb[149].mxu0 }
 0x4d4   : > { %4890 = vst [vmem:[%s7118_s12 + $0x10] sm:$0xff] %v4822_v21   ;;  %v4283_v56 = vadd.f32 %v4282_v24, %v4092_v59  ;;  %v3992_v58 = vadd.f32 %v7108_v22, %v3991_v45  ;;  %v5642_v51 = vpop.f32.mrb[150].mxu0 }
 0x4d5   : > { %v4003_v10 = vadd.f32 %v5642_v51, %v7108_v22  ;;  %v3994_v27 = vpop.f32.mrb[151].mxu0  ;;  %v4096_v29 = vmax.f32 %v4000_v35, 0.0 }
 0x4d6   : > { %v4094_v40 = vmax.f32 %v3992_v58, 0.0  ;;  %v4284_v48 = vadd.f32 %v4283_v56, %v4093_v26  ;;  %v3995_v17 = vadd.f32 %v7108_v22, %v3994_v27 }
 0x4d7   : > { %v4097_v61 = vmax.f32 %v4003_v10, 0.0 }
 0x4d8   : > { %v4285_v28 = vadd.f32 %v4284_v48, %v4094_v40  ;;  %v4095_v8 = vmax.f32 %v3995_v17, 0.0 }
 0x4d9   : > { %v4837_v5 = vpack.c.bf16 %v4097_v61, %v4096_v29 }
 0x4da   : > { %v4832_v31 = vpack.c.bf16 %v4095_v8, %v4094_v40  ;;  %v4286_v47 = vadd.f32 %v4285_v28, %v4095_v8  ;;  %v5645_v42 = vpop.f32.mrb[152].mxu0 }
 0x4db   : > { %4893 = vst [vmem:[%s7118_s12 + $0x28] sm:$0xff] %v4837_v5   ;;  %v4016_v54 = vadd.f32 %v5645_v42, %v7108_v22  ;;  %v4007_v9 = vpop.f32.mrb[153].mxu0 }
 0x4dc   : > { %4892 = vst [vmem:[%s7118_s12 + $0x20] sm:$0xff] %v4832_v31   ;;  %v4287_v12 = vadd.f32 %v4286_v47, %v4096_v29  ;;  %v4008_v46 = vadd.f32 %v7108_v22, %v4007_v9  ;;  %v5646_v30 = vpop.f32.mrb[154].mxu0 }
 0x4dd   : > { %v4019_v2 = vadd.f32 %v5646_v30, %v7108_v22  ;;  %v4010_v19 = vpop.f32.mrb[155].mxu0  ;;  %v4100_v49 = vmax.f32 %v4016_v54, 0.0 }
 0x4de   : > { %v4098_v1 = vmax.f32 %v4008_v46, 0.0  ;;  %v4288_v52 = vadd.f32 %v4287_v12, %v4097_v61  ;;  %v4011_v3 = vadd.f32 %v7108_v22, %v4010_v19 }
 0x4df   : > { %v4101_v41 = vmax.f32 %v4019_v2, 0.0 }
 0x4e0   : > { %v4289_v39 = vadd.f32 %v4288_v52, %v4098_v1  ;;  %v4099_v32 = vmax.f32 %v4011_v3, 0.0 }
 0x4e1   : > { %v4847_v60 = vpack.c.bf16 %v4101_v41, %v4100_v49 }
 0x4e2   : > { %v4842_v25 = vpack.c.bf16 %v4099_v32, %v4098_v1  ;;  %v4290_v57 = vadd.f32 %v4289_v39, %v4099_v32  ;;  %v5649_v23 = vpop.f32.mrb[156].mxu0 }
 0x4e3   : > { %4895 = vst [vmem:[%s7118_s12 + $0x38] sm:$0xff] %v4847_v60   ;;  %v4032_v55 = vadd.f32 %v5649_v23, %v7108_v22  ;;  %v4023_v38 = vpop.f32.mrb[157].mxu0 }
 0x4e4   : > { %4894 = vst [vmem:[%s7118_s12 + $0x30] sm:$0xff] %v4842_v25   ;;  %v4291_v62 = vadd.f32 %v4290_v57, %v4100_v49  ;;  %v4024_v11 = vadd.f32 %v7108_v22, %v4023_v38  ;;  %v5650_v18 = vpop.f32.mrb[158].mxu0 }
 0x4e5   : > { %v4035_v36 = vadd.f32 %v5650_v18, %v7108_v22  ;;  %v4026_v50 = vpop.f32.mrb[159].mxu0  ;;  %v4104_v33 = vmax.f32 %v4032_v55, 0.0 }
 0x4e6   : > { %v4102_v53 = vmax.f32 %v4024_v11, 0.0  ;;  %v4292_v34 = vadd.f32 %v4291_v62, %v4101_v41  ;;  %v4027_v43 = vadd.f32 %v7108_v22, %v4026_v50 }
 0x4e7   : > { %v4105_v15 = vmax.f32 %v4035_v36, 0.0 }
 0x4e8   : > { %v4293_v44 = vadd.f32 %v4292_v34, %v4102_v53  ;;  %v4103_v14 = vmax.f32 %v4027_v43, 0.0 }
 0x4e9   : > { %v4857_v20 = vpack.c.bf16 %v4105_v15, %v4104_v33 }
 0x4ea   : > { %v4852_v37 = vpack.c.bf16 %v4103_v14, %v4102_v53  ;;  %v4294_v4 = vadd.f32 %v4293_v44, %v4103_v14  ;;  %v5653_v16 = vpop.f32.mrb[160].mxu0 }
 0x4eb   : > { %4897 = vst [vmem:[%s7118_s12 + $0x48] sm:$0xff] %v4857_v20   ;;  %v4048_v63 = vadd.f32 %v5653_v16, %v7108_v22  ;;  %v4039_v59 = vpop.f32.mrb[161].mxu0 }
 0x4ec   : > { %4896 = vst [vmem:[%s7118_s12 + $0x40] sm:$0xff] %v4852_v37   ;;  %v4295_v26 = vadd.f32 %v4294_v4, %v4104_v33  ;;  %v4040_v6 = vadd.f32 %v7108_v22, %v4039_v59  ;;  %v5654_v0 = vpop.f32.mrb[162].mxu0 }
 0x4ed   : > { %v4051_v7 = vadd.f32 %v5654_v0, %v7108_v22  ;;  %v4042_v21 = vpop.f32.mrb[163].mxu0  ;;  %v4108_v45 = vmax.f32 %v4048_v63, 0.0 }
 0x4ee   : > { %v4106_v24 = vmax.f32 %v4040_v6, 0.0  ;;  %v4296_v13 = vadd.f32 %v4295_v26, %v4105_v15  ;;  %v4043_v35 = vadd.f32 %v7108_v22, %v4042_v21 }
 0x4ef   : > { %v4109_v56 = vmax.f32 %v4051_v7, 0.0 }
 0x4f0   : > { %v4297_v58 = vadd.f32 %v4296_v13, %v4106_v24  ;;  %v4107_v51 = vmax.f32 %v4043_v35, 0.0 }
 0x4f1   : > { %v4867_v10 = vpack.c.bf16 %v4109_v56, %v4108_v45 }
 0x4f2   : > { %v4862_v27 = vpack.c.bf16 %v4107_v51, %v4106_v24  ;;  %v4298_v40 = vadd.f32 %v4297_v58, %v4107_v51  ;;  %v5657_v48 = vpop.f32.mrb[164].mxu0 }
 0x4f3   : > { %4899 = vst [vmem:[%s7118_s12 + $0x58] sm:$0xff] %v4867_v10   ;;  %v4064_v17 = vadd.f32 %v5657_v48, %v7108_v22  ;;  %v4055_v29 = vpop.f32.mrb[165].mxu0 }
 0x4f4   : > { %4898 = vst [vmem:[%s7118_s12 + $0x50] sm:$0xff] %v4862_v27   ;;  %v4299_v61 = vadd.f32 %v4298_v40, %v4108_v45  ;;  %v4056_v28 = vadd.f32 %v7108_v22, %v4055_v29  ;;  %v5658_v8 = vpop.f32.mrb[166].mxu0 }
 0x4f5   : > { %v4067_v5 = vadd.f32 %v5658_v8, %v7108_v22  ;;  %v4058_v31 = vpop.f32.mrb[167].mxu0  ;;  %v4112_v9 = vmax.f32 %v4064_v17, 0.0 }
 0x4f6   : > { %v4110_v47 = vmax.f32 %v4056_v28, 0.0  ;;  %v4300_v42 = vadd.f32 %v4299_v61, %v4109_v56  ;;  %v4059_v54 = vadd.f32 %v7108_v22, %v4058_v31 }
 0x4f7   : > { %v4113_v12 = vmax.f32 %v4067_v5, 0.0 }
 0x4f8   : > { %v4301_v46 = vadd.f32 %v4300_v42, %v4110_v47  ;;  %v4111_v30 = vmax.f32 %v4059_v54, 0.0 }
 0x4f9   : > { %v4877_v2 = vpack.c.bf16 %v4113_v12, %v4112_v9 }
 0x4fa   : > { %v4872_v19 = vpack.c.bf16 %v4111_v30, %v4110_v47  ;;  %v4302_v1 = vadd.f32 %v4301_v46, %v4111_v30  ;;  %v5661_v52 = vpop.f32.mrb[168].mxu0 }
 0x4fb   : > { %4901 = vst [vmem:[%s7118_s12 + $0x68] sm:$0xff] %v4877_v2   ;;  %v4080_v3 = vadd.f32 %v5661_v52, %v7108_v22  ;;  %v4071_v49 = vpop.f32.mrb[169].mxu0 }
 0x4fc   : > { %4900 = vst [vmem:[%s7118_s12 + $0x60] sm:$0xff] %v4872_v19   ;;  %v4303_v41 = vadd.f32 %v4302_v1, %v4112_v9  ;;  %v4072_v39 = vadd.f32 %v7108_v22, %v4071_v49  ;;  %v5662_v32 = vpop.f32.mrb[170].mxu0 }
 0x4fd   : > { %v4083_v60 = vadd.f32 %v5662_v32, %v7108_v22  ;;  %v4074_v25 = vpop.f32.mrb[171].mxu0  ;;  %v4116_v38 = vmax.f32 %v4080_v3, 0.0 }
 0x4fe   : > { %v4114_v57 = vmax.f32 %v4072_v39, 0.0  ;;  %v4304_v23 = vadd.f32 %v4303_v41, %v4113_v12  ;;  %v4075_v55 = vadd.f32 %v7108_v22, %v4074_v25 }
 0x4ff   : > { %v4117_v62 = vmax.f32 %v4083_v60, 0.0 }
 0x500   : > { %v4305_v11 = vadd.f32 %v4304_v23, %v4114_v57  ;;  %v4115_v18 = vmax.f32 %v4075_v55, 0.0 }
 0x501   : > { %v4887_v36 = vpack.c.bf16 %v4117_v62, %v4116_v38 }
 0x502   : > { %v4882_v50 = vpack.c.bf16 %v4115_v18, %v4114_v57  ;;  %v4306_v53 = vadd.f32 %v4305_v11, %v4115_v18 }
 0x503   : > { %4903 = vst [vmem:[%s7118_s12 + $0x78] sm:$0xff] %v4887_v36  }
 0x504   : > { %4902 = vst [vmem:[%s7118_s12 + $0x70] sm:$0xff] %v4882_v50   ;;  %v4307_v34 = vadd.f32 %v4306_v53, %v4116_v38 }
 0x506   : > { %v4308_v43 = vadd.f32 %v4307_v34, %v4117_v62 }
 0x508   : > { %v4309_v33 = vrot.slane %v4308_v43, 4 }
 0x50a   : > { %v4310_v15 = vadd.f32 %v4309_v33, %v4308_v43 }
 0x50c   : > { %v4311_v44 = vrot.slane %v4310_v15, 2 }
 0x50e   : > { %v4312_v14 = vadd.f32 %v4311_v44, %v4310_v15 }
 0x510   : > { %v4313_v20 = vrot.slane %v4312_v14, 1 }
 0x512   : > { %v4314_v22 = vadd.f32 %v4313_v20, %v4312_v14 }
 0x514   : > { %4315 = vst [vmem:[%s345_s15] sm:$0x1] %v4314_v22 }
 0x515 PF: > { %s19_s29 = sadd.s32 1, %s6046_s29   ;;  %s7195_s27 = smov %s6042_s28 }
 0x516   : > { %p16_p5 = scmp.ge.s32.totalorder %s19_s29, 4   ;;  %s7196_s28 = smov %s7198_s30 }
 0x518   :  { %18 = sbr.rel (!%p16_p5) target bundleno = 2 (0x2), region = 99 }

</bundles_post_ra>
